<compile_context>
chip_gen: v7x
topology: tpu7x:2x2x1
jax: 0.10.0
libtpu: 0.0.40
codegen_flags: <defaults>
</compile_context>

<pallas_src>
import jax
import jax.numpy as jnp
from jax.experimental import pallas as pl
from jax.experimental.pallas import tpu as pltpu


# ---------------------------------------------------------------------------
# Pallas kernels
# ---------------------------------------------------------------------------

def _conv_mm_kernel(x_ref, w_ref, b_ref, o_ref):
    # x: (1, K, M) bf16 im2col patches for one batch element (channel-major,
    #    M = Ho*Wo on lanes); w: (Cout, K) bf16; b: (Cout, 1) f32.
    # o = relu(w @ x + b), stored bf16, lane-dense (last dim = M).
    y = jnp.dot(w_ref[...], x_ref[0], preferred_element_type=jnp.float32)
    o_ref[0] = jnp.maximum(y + b_ref[...], 0.0).astype(o_ref.dtype)


def _lstm_fc_kernel(xh_ref, wcat_ref, b_ref, c_ref, wout_ref, bout_ref,
                    v_ref, si_ref, sc_ref):
    # grid=(4,) over the PyTorch LSTMCell gate blocks (i, f, g, o).
    # Each step streams one (Din+H, H) bf16 slice of [Wih; Whh] and computes
    # gate = [x, h] @ Wcat_block + b_block in f32.  Gate state is carried in
    # two VMEM scratches; fc_out (512 -> 1) is a VPU multiply + lane reduce.
    g = pl.program_id(0)
    gate = (jnp.dot(xh_ref[...], wcat_ref[...],
                    preferred_element_type=jnp.float32) + b_ref[...])

    @pl.when(g == 0)                      # input gate
    def _():
        si_ref[...] = jax.nn.sigmoid(gate)

    @pl.when(g == 1)                      # forget gate: sc = f * c_prev
    def _():
        sc_ref[...] = jax.nn.sigmoid(gate) * c_ref[...]

    @pl.when(g == 2)                      # cell candidate: sc = c_new
    def _():
        sc_ref[...] = sc_ref[...] + si_ref[...] * jnp.tanh(gate)

    @pl.when(g == 3)                      # output gate + fc_out
    def _():
        h_new = jax.nn.sigmoid(gate) * jnp.tanh(sc_ref[...])
        v_ref[...] = (jnp.sum(h_new * wout_ref[...], axis=-1, keepdims=True)
                      + bout_ref[...])


# ---------------------------------------------------------------------------
# pallas_call wrappers
# ---------------------------------------------------------------------------

def _conv3x3_s2_p1_relu(x, w_t, b_col):
    # x: (B, Cin, H, W) bf16 (NCHW); w_t: (Cout, 9*Cin) bf16; b: (Cout, 1) f32.
    B, C, H, W = x.shape
    Ho = (H - 1) // 2 + 1
    Wo = (W - 1) // 2 + 1
    Cout = w_t.shape[0]
    K = 9 * C
    M = Ho * Wo
    xp = jnp.pad(x, ((0, 0), (0, 0), (1, 1), (1, 1)))
    # im2col (XLA glue): tap order (ki, kj, ci) matches the weight reshape.
    parts = [xp[:, :, ki:ki + 2 * Ho:2, kj:kj + 2 * Wo:2]
             for ki in range(3) for kj in range(3)]
    patches = jnp.concatenate(parts, axis=1).reshape(B, K, M)

    out = pl.pallas_call(
        _conv_mm_kernel,
        out_shape=jax.ShapeDtypeStruct((B, Cout, M), jnp.bfloat16),
        grid=(B,),
        in_specs=[pl.BlockSpec((1, K, M), lambda i: (i, 0, 0)),
                  pl.BlockSpec((Cout, K), lambda i: (0, 0)),
                  pl.BlockSpec((Cout, 1), lambda i: (0, 0))],
        out_specs=pl.BlockSpec((1, Cout, M), lambda i: (i, 0, 0)),
        compiler_params=pltpu.CompilerParams(
            dimension_semantics=("parallel",)),
    )(patches, w_t, b_col)
    return out.reshape(B, Cout, Ho, Wo)


def _lstm_fc(xh, c0, w_cat, b_gates, wout_row, bout):
    B, DK = xh.shape
    H = c0.shape[1]
    return pl.pallas_call(
        _lstm_fc_kernel,
        out_shape=jax.ShapeDtypeStruct((B, 1), jnp.float32),
        grid=(4,),
        in_specs=[pl.BlockSpec((B, DK), lambda g: (0, 0)),     # [x, h] bf16
                  pl.BlockSpec((DK, H), lambda g: (0, g)),     # [Wih;Whh] blk
                  pl.BlockSpec((1, H), lambda g: (0, g)),      # bias blk
                  pl.BlockSpec((B, H), lambda g: (0, 0)),      # c_prev
                  pl.BlockSpec((1, H), lambda g: (0, 0)),      # fc_out weight
                  pl.BlockSpec((1, 1), lambda g: (0, 0))],     # fc_out bias
        out_specs=pl.BlockSpec((B, 1), lambda g: (0, 0)),
        scratch_shapes=[pltpu.VMEM((B, H), jnp.float32),       # sigmoid(i)
                        pltpu.VMEM((B, H), jnp.float32)],      # running c
        compiler_params=pltpu.CompilerParams(
            dimension_semantics=("arbitrary",)),
    )(xh, w_cat, b_gates, c0, wout_row, bout)


# ---------------------------------------------------------------------------
# userCritic forward
# ---------------------------------------------------------------------------

def user_critic_forward(params, obs_nchw, hidden):
    h0, c0 = hidden
    x = obs_nchw.astype(jnp.bfloat16)                  # NCHW throughout
    x = _conv3x3_s2_p1_relu(x, params["conv1_wt"], params["conv1_b"])
    x = _conv3x3_s2_p1_relu(x, params["conv2_wt"], params["conv2_b"])
    x = _conv3x3_s2_p1_relu(x, params["conv3_wt"], params["conv3_b"])
    x = _conv3x3_s2_p1_relu(x, params["conv4_wt"], params["conv4_b"])
    B = x.shape[0]
    feat = x.reshape(B, -1)          # (B, 32*6*6): NCHW flatten == torch .view
    xh = jnp.concatenate([feat, h0.astype(jnp.bfloat16)], axis=1)
    v = _lstm_fc(xh, c0.astype(jnp.float32),
                 params["w_cat"], params["b_gates"],
                 params["wout_row"], params["bout"])   # (B, 1)
    return jnp.squeeze(v, -1)                          # (B,)


# ---------------------------------------------------------------------------
# Deterministic, kernel-ready parameter initialization
# (shapes/init follow cnn_model.__init__ / _initialize_weights)
# ---------------------------------------------------------------------------

def init_params(key, obs_dim, hidden=512):
    keys = jax.random.split(key, 8)

    def xavier(k, shape, fan_in, fan_out):
        bound = (6.0 / (fan_in + fan_out)) ** 0.5
        return jax.random.uniform(k, shape, jnp.float32, -bound, bound)

    params = {}
    cins = [obs_dim, 32, 32, 32]
    for i, cin in enumerate(cins):
        cout = 32
        w_hwio = xavier(keys[i], (3, 3, cin, cout), cin * 9, cout * 9)
        # (3,3,Cin,Cout) -> (Cout, 9*Cin); column order (ki,kj,ci) matches
        # the im2col tap ordering in _conv3x3_s2_p1_relu.
        params[f"conv{i + 1}_wt"] = (w_hwio.reshape(9 * cin, cout).T
                                     .astype(jnp.bfloat16))
        params[f"conv{i + 1}_b"] = jnp.zeros((cout, 1), jnp.float32)

    din = 32 * 6 * 6
    k = 1.0 / (hidden ** 0.5)   # PyTorch LSTMCell default weight init range
    wih_t = jax.random.uniform(keys[4], (din, 4 * hidden), jnp.float32, -k, k)
    whh_t = jax.random.uniform(keys[5], (hidden, 4 * hidden), jnp.float32, -k, k)
    params["w_cat"] = jnp.concatenate([wih_t, whh_t], axis=0).astype(jnp.bfloat16)
    params["b_gates"] = jnp.zeros((1, 4 * hidden), jnp.float32)  # b_ih + b_hh = 0
    params["wout_row"] = xavier(keys[6], (1, hidden), hidden, 1)  # fc_out weight
    params["bout"] = jnp.zeros((1, 1), jnp.float32)
    return params


if __name__ == "__main__":
    key = jax.random.PRNGKey(0)
    k_obs, k_h, k_c, k_p = jax.random.split(key, 4)

    B, obs_dim, hidden = 2, 4, 512
    # 84x84 spatial input is required: four stride-2 convs -> 6x6, matching
    # the fixed LSTM input size 32*6*6 in the module.
    obs = jax.random.normal(k_obs, (B, obs_dim, 84, 84), jnp.float32)
    h0 = jax.random.normal(k_h, (B, hidden), jnp.float32) * 0.1
    c0 = jax.random.normal(k_c, (B, hidden), jnp.float32) * 0.1

    params = init_params(k_p, obs_dim, hidden)

    fwd = jax.jit(user_critic_forward)
    v = fwd(params, obs, (h0, c0))
    v = jax.block_until_ready(v)
    assert v.shape == (B,)
    print("KERNEL_OK")
</pallas_src>

<mosaic_0001>
module attributes {stable_mosaic.version = 11 : i64} {
  func.func @_conv_mm_kernel(%arg0: i32, %arg1: memref<1x36x1764xbf16, #tpu.memory_space<vmem>>, %arg2: memref<32x36xbf16, #tpu.memory_space<vmem>>, %arg3: memref<32x1xf32, #tpu.memory_space<vmem>>, %arg4: memref<1x32x1764xbf16, #tpu.memory_space<vmem>>) attributes {dimension_semantics = [#tpu.dimension_semantics<parallel>], iteration_bounds = array<i64: 2>, scalar_prefetch = 0 : i64, scratch_operands = 0 : i64, tpu.core_type = #tpu.core_type<tc>, window_params = [{transform_indices = @transform_0, window_bounds = array<i64: 1, 36, 1764>}, {pipeline_mode = #tpu.pipeline_mode<synchronous>, transform_indices = @transform_1, window_bounds = array<i64: 32, 36>}, {pipeline_mode = #tpu.pipeline_mode<synchronous>, transform_indices = @transform_2, window_bounds = array<i64: 32, 1>}, {transform_indices = @transform_3, window_bounds = array<i64: 1, 32, 1764>}]} {
    %c0 = arith.constant 0 : index
    %c0_0 = arith.constant 0 : index
    %0 = vector.load %arg2[%c0, %c0_0] : memref<32x36xbf16, #tpu.memory_space<vmem>>, vector<32x36xbf16>
    %c0_1 = arith.constant 0 : index
    %c0_2 = arith.constant 0 : index
    %c0_3 = arith.constant 0 : index
    %1 = vector.load %arg1[%c0_1, %c0_2, %c0_3] : memref<1x36x1764xbf16, #tpu.memory_space<vmem>>, vector<1x36x1764xbf16>
    %2 = vector.shape_cast %1 : vector<1x36x1764xbf16> to vector<36x1764xbf16>
    %cst = arith.constant dense<0.000000e+00> : vector<32x1764xf32>
    %3 = tpu.matmul %0, %2, %cst {dimension_numbers = #tpu.dot_dimension_numbers<[1], [0], [0], [1], [0, 0, 1, 1], [], []>} : vector<32x36xbf16>, vector<36x1764xbf16>, vector<32x1764xf32> -> vector<32x1764xf32>
    %c0_4 = arith.constant 0 : index
    %c0_5 = arith.constant 0 : index
    %4 = vector.load %arg3[%c0_4, %c0_5] : memref<32x1xf32, #tpu.memory_space<vmem>>, vector<32x1xf32>
    %5 = vector.broadcast %4 : vector<32x1xf32> to vector<32x1764xf32>
    %6 = arith.addf %3, %5 : vector<32x1764xf32>
    %cst_6 = arith.constant 0.000000e+00 : f32
    %7 = vector.broadcast %cst_6 : f32 to vector<32x1764xf32>
    %8 = arith.maximumf %6, %7 : vector<32x1764xf32>
    %9 = arith.truncf %8 : vector<32x1764xf32> to vector<32x1764xbf16>
    %c0_7 = arith.constant 0 : index
    %c0_8 = arith.constant 0 : index
    %c0_9 = arith.constant 0 : index
    %10 = vector.load %arg4[%c0_7, %c0_8, %c0_9] : memref<1x32x1764xbf16, #tpu.memory_space<vmem>>, vector<1x32x1764xbf16>
    %11 = vector.shape_cast %10 : vector<1x32x1764xbf16> to vector<32x1764xbf16>
    %12 = vector.shape_cast %9 : vector<32x1764xbf16> to vector<1x32x1764xbf16>
    tpu.vector_store %arg4[%c0_7, %c0_8, %c0_9], %12 {strides = array<i32>} : memref<1x32x1764xbf16, #tpu.memory_space<vmem>>, vector<1x32x1764xbf16>,
    return
  }
  func.func @transform_0(%arg0: i32) -> (i32, i32, i32) {
    %c0_i32 = arith.constant 0 : i32
    %c0_i32_0 = arith.constant 0 : i32
    %c0_i32_1 = arith.constant 0 : i32
    return %arg0, %c0_i32, %c0_i32_0 : i32, i32, i32
  }
  func.func @transform_1(%arg0: i32) -> (i32, i32) {
    %c0_i32 = arith.constant 0 : i32
    %c0_i32_0 = arith.constant 0 : i32
    %c0_i32_1 = arith.constant 0 : i32
    return %c0_i32, %c0_i32_0 : i32, i32
  }
  func.func @transform_2(%arg0: i32) -> (i32, i32) {
    %c0_i32 = arith.constant 0 : i32
    %c0_i32_0 = arith.constant 0 : i32
    %c0_i32_1 = arith.constant 0 : i32
    return %c0_i32, %c0_i32_0 : i32, i32
  }
  func.func @transform_3(%arg0: i32) -> (i32, i32, i32) {
    %c0_i32 = arith.constant 0 : i32
    %c0_i32_0 = arith.constant 0 : i32
    %c0_i32_1 = arith.constant 0 : i32
    return %arg0, %c0_i32, %c0_i32_0 : i32, i32, i32
  }
}

module attributes {stable_mosaic.version = 11 : i64} {
  func.func @_conv_mm_kernel(%arg0: i32, %arg1: memref<1x288x441xbf16, #tpu.memory_space<vmem>>, %arg2: memref<32x288xbf16, #tpu.memory_space<vmem>>, %arg3: memref<32x1xf32, #tpu.memory_space<vmem>>, %arg4: memref<1x32x441xbf16, #tpu.memory_space<vmem>>) attributes {dimension_semantics = [#tpu.dimension_semantics<parallel>], iteration_bounds = array<i64: 2>, scalar_prefetch = 0 : i64, scratch_operands = 0 : i64, tpu.core_type = #tpu.core_type<tc>, window_params = [{transform_indices = @transform_0, window_bounds = array<i64: 1, 288, 441>}, {pipeline_mode = #tpu.pipeline_mode<synchronous>, transform_indices = @transform_1, window_bounds = array<i64: 32, 288>}, {pipeline_mode = #tpu.pipeline_mode<synchronous>, transform_indices = @transform_2, window_bounds = array<i64: 32, 1>}, {transform_indices = @transform_3, window_bounds = array<i64: 1, 32, 441>}]} {
    %c0 = arith.constant 0 : index
    %c0_0 = arith.constant 0 : index
    %0 = vector.load %arg2[%c0, %c0_0] : memref<32x288xbf16, #tpu.memory_space<vmem>>, vector<32x288xbf16>
    %c0_1 = arith.constant 0 : index
    %c0_2 = arith.constant 0 : index
    %c0_3 = arith.constant 0 : index
    %1 = vector.load %arg1[%c0_1, %c0_2, %c0_3] : memref<1x288x441xbf16, #tpu.memory_space<vmem>>, vector<1x288x441xbf16>
    %2 = vector.shape_cast %1 : vector<1x288x441xbf16> to vector<288x441xbf16>
    %cst = arith.constant dense<0.000000e+00> : vector<32x441xf32>
    %3 = tpu.matmul %0, %2, %cst {dimension_numbers = #tpu.dot_dimension_numbers<[1], [0], [0], [1], [0, 0, 1, 1], [], []>} : vector<32x288xbf16>, vector<288x441xbf16>, vector<32x441xf32> -> vector<32x441xf32>
    %c0_4 = arith.constant 0 : index
    %c0_5 = arith.constant 0 : index
    %4 = vector.load %arg3[%c0_4, %c0_5] : memref<32x1xf32, #tpu.memory_space<vmem>>, vector<32x1xf32>
    %5 = vector.broadcast %4 : vector<32x1xf32> to vector<32x441xf32>
    %6 = arith.addf %3, %5 : vector<32x441xf32>
    %cst_6 = arith.constant 0.000000e+00 : f32
    %7 = vector.broadcast %cst_6 : f32 to vector<32x441xf32>
    %8 = arith.maximumf %6, %7 : vector<32x441xf32>
    %9 = arith.truncf %8 : vector<32x441xf32> to vector<32x441xbf16>
    %c0_7 = arith.constant 0 : index
    %c0_8 = arith.constant 0 : index
    %c0_9 = arith.constant 0 : index
    %10 = vector.load %arg4[%c0_7, %c0_8, %c0_9] : memref<1x32x441xbf16, #tpu.memory_space<vmem>>, vector<1x32x441xbf16>
    %11 = vector.shape_cast %10 : vector<1x32x441xbf16> to vector<32x441xbf16>
    %12 = vector.shape_cast %9 : vector<32x441xbf16> to vector<1x32x441xbf16>
    tpu.vector_store %arg4[%c0_7, %c0_8, %c0_9], %12 {strides = array<i32>} : memref<1x32x441xbf16, #tpu.memory_space<vmem>>, vector<1x32x441xbf16>,
    return
  }
  func.func @transform_0(%arg0: i32) -> (i32, i32, i32) {
    %c0_i32 = arith.constant 0 : i32
    %c0_i32_0 = arith.constant 0 : i32
    %c0_i32_1 = arith.constant 0 : i32
    return %arg0, %c0_i32, %c0_i32_0 : i32, i32, i32
  }
  func.func @transform_1(%arg0: i32) -> (i32, i32) {
    %c0_i32 = arith.constant 0 : i32
    %c0_i32_0 = arith.constant 0 : i32
    %c0_i32_1 = arith.constant 0 : i32
    return %c0_i32, %c0_i32_0 : i32, i32
  }
  func.func @transform_2(%arg0: i32) -> (i32, i32) {
    %c0_i32 = arith.constant 0 : i32
    %c0_i32_0 = arith.constant 0 : i32
    %c0_i32_1 = arith.constant 0 : i32
    return %c0_i32, %c0_i32_0 : i32, i32
  }
  func.func @transform_3(%arg0: i32) -> (i32, i32, i32) {
    %c0_i32 = arith.constant 0 : i32
    %c0_i32_0 = arith.constant 0 : i32
    %c0_i32_1 = arith.constant 0 : i32
    return %arg0, %c0_i32, %c0_i32_0 : i32, i32, i32
  }
}

module attributes {stable_mosaic.version = 11 : i64} {
  func.func @_conv_mm_kernel(%arg0: i32, %arg1: memref<1x288x121xbf16, #tpu.memory_space<vmem>>, %arg2: memref<32x288xbf16, #tpu.memory_space<vmem>>, %arg3: memref<32x1xf32, #tpu.memory_space<vmem>>, %arg4: memref<1x32x121xbf16, #tpu.memory_space<vmem>>) attributes {dimension_semantics = [#tpu.dimension_semantics<parallel>], iteration_bounds = array<i64: 2>, scalar_prefetch = 0 : i64, scratch_operands = 0 : i64, tpu.core_type = #tpu.core_type<tc>, window_params = [{transform_indices = @transform_0, window_bounds = array<i64: 1, 288, 121>}, {pipeline_mode = #tpu.pipeline_mode<synchronous>, transform_indices = @transform_1, window_bounds = array<i64: 32, 288>}, {pipeline_mode = #tpu.pipeline_mode<synchronous>, transform_indices = @transform_2, window_bounds = array<i64: 32, 1>}, {transform_indices = @transform_3, window_bounds = array<i64: 1, 32, 121>}]} {
    %c0 = arith.constant 0 : index
    %c0_0 = arith.constant 0 : index
    %0 = vector.load %arg2[%c0, %c0_0] : memref<32x288xbf16, #tpu.memory_space<vmem>>, vector<32x288xbf16>
    %c0_1 = arith.constant 0 : index
    %c0_2 = arith.constant 0 : index
    %c0_3 = arith.constant 0 : index
    %1 = vector.load %arg1[%c0_1, %c0_2, %c0_3] : memref<1x288x121xbf16, #tpu.memory_space<vmem>>, vector<1x288x121xbf16>
    %2 = vector.shape_cast %1 : vector<1x288x121xbf16> to vector<288x121xbf16>
    %cst = arith.constant dense<0.000000e+00> : vector<32x121xf32>
    %3 = tpu.matmul %0, %2, %cst {dimension_numbers = #tpu.dot_dimension_numbers<[1], [0], [0], [1], [0, 0, 1, 1], [], []>} : vector<32x288xbf16>, vector<288x121xbf16>, vector<32x121xf32> -> vector<32x121xf32>
    %c0_4 = arith.constant 0 : index
    %c0_5 = arith.constant 0 : index
    %4 = vector.load %arg3[%c0_4, %c0_5] : memref<32x1xf32, #tpu.memory_space<vmem>>, vector<32x1xf32>
    %5 = vector.broadcast %4 : vector<32x1xf32> to vector<32x121xf32>
    %6 = arith.addf %3, %5 : vector<32x121xf32>
    %cst_6 = arith.constant 0.000000e+00 : f32
    %7 = vector.broadcast %cst_6 : f32 to vector<32x121xf32>
    %8 = arith.maximumf %6, %7 : vector<32x121xf32>
    %9 = arith.truncf %8 : vector<32x121xf32> to vector<32x121xbf16>
    %c0_7 = arith.constant 0 : index
    %c0_8 = arith.constant 0 : index
    %c0_9 = arith.constant 0 : index
    %10 = vector.load %arg4[%c0_7, %c0_8, %c0_9] : memref<1x32x121xbf16, #tpu.memory_space<vmem>>, vector<1x32x121xbf16>
    %11 = vector.shape_cast %10 : vector<1x32x121xbf16> to vector<32x121xbf16>
    %12 = vector.shape_cast %9 : vector<32x121xbf16> to vector<1x32x121xbf16>
    tpu.vector_store %arg4[%c0_7, %c0_8, %c0_9], %12 {strides = array<i32>} : memref<1x32x121xbf16, #tpu.memory_space<vmem>>, vector<1x32x121xbf16>,
    return
  }
  func.func @transform_0(%arg0: i32) -> (i32, i32, i32) {
    %c0_i32 = arith.constant 0 : i32
    %c0_i32_0 = arith.constant 0 : i32
    %c0_i32_1 = arith.constant 0 : i32
    return %arg0, %c0_i32, %c0_i32_0 : i32, i32, i32
  }
  func.func @transform_1(%arg0: i32) -> (i32, i32) {
    %c0_i32 = arith.constant 0 : i32
    %c0_i32_0 = arith.constant 0 : i32
    %c0_i32_1 = arith.constant 0 : i32
    return %c0_i32, %c0_i32_0 : i32, i32
  }
  func.func @transform_2(%arg0: i32) -> (i32, i32) {
    %c0_i32 = arith.constant 0 : i32
    %c0_i32_0 = arith.constant 0 : i32
    %c0_i32_1 = arith.constant 0 : i32
    return %c0_i32, %c0_i32_0 : i32, i32
  }
  func.func @transform_3(%arg0: i32) -> (i32, i32, i32) {
    %c0_i32 = arith.constant 0 : i32
    %c0_i32_0 = arith.constant 0 : i32
    %c0_i32_1 = arith.constant 0 : i32
    return %arg0, %c0_i32, %c0_i32_0 : i32, i32, i32
  }
}

module attributes {stable_mosaic.version = 11 : i64} {
  func.func @_conv_mm_kernel(%arg0: i32, %arg1: memref<1x288x36xbf16, #tpu.memory_space<vmem>>, %arg2: memref<32x288xbf16, #tpu.memory_space<vmem>>, %arg3: memref<32x1xf32, #tpu.memory_space<vmem>>, %arg4: memref<1x32x36xbf16, #tpu.memory_space<vmem>>) attributes {dimension_semantics = [#tpu.dimension_semantics<parallel>], iteration_bounds = array<i64: 2>, scalar_prefetch = 0 : i64, scratch_operands = 0 : i64, tpu.core_type = #tpu.core_type<tc>, window_params = [{transform_indices = @transform_0, window_bounds = array<i64: 1, 288, 36>}, {pipeline_mode = #tpu.pipeline_mode<synchronous>, transform_indices = @transform_1, window_bounds = array<i64: 32, 288>}, {pipeline_mode = #tpu.pipeline_mode<synchronous>, transform_indices = @transform_2, window_bounds = array<i64: 32, 1>}, {transform_indices = @transform_3, window_bounds = array<i64: 1, 32, 36>}]} {
    %c0 = arith.constant 0 : index
    %c0_0 = arith.constant 0 : index
    %0 = vector.load %arg2[%c0, %c0_0] : memref<32x288xbf16, #tpu.memory_space<vmem>>, vector<32x288xbf16>
    %c0_1 = arith.constant 0 : index
    %c0_2 = arith.constant 0 : index
    %c0_3 = arith.constant 0 : index
    %1 = vector.load %arg1[%c0_1, %c0_2, %c0_3] : memref<1x288x36xbf16, #tpu.memory_space<vmem>>, vector<1x288x36xbf16>
    %2 = vector.shape_cast %1 : vector<1x288x36xbf16> to vector<288x36xbf16>
    %cst = arith.constant dense<0.000000e+00> : vector<32x36xf32>
    %3 = tpu.matmul %0, %2, %cst {dimension_numbers = #tpu.dot_dimension_numbers<[1], [0], [0], [1], [0, 0, 1, 1], [], []>} : vector<32x288xbf16>, vector<288x36xbf16>, vector<32x36xf32> -> vector<32x36xf32>
    %c0_4 = arith.constant 0 : index
    %c0_5 = arith.constant 0 : index
    %4 = vector.load %arg3[%c0_4, %c0_5] : memref<32x1xf32, #tpu.memory_space<vmem>>, vector<32x1xf32>
    %5 = vector.broadcast %4 : vector<32x1xf32> to vector<32x36xf32>
    %6 = arith.addf %3, %5 : vector<32x36xf32>
    %cst_6 = arith.constant 0.000000e+00 : f32
    %7 = vector.broadcast %cst_6 : f32 to vector<32x36xf32>
    %8 = arith.maximumf %6, %7 : vector<32x36xf32>
    %9 = arith.truncf %8 : vector<32x36xf32> to vector<32x36xbf16>
    %c0_7 = arith.constant 0 : index
    %c0_8 = arith.constant 0 : index
    %c0_9 = arith.constant 0 : index
    %10 = vector.load %arg4[%c0_7, %c0_8, %c0_9] : memref<1x32x36xbf16, #tpu.memory_space<vmem>>, vector<1x32x36xbf16>
    %11 = vector.shape_cast %10 : vector<1x32x36xbf16> to vector<32x36xbf16>
    %12 = vector.shape_cast %9 : vector<32x36xbf16> to vector<1x32x36xbf16>
    tpu.vector_store %arg4[%c0_7, %c0_8, %c0_9], %12 {strides = array<i32>} : memref<1x32x36xbf16, #tpu.memory_space<vmem>>, vector<1x32x36xbf16>,
    return
  }
  func.func @transform_0(%arg0: i32) -> (i32, i32, i32) {
    %c0_i32 = arith.constant 0 : i32
    %c0_i32_0 = arith.constant 0 : i32
    %c0_i32_1 = arith.constant 0 : i32
    return %arg0, %c0_i32, %c0_i32_0 : i32, i32, i32
  }
  func.func @transform_1(%arg0: i32) -> (i32, i32) {
    %c0_i32 = arith.constant 0 : i32
    %c0_i32_0 = arith.constant 0 : i32
    %c0_i32_1 = arith.constant 0 : i32
    return %c0_i32, %c0_i32_0 : i32, i32
  }
  func.func @transform_2(%arg0: i32) -> (i32, i32) {
    %c0_i32 = arith.constant 0 : i32
    %c0_i32_0 = arith.constant 0 : i32
    %c0_i32_1 = arith.constant 0 : i32
    return %c0_i32, %c0_i32_0 : i32, i32
  }
  func.func @transform_3(%arg0: i32) -> (i32, i32, i32) {
    %c0_i32 = arith.constant 0 : i32
    %c0_i32_0 = arith.constant 0 : i32
    %c0_i32_1 = arith.constant 0 : i32
    return %arg0, %c0_i32, %c0_i32_0 : i32, i32, i32
  }
}

module attributes {stable_mosaic.version = 11 : i64} {
  func.func @_lstm_fc_kernel(%arg0: i32, %arg1: memref<2x1664xbf16, #tpu.memory_space<vmem>>, %arg2: memref<1664x512xbf16, #tpu.memory_space<vmem>>, %arg3: memref<1x512xf32, #tpu.memory_space<vmem>>, %arg4: memref<2x512xf32, #tpu.memory_space<vmem>>, %arg5: memref<1x512xf32, #tpu.memory_space<vmem>>, %arg6: memref<1x1xf32, #tpu.memory_space<vmem>>, %arg7: memref<2x1xf32, #tpu.memory_space<vmem>>, %arg8: memref<2x512xf32, #tpu.memory_space<vmem>>, %arg9: memref<2x512xf32, #tpu.memory_space<vmem>>) attributes {dimension_semantics = [#tpu.dimension_semantics<arbitrary>], iteration_bounds = array<i64: 4>, scalar_prefetch = 0 : i64, scratch_operands = 2 : i64, tpu.core_type = #tpu.core_type<tc>, window_params = [{pipeline_mode = #tpu.pipeline_mode<synchronous>, transform_indices = @transform_0, window_bounds = array<i64: 2, 1664>}, {transform_indices = @transform_1, window_bounds = array<i64: 1664, 512>}, {transform_indices = @transform_2, window_bounds = array<i64: 1, 512>}, {pipeline_mode = #tpu.pipeline_mode<synchronous>, transform_indices = @transform_3, window_bounds = array<i64: 2, 512>}, {pipeline_mode = #tpu.pipeline_mode<synchronous>, transform_indices = @transform_4, window_bounds = array<i64: 1, 512>}, {pipeline_mode = #tpu.pipeline_mode<synchronous>, transform_indices = @transform_5, window_bounds = array<i64: 1, 1>}, {pipeline_mode = #tpu.pipeline_mode<synchronous>, transform_indices = @transform_6, window_bounds = array<i64: 2, 1>}]} {
    %c0 = arith.constant 0 : index
    %c0_0 = arith.constant 0 : index
    %0 = vector.load %arg1[%c0, %c0_0] : memref<2x1664xbf16, #tpu.memory_space<vmem>>, vector<2x1664xbf16>
    %c0_1 = arith.constant 0 : index
    %c0_2 = arith.constant 0 : index
    %1 = vector.load %arg2[%c0_1, %c0_2] : memref<1664x512xbf16, #tpu.memory_space<vmem>>, vector<1664x512xbf16>
    %cst = arith.constant dense<0.000000e+00> : vector<2x512xf32>
    %2 = tpu.matmul %0, %1, %cst {dimension_numbers = #tpu.dot_dimension_numbers<[1], [0], [0], [1], [0, 0, 1, 1], [], []>} : vector<2x1664xbf16>, vector<1664x512xbf16>, vector<2x512xf32> -> vector<2x512xf32>
    %c0_3 = arith.constant 0 : index
    %c0_4 = arith.constant 0 : index
    %3 = vector.load %arg3[%c0_3, %c0_4] : memref<1x512xf32, #tpu.memory_space<vmem>>, vector<1x512xf32>
    %4 = vector.broadcast %3 : vector<1x512xf32> to vector<2x512xf32>
    %5 = arith.addf %2, %4 : vector<2x512xf32>
    %c0_i32 = arith.constant 0 : i32
    %6 = arith.cmpi eq, %arg0, %c0_i32 : i32
    %7 = arith.extui %6 : i1 to i32
    %c0_i32_5 = arith.constant 0 : i32
    %8 = arith.cmpi ne, %7, %c0_i32_5 : i32
    scf.if %8 {
      %18 = arith.negf %5 : vector<2x512xf32>
      %19 = math.exp %18 : vector<2x512xf32>
      %cst_9 = arith.constant 1.000000e+00 : f32
      %20 = vector.broadcast %cst_9 : f32 to vector<2x512xf32>
      %21 = arith.addf %20, %19 : vector<2x512xf32>
      %22 = arith.divf %20, %21 : vector<2x512xf32>
      %c0_10 = arith.constant 0 : index
      %c0_11 = arith.constant 0 : index
      %23 = vector.load %arg8[%c0_10, %c0_11] : memref<2x512xf32, #tpu.memory_space<vmem>>, vector<2x512xf32>
      tpu.vector_store %arg8[%c0_10, %c0_11], %22 {strides = array<i32>} : memref<2x512xf32, #tpu.memory_space<vmem>>, vector<2x512xf32>,
    } else {
    }
    %c1_i32 = arith.constant 1 : i32
    %9 = arith.cmpi eq, %arg0, %c1_i32 : i32
    %10 = arith.extui %9 : i1 to i32
    %c0_i32_6 = arith.constant 0 : i32
    %11 = arith.cmpi ne, %10, %c0_i32_6 : i32
    scf.if %11 {
      %18 = arith.negf %5 : vector<2x512xf32>
      %19 = math.exp %18 : vector<2x512xf32>
      %cst_9 = arith.constant 1.000000e+00 : f32
      %20 = vector.broadcast %cst_9 : f32 to vector<2x512xf32>
      %21 = arith.addf %20, %19 : vector<2x512xf32>
      %22 = arith.divf %20, %21 : vector<2x512xf32>
      %c0_10 = arith.constant 0 : index
      %c0_11 = arith.constant 0 : index
      %23 = vector.load %arg4[%c0_10, %c0_11] : memref<2x512xf32, #tpu.memory_space<vmem>>, vector<2x512xf32>
      %24 = arith.mulf %22, %23 : vector<2x512xf32>
      %c0_12 = arith.constant 0 : index
      %c0_13 = arith.constant 0 : index
      %25 = vector.load %arg9[%c0_12, %c0_13] : memref<2x512xf32, #tpu.memory_space<vmem>>, vector<2x512xf32>
      tpu.vector_store %arg9[%c0_12, %c0_13], %24 {strides = array<i32>} : memref<2x512xf32, #tpu.memory_space<vmem>>, vector<2x512xf32>,
    } else {
    }
    %c2_i32 = arith.constant 2 : i32
    %12 = arith.cmpi eq, %arg0, %c2_i32 : i32
    %13 = arith.extui %12 : i1 to i32
    %c0_i32_7 = arith.constant 0 : i32
    %14 = arith.cmpi ne, %13, %c0_i32_7 : i32
    scf.if %14 {
      %c0_9 = arith.constant 0 : index
      %c0_10 = arith.constant 0 : index
      %18 = vector.load %arg9[%c0_9, %c0_10] : memref<2x512xf32, #tpu.memory_space<vmem>>, vector<2x512xf32>
      %c0_11 = arith.constant 0 : index
      %c0_12 = arith.constant 0 : index
      %19 = vector.load %arg8[%c0_11, %c0_12] : memref<2x512xf32, #tpu.memory_space<vmem>>, vector<2x512xf32>
      %20 = math.tanh %5 : vector<2x512xf32>
      %21 = arith.mulf %19, %20 : vector<2x512xf32>
      %22 = arith.addf %18, %21 : vector<2x512xf32>
      %c0_13 = arith.constant 0 : index
      %c0_14 = arith.constant 0 : index
      %23 = vector.load %arg9[%c0_13, %c0_14] : memref<2x512xf32, #tpu.memory_space<vmem>>, vector<2x512xf32>
      tpu.vector_store %arg9[%c0_13, %c0_14], %22 {strides = array<i32>} : memref<2x512xf32, #tpu.memory_space<vmem>>, vector<2x512xf32>,
    } else {
    }
    %c3_i32 = arith.constant 3 : i32
    %15 = arith.cmpi eq, %arg0, %c3_i32 : i32
    %16 = arith.extui %15 : i1 to i32
    %c0_i32_8 = arith.constant 0 : i32
    %17 = arith.cmpi ne, %16, %c0_i32_8 : i32
    scf.if %17 {
      %18 = arith.negf %5 : vector<2x512xf32>
      %19 = math.exp %18 : vector<2x512xf32>
      %cst_9 = arith.constant 1.000000e+00 : f32
      %20 = vector.broadcast %cst_9 : f32 to vector<2x512xf32>
      %21 = arith.addf %20, %19 : vector<2x512xf32>
      %22 = arith.divf %20, %21 : vector<2x512xf32>
      %c0_10 = arith.constant 0 : index
      %c0_11 = arith.constant 0 : index
      %23 = vector.load %arg9[%c0_10, %c0_11] : memref<2x512xf32, #tpu.memory_space<vmem>>, vector<2x512xf32>
      %24 = math.tanh %23 : vector<2x512xf32>
      %25 = arith.mulf %22, %24 : vector<2x512xf32>
      %c0_12 = arith.constant 0 : index
      %c0_13 = arith.constant 0 : index
      %26 = vector.load %arg5[%c0_12, %c0_13] : memref<1x512xf32, #tpu.memory_space<vmem>>, vector<1x512xf32>
      %27 = vector.broadcast %26 : vector<1x512xf32> to vector<2x512xf32>
      %28 = arith.mulf %25, %27 : vector<2x512xf32>
      %cst_14 = arith.constant dense<0.000000e+00> : vector<2xf32>
      %29 = vector.multi_reduction <add>, %28, %cst_14 [1] : vector<2x512xf32> to vector<2xf32>
      %30 = vector.shape_cast %29 : vector<2xf32> to vector<2x1xf32>
      %c0_15 = arith.constant 0 : index
      %c0_16 = arith.constant 0 : index
      %31 = vector.load %arg6[%c0_15, %c0_16] : memref<1x1xf32, #tpu.memory_space<vmem>>, vector<1x1xf32>
      %32 = vector.broadcast %31 : vector<1x1xf32> to vector<2x1xf32>
      %33 = arith.addf %30, %32 : vector<2x1xf32>
      %c0_17 = arith.constant 0 : index
      %c0_18 = arith.constant 0 : index
      %34 = vector.load %arg7[%c0_17, %c0_18] : memref<2x1xf32, #tpu.memory_space<vmem>>, vector<2x1xf32>
      tpu.vector_store %arg7[%c0_17, %c0_18], %33 {strides = array<i32>} : memref<2x1xf32, #tpu.memory_space<vmem>>, vector<2x1xf32>,
    } else {
    }
    return
  }
  func.func @transform_0(%arg0: i32) -> (i32, i32) {
    %c0_i32 = arith.constant 0 : i32
    %c0_i32_0 = arith.constant 0 : i32
    %c0_i32_1 = arith.constant 0 : i32
    return %c0_i32, %c0_i32_0 : i32, i32
  }
  func.func @transform_1(%arg0: i32) -> (i32, i32) {
    %c0_i32 = arith.constant 0 : i32
    %c0_i32_0 = arith.constant 0 : i32
    return %c0_i32, %arg0 : i32, i32
  }
  func.func @transform_2(%arg0: i32) -> (i32, i32) {
    %c0_i32 = arith.constant 0 : i32
    %c0_i32_0 = arith.constant 0 : i32
    return %c0_i32, %arg0 : i32, i32
  }
  func.func @transform_3(%arg0: i32) -> (i32, i32) {
    %c0_i32 = arith.constant 0 : i32
    %c0_i32_0 = arith.constant 0 : i32
    %c0_i32_1 = arith.constant 0 : i32
    return %c0_i32, %c0_i32_0 : i32, i32
  }
  func.func @transform_4(%arg0: i32) -> (i32, i32) {
    %c0_i32 = arith.constant 0 : i32
    %c0_i32_0 = arith.constant 0 : i32
    %c0_i32_1 = arith.constant 0 : i32
    return %c0_i32, %c0_i32_0 : i32, i32
  }
  func.func @transform_5(%arg0: i32) -> (i32, i32) {
    %c0_i32 = arith.constant 0 : i32
    %c0_i32_0 = arith.constant 0 : i32
    %c0_i32_1 = arith.constant 0 : i32
    return %c0_i32, %c0_i32_0 : i32, i32
  }
  func.func @transform_6(%arg0: i32) -> (i32, i32) {
    %c0_i32 = arith.constant 0 : i32
    %c0_i32_0 = arith.constant 0 : i32
    %c0_i32_1 = arith.constant 0 : i32
    return %c0_i32, %c0_i32_0 : i32, i32
  }
}

</mosaic_0001>

<bundles_post_ra>
// kernel: user_critic_forward.5
= control target key start
LH: loop header
LB: loop body
LE: loop exit
PB: predicated region body
PF: predicated region fallthrough
CT: control target
= control target key end

     0   :  { %s1387_s12 = smov 0   ;;  %s1621_s0 = inlined_call_operand.vmem [shape: bf16[2,36,1764], index: 0, kind: input, shape index: {}]   ;;  %s1622_s1 = inlined_call_operand.vmem [shape: bf16[32,36], index: 1, kind: input, shape index: {}]   ;;  %s1623_s2 = inlined_call_operand.vmem [shape: f32[32,1], index: 2, kind: input, shape index: {}]   ;;  %s1624_s3 = inlined_call_operand.vmem [shape: bf16[2,32,1764], index: 3, kind: output, shape index: {}]  }
   0x1 LB: > { %s1151_s13 = sadd.s32 4294967295, %s1364_s12   ;;  %p1155_p0 = scmp.ge.s32.totalorder %s1364_s12, 1  ;;  %s1364_s12 = sphi %s1387_s12, %s13_s12  }
   0x2   : > { %p137_p1 = scmp.lt.s32.totalorder %s1364_s12, 3 }
   0x4   : > { %p138_p2 = pnand %p1155_p0, %p137_p1 }
   0x5   : > { %p161_p3 = scmp.lt.s32.totalorder (!%p138_p2), %s1151_s13, 1  ;;  %v1366_v0 = vmov (!%p138_p2), 0   ;;  %v211_v1 = vld [vmem:[%s1623_s2] sm:$0xff] (!%p138_p2)  ;;  %v213_v2 = vld [vmem:[%s1623_s2 + $0x10] sm:$0xff] (!%p138_p2)  ;;  %v212_v3 = vld [vmem:[%s1623_s2 + $0x8] sm:$0xff] (!%p138_p2)  ;;  %vm427_vm0 = vcmask (!%p138_p2), 1041408  }
   0x6   : > { %141 = sbr.rel (%p138_p2) target bundleno = 301 (0x12d), region = 32  ;;  %502 = vmatprep.mubr.bf16.mxu0 (!%p138_p2), %v1366_v0  ;;  %555 = vmatprep.mubr.bf16.mxu1 (!%p138_p2), %v1366_v0  ;;  %v214_v4 = vld [vmem:[%s1623_s2 + $0x18] sm:$0xff] (!%p138_p2)  ;;  %v1438_v23 = vld [vmem:[%s1622_s1] sm:$0xff] (!%p138_p2)   ;;  %vm420_vm1 = vcmask (!%p138_p2), 293888   ;;  %v1457_v36 = vld [vmem:[%s1622_s1 + $0x8] sm:$0xff] (!%p138_p2)   ;;  %vm1071_vm2 = vcmask (!%p138_p2), 1043456  }
   0x7   : > { %1298 = vset.pattern.permute.xlu0 (!%p138_p2), %v1366_v0  ;;  %1299 = vset.pattern.permute.xlu1 (!%p138_p2), %v1366_v0  ;;  %vm1072_vm3 = vcmask (!%p138_p2), 818180  }
   0x8   : > { %217 = vperm.xlu0 (!%p138_p2), %1298, %v211_v1   ;;  %227 = vperm.xlu1 (!%p138_p2), %1299, %v213_v2   ;;  %vm1073_vm4 = vmor (!%p138_p2), %vm1072_vm3, %vm1071_vm2 }
   0xc   : > { %222 = vperm.xlu0 (!%p138_p2), %1298, %v212_v3   ;;  %232 = vperm.xlu1 (!%p138_p2), %1299, %v214_v4  }
   0xd   : > { %s1626_s13 = smov (!%p161_p3, %s1151_s13), 1 }
   0xe   : > { %s1287_s18 = smul.u32 280, %s1626_s13 }
   0xf   : > { %s1288_s30 = smul.u32 224, %s1626_s13 }
  0x10   : > { %s1417_s25 = scalar_lea.vmem %s1621_s0, %s1287_s18 }
  0x11   : > { %v1300_v5 = vld [vmem:[%s1417_s25 + $0x4] ss:$56 sps:$4 sm:$0xff]   ;;  %v1304_v7 = vld [vmem:[%s1417_s25] ss:$56 sps:$4 sm:$0xff]   ;;  %v1306_v9 = vld [vmem:[%s1417_s25 + $0x74] ss:$56 sps:$4 sm:$0xff]   ;;  %s1537_s6 = scalar_lea.vmem %s1624_s3, %s1288_s30 }
  0x12   : > { %v1302_v6 = vld [vmem:[%s1417_s25 + $0xc] ss:$56 sps:$4 sm:$0xff]   ;;  %470 = vmatprep.subr.bf16.mxu0 %v1300_v5  ;;  %v1305_v8 = vld [vmem:[%s1417_s25 + $0x8] ss:$56 sps:$4 sm:$0xff]   ;;  %v1308_v10 = vld [vmem:[%s1417_s25 + $0x7c] ss:$56 sps:$4 sm:$0xff]  }
  0x13   : > { %523 = vmatprep.subr.bf16.mxu1 %v1302_v6  ;;  %471 = vmatpush1.bf16.msra.mxu0 %v1304_v7  ;;  %v1310_v11 = vld [vmem:[%s1417_s25 + $0x70] ss:$56 sps:$4 sm:$0xff]   ;;  %v204_v13 = vld [vmem:[%s1417_s25 + $0xe0] sm:$0x33]  ;;  %v1319_v19 = vld [vmem:[%s1417_s25 + $0x14] ss:$56 sps:$4 sm:$0xff]  }
  0x14   : > { %524 = vmatpush1.bf16.msra.mxu1 %v1305_v8  ;;  %472 = vmatprep.subr.bf16.mxu0 %v1306_v9  ;;  %v1311_v12 = vld [vmem:[%s1417_s25 + $0x78] ss:$56 sps:$4 sm:$0xff]   ;;  %v205_v14 = vld [vmem:[%s1417_s25 + $0xe8] sm:$0x33]  ;;  %v1189_v15 = vcombine.high %v204_v13, %v204_v13  ;;  %v1188_v17 = vcombine.low %v204_v13, %v204_v13  ;;  %v1322_v22 = vld [vmem:[%s1417_s25 + $0x1c] ss:$56 sps:$4 sm:$0xff]  }
  0x15   : > { %525 = vmatprep.subr.bf16.mxu1 %v1308_v10  ;;  %v1191_v16 = vcombine.high %v205_v14, %v205_v14  ;;  %v1190_v18 = vcombine.low %v205_v14, %v205_v14  ;;  %v1317_v24 = vld [vmem:[%s1417_s25 + $0x10] ss:$56 sps:$4 sm:$0xff]   ;;  %v1325_v26 = vld [vmem:[%s1417_s25 + $0x84] ss:$56 sps:$4 sm:$0xff]   ;;  %v1323_v30 = vld [vmem:[%s1417_s25 + $0x80] ss:$56 sps:$4 sm:$0xff]  }
  0x16   : > { %v429_v20 = vsel %vm427_vm0, %v1188_v17, 0  ;;  %v1320_v25 = vld [vmem:[%s1417_s25 + $0x18] ss:$56 sps:$4 sm:$0xff]   ;;  %v1328_v27 = vld [vmem:[%s1417_s25 + $0x8c] ss:$56 sps:$4 sm:$0xff]  }
  0x17   : > { %473 = vmatpush1.bf16.msra.mxu0 %v1310_v11  ;;  %v435_v21 = vsel %vm427_vm0, %v1190_v18, 0  ;;  %v206_v28 = vld [vmem:[%s1417_s25 + $0xf0] sm:$0x33]  ;;  %v207_v29 = vld [vmem:[%s1417_s25 + $0xf8] sm:$0x33] }
  0x18   : > { %526 = vmatpush1.bf16.msra.mxu1 %v1311_v12  ;;  %1202 = vmatprep.subr.msk.bf16.mxu0 %vm427_vm0, %v1189_v15  ;;  %v1326_v31 = vld [vmem:[%s1417_s25 + $0x88] ss:$56 sps:$4 sm:$0xff]   ;;  %v1193_v32 = vcombine.high %v206_v28, %v206_v28  ;;  %v1195_v33 = vcombine.high %v207_v29, %v207_v29  ;;  %v1192_v34 = vcombine.low %v206_v28, %v206_v28  ;;  %v1336_v39 = vld [vmem:[%s1417_s25 + $0x24] ss:$56 sps:$4 sm:$0xff]   ;;  %v1342_v43 = vld [vmem:[%s1417_s25 + $0x94] ss:$56 sps:$4 sm:$0xff]  }
  0x19   : > { %1205 = vmatprep.subr.msk.bf16.mxu1 %vm427_vm0, %v1191_v16  ;;  %v1194_v35 = vcombine.low %v207_v29, %v207_v29  ;;  %v1339_v40 = vld [vmem:[%s1417_s25 + $0x2c] ss:$56 sps:$4 sm:$0xff]   ;;  %v1334_v41 = vld [vmem:[%s1417_s25 + $0x20] ss:$56 sps:$4 sm:$0xff]   ;;  %v1345_v44 = vld [vmem:[%s1417_s25 + $0x9c] ss:$56 sps:$4 sm:$0xff]  }
  0x1a   : > { %v441_v37 = vsel %vm427_vm0, %v1192_v34, 0  ;;  %v1337_v42 = vld [vmem:[%s1417_s25 + $0x28] ss:$56 sps:$4 sm:$0xff]   ;;  %v1343_v48 = vld [vmem:[%s1417_s25 + $0x98] ss:$56 sps:$4 sm:$0xff]  }
  0x1b   : > { %475 = vmatpush1.bf16.msra.mxu0 %v429_v20  ;;  %v447_v38 = vsel %vm427_vm0, %v1194_v35, 0  ;;  %v208_v45 = vld [vmem:[%s1417_s25 + $0x100] sm:$0x33]  ;;  %v209_v46 = vld [vmem:[%s1417_s25 + $0x108] sm:$0x33] }
  0x1c   : > { %528 = vmatpush1.bf16.msra.mxu1 %v435_v21  ;;  %576 = vmatprep.subr.bf16.mxu0 %v1319_v19  ;;  %v1340_v47 = vld [vmem:[%s1417_s25 + $0x90] ss:$56 sps:$4 sm:$0xff]   ;;  %v1197_v49 = vcombine.high %v208_v45, %v208_v45  ;;  %v1199_v50 = vcombine.high %v209_v46, %v209_v46  ;;  %v1196_v51 = vcombine.low %v208_v45, %v208_v45  ;;  %v1352_v55 = vld [vmem:[%s1417_s25 + $0x34] ss:$56 sps:$4 sm:$0xff]   ;;  %v1355_v57 = vld [vmem:[%s1417_s25 + $0xa4] ss:$56 sps:$4 sm:$0xff]  }
  0x1d   : > { %629 = vmatprep.subr.bf16.mxu1 %v1322_v22  ;;  %v1198_v52 = vcombine.low %v209_v46, %v209_v46  ;;  %v1350_v56 = vld [vmem:[%s1417_s25 + $0x30] ss:$56 sps:$4 sm:$0xff]   ;;  %v1353_v59 = vld [vmem:[%s1417_s25 + $0xa0] ss:$56 sps:$4 sm:$0xff]  }
  0x1e   : > { %1203 = vmatmul.mubr.msk.bf16.vlgmr.msra.gmra.mrb[0].mxu0 %vm420_vm1, %v1438_v23  ;;  %v453_v53 = vsel %vm427_vm0, %v1196_v51, 0  ;;  %v210_v58 = vld [vmem:[%s1417_s25 + $0x110] sm:$0x33] }
  0x1f   : > { %1206 = vmatmul.mubr.msk.bf16.vlgmr.msra.gmra.mrb[0].mxu1 %vm420_vm1, %v1438_v23  ;;  %577 = vmatpush1.bf16.msra.mxu0 %v1317_v24  ;;  %v459_v54 = vsel %vm427_vm0, %v1198_v52, 0  ;;  %v1201_v60 = vcombine.high %v210_v58, %v210_v58  ;;  %v1200_v61 = vcombine.low %v210_v58, %v210_v58 }
  0x20   : > { %630 = vmatpush1.bf16.msra.mxu1 %v1320_v25  ;;  %578 = vmatprep.subr.bf16.mxu0 %v1325_v26 }
  0x21   : > { %631 = vmatprep.subr.bf16.mxu1 %v1328_v27  ;;  %512 = vmatprep.mubr.bf16.mxu0 %v1366_v0  ;;  %v465_v62 = vsel %vm427_vm0, %v1200_v61, 0 }
  0x22   : > { %565 = vmatprep.mubr.bf16.mxu1 %v1366_v0 }
  0x23   : > { %579 = vmatpush1.bf16.msra.mxu0 %v1323_v30 }
  0x24   : > { %632 = vmatpush1.bf16.msra.mxu1 %v1326_v31  ;;  %1208 = vmatprep.subr.msk.bf16.mxu0 %vm427_vm0, %v1193_v32 }
  0x25   : > { %1211 = vmatprep.subr.msk.bf16.mxu1 %vm427_vm0, %v1195_v33 }
  0x26   : > { %1204 = vmatmul.mubr.msk.bf16.gmra.mrb[4].mxu0 %vm420_vm1, %v1457_v36 }
  0x27   : > { %1207 = vmatmul.mubr.msk.bf16.gmra.mrb[4].mxu1 %vm420_vm1, %v1457_v36  ;;  %581 = vmatpush1.bf16.msra.mxu0 %v441_v37 }
  0x28   : > { %634 = vmatpush1.bf16.msra.mxu1 %v447_v38  ;;  %608 = vmatprep.mubr.bf16.mxu0 %v1366_v0 }
  0x29   : > { %661 = vmatprep.mubr.bf16.mxu1 %v1366_v0  ;;  %682 = vmatprep.subr.bf16.mxu0 %v1336_v39 }
  0x2a   : > { %735 = vmatprep.subr.bf16.mxu1 %v1339_v40 }
  0x2e   : > { %1209 = vmatmul.mubr.msk.bf16.vlgmr.msra.gmra.mrb[8].mxu0 %vm420_vm1, %v1438_v23 }
  0x2f   : > { %1212 = vmatmul.mubr.msk.bf16.vlgmr.msra.gmra.mrb[8].mxu1 %vm420_vm1, %v1438_v23  ;;  %683 = vmatpush1.bf16.msra.mxu0 %v1334_v41 }
  0x30   : > { %736 = vmatpush1.bf16.msra.mxu1 %v1337_v42  ;;  %684 = vmatprep.subr.bf16.mxu0 %v1342_v43 }
  0x31   : > { %737 = vmatprep.subr.bf16.mxu1 %v1345_v44  ;;  %618 = vmatprep.mubr.bf16.mxu0 %v1366_v0 }
  0x32   : > { %671 = vmatprep.mubr.bf16.mxu1 %v1366_v0 }
  0x33   : > { %685 = vmatpush1.bf16.msra.mxu0 %v1340_v47 }
  0x34   : > { %738 = vmatpush1.bf16.msra.mxu1 %v1343_v48  ;;  %1214 = vmatprep.subr.msk.bf16.mxu0 %vm427_vm0, %v1197_v49 }
  0x35   : > { %1217 = vmatprep.subr.msk.bf16.mxu1 %vm427_vm0, %v1199_v50 }
  0x36   : > { %1210 = vmatmul.mubr.msk.bf16.gmra.mrb[12].mxu0 %vm420_vm1, %v1457_v36 }
  0x37   : > { %1213 = vmatmul.mubr.msk.bf16.gmra.mrb[12].mxu1 %vm420_vm1, %v1457_v36  ;;  %687 = vmatpush1.bf16.msra.mxu0 %v453_v53 }
  0x38   : > { %740 = vmatpush1.bf16.msra.mxu1 %v459_v54  ;;  %714 = vmatprep.mubr.bf16.mxu0 %v1366_v0 }
  0x39   : > { %767 = vmatprep.mubr.bf16.mxu1 %v1366_v0  ;;  %788 = vmatprep.subr.bf16.mxu0 %v1352_v55 }
  0x3a   : > { %1281 = vmatprep.subr.bf16.mxu1 %v1352_v55 }
  0x3e   : > { %1215 = vmatmul.mubr.msk.bf16.vlgmr.msra.gmra.mrb[16].mxu0 %vm420_vm1, %v1438_v23 }
  0x3f   : > { %1218 = vmatmul.mubr.msk.bf16.vlgmr.msra.gmra.mrb[16].mxu1 %vm420_vm1, %v1438_v23  ;;  %789 = vmatpush1.bf16.msra.mxu0 %v1350_v56 }
  0x40   : > { %1284 = vmatpush1.bf16.msra.mxu1 %v1350_v56  ;;  %790 = vmatprep.subr.bf16.mxu0 %v1355_v57 }
  0x41   : > { %1282 = vmatprep.subr.bf16.mxu1 %v1355_v57  ;;  %724 = vmatprep.mubr.bf16.mxu0 %v1366_v0 }
  0x42   : > { %777 = vmatprep.mubr.bf16.mxu1 %v1366_v0 }
  0x43   : > { %791 = vmatpush1.bf16.msra.mxu0 %v1353_v59 }
  0x44   : > { %1285 = vmatpush1.bf16.msra.mxu1 %v1353_v59  ;;  %1220 = vmatprep.subr.msk.bf16.mxu0 %vm427_vm0, %v1201_v60 }
  0x45   : > { %1283 = vmatprep.subr.msk.bf16.mxu1 %vm427_vm0, %v1201_v60 }
  0x46   : > { %1216 = vmatmul.mubr.msk.bf16.gmra.mrb[20].mxu0 %vm420_vm1, %v1457_v36 }
  0x47   : > { %1219 = vmatmul.mubr.msk.bf16.gmra.mrb[20].mxu1 %vm420_vm1, %v1457_v36  ;;  %793 = vmatpush1.bf16.msra.mxu0 %v465_v62 }
  0x48   : > { %1286 = vmatpush1.bf16.msra.mxu1 %v465_v62  ;;  %820 = vmatprep.mubr.bf16.mxu0 %v1366_v0 }
  0x49   : > { %830 = vmatprep.mubr.bf16.mxu1 %v1366_v0 }
  0x4e   : > { %1221 = vmatmul.mubr.msk.bf16.vlgmr.msra.gmra.mrb[24].mxu0 %vm420_vm1, %v1438_v23 }
  0x4f   : > { %1222 = vmatmul.mubr.msk.bf16.vlgmr.msra.gmra.mrb[24].mxu1 %vm420_vm1, %v1457_v36 }
  0x87   : > { %v1519_v63 = vpop.permute.xlu0 %217  ;;  %v1523_v2 = vpop.permute.xlu1 %227 }
  0x8b   : > { %v1521_v1 = vpop.permute.xlu0 %222  ;;  %v1539_v28 = vpop.permute.xlu1 %232 }
  0xf1   : > { %v504_v3 = vpop.f32.mrb[0].mxu0 }
  0xf2   : > { %v557_v4 = vpop.f32.mrb[0].mxu1  ;;  %v505_v5 = vadd.f32 %v504_v3, %v1519_v63  ;;  %v506_v0 = vpop.f32.mrb[1].mxu0 }
  0xf3   : > { %v558_v6 = vadd.f32 %v557_v4, %v1519_v63  ;;  %v559_v7 = vpop.f32.mrb[1].mxu1  ;;  %v507_v8 = vadd.f32 %v506_v0, %v1519_v63  ;;  %v508_v10 = vpop.f32.mrb[2].mxu0 }
  0xf4   : > { %v560_v9 = vadd.f32 %v559_v7, %v1519_v63  ;;  %v561_v11 = vpop.f32.mrb[2].mxu1  ;;  %v841_v12 = vmax.f32 %v505_v5, 0.0  ;;  %v509_v14 = vadd.f32 %v508_v10, %v1521_v1  ;;  %v510_v16 = vpop.f32.mrb[3].mxu0 }
  0xf5   : > { %v843_v13 = vmax.f32 %v558_v6, 0.0  ;;  %v562_v15 = vadd.f32 %v561_v11, %v1521_v1  ;;  %v563_v17 = vpop.f32.mrb[3].mxu1  ;;  %v842_v18 = vmax.f32 %v507_v8, 0.0  ;;  %v511_v20 = vadd.f32 %v510_v16, %v1521_v1 }
  0xf6   : > { %v844_v19 = vmax.f32 %v560_v9, 0.0  ;;  %v564_v21 = vadd.f32 %v563_v17, %v1521_v1  ;;  %v855_v22 = vmax.f32 %v509_v14, 0.0 }
  0xf7   : > { %v857_v23 = vmax.f32 %v562_v15, 0.0  ;;  %v1253_v24 = vpack.c.bf16 %v842_v18, %v841_v12  ;;  %v856_v26 = vmax.f32 %v511_v20, 0.0 }
  0xf8   : > { %v1254_v25 = vpack.c.bf16 %v844_v19, %v843_v13  ;;  %v858_v27 = vmax.f32 %v564_v21, 0.0 }
  0xf9   : > { %1065 = vst [vmem:[%s1537_s6] sm:$0xff] %v1253_v24  ;;  %v1260_v29 = vpack.c.bf16 %v856_v26, %v855_v22  ;;  %v514_v31 = vpop.f32.mrb[4].mxu0 }
  0xfa   : > { %1066 = vst [vmem:[%s1537_s6 + $0x8] sm:$0xff] %v1254_v25  ;;  %v1261_v30 = vpack.c.bf16 %v858_v27, %v857_v23  ;;  %v567_v32 = vpop.f32.mrb[4].mxu1  ;;  %v515_v33 = vadd.f32 %v514_v31, %v1523_v2  ;;  %v516_v35 = vpop.f32.mrb[5].mxu0 }
  0xfb   : > { %v568_v34 = vadd.f32 %v567_v32, %v1523_v2  ;;  %v569_v36 = vpop.f32.mrb[5].mxu1  ;;  %1075 = vst [vmem:[%s1537_s6 + $0x38] sm:$0xff] %v1260_v29  ;;  %v517_v37 = vadd.f32 %v516_v35, %v1523_v2  ;;  %v518_v39 = vpop.f32.mrb[6].mxu0 }
  0xfc   : > { %1076 = vst [vmem:[%s1537_s6 + $0x40] sm:$0xff] %v1261_v30  ;;  %v570_v38 = vadd.f32 %v569_v36, %v1523_v2  ;;  %v571_v40 = vpop.f32.mrb[6].mxu1  ;;  %v869_v41 = vmax.f32 %v515_v33, 0.0  ;;  %v519_v43 = vadd.f32 %v518_v39, %v1539_v28  ;;  %v520_v45 = vpop.f32.mrb[7].mxu0 }
  0xfd   : > { %v871_v42 = vmax.f32 %v568_v34, 0.0  ;;  %v572_v44 = vadd.f32 %v571_v40, %v1539_v28  ;;  %v573_v46 = vpop.f32.mrb[7].mxu1  ;;  %v870_v47 = vmax.f32 %v517_v37, 0.0  ;;  %v521_v49 = vadd.f32 %v520_v45, %v1539_v28 }
  0xfe   : > { %v872_v48 = vmax.f32 %v570_v38, 0.0  ;;  %v574_v50 = vadd.f32 %v573_v46, %v1539_v28  ;;  %v883_v51 = vmax.f32 %v519_v43, 0.0 }
  0xff   : > { %v885_v52 = vmax.f32 %v572_v44, 0.0  ;;  %v1267_v53 = vpack.c.bf16 %v870_v47, %v869_v41  ;;  %v884_v55 = vmax.f32 %v521_v49, 0.0 }
 0x100   : > { %v1268_v54 = vpack.c.bf16 %v872_v48, %v871_v42  ;;  %v886_v56 = vmax.f32 %v574_v50, 0.0 }
 0x101   : > { %1082 = vst [vmem:[%s1537_s6 + $0x70] sm:$0xff] %v1267_v53  ;;  %v1274_v57 = vpack.c.bf16 %v884_v55, %v883_v51  ;;  %v610_v59 = vpop.f32.mrb[8].mxu0 }
 0x102   : > { %1083 = vst [vmem:[%s1537_s6 + $0x78] sm:$0xff] %v1268_v54  ;;  %v1275_v58 = vpack.c.bf16 %v886_v56, %v885_v52  ;;  %v663_v60 = vpop.f32.mrb[8].mxu1  ;;  %v611_v61 = vadd.f32 %v610_v59, %v1519_v63  ;;  %v612_v3 = vpop.f32.mrb[9].mxu0 }
 0x103   : > { %v664_v62 = vadd.f32 %v663_v60, %v1519_v63  ;;  %v665_v4 = vpop.f32.mrb[9].mxu1  ;;  %1089 = vst [vmem:[%s1537_s6 + $0xa8] sm:$0xff] %v1274_v57  ;;  %v613_v5 = vadd.f32 %v612_v3, %v1519_v63  ;;  %v614_v0 = vpop.f32.mrb[10].mxu0 }
 0x104   : > { %1090 = vst [vmem:[%s1537_s6 + $0xb0] sm:$0xff] %v1275_v58  ;;  %v666_v6 = vadd.f32 %v665_v4, %v1519_v63  ;;  %v667_v7 = vpop.f32.mrb[10].mxu1  ;;  %v845_v8 = vmax.f32 %v611_v61, 0.0  ;;  %v615_v10 = vadd.f32 %v614_v0, %v1521_v1  ;;  %v616_v12 = vpop.f32.mrb[11].mxu0 }
 0x105   : > { %v847_v9 = vmax.f32 %v664_v62, 0.0  ;;  %v668_v11 = vadd.f32 %v667_v7, %v1521_v1  ;;  %v669_v13 = vpop.f32.mrb[11].mxu1  ;;  %v846_v14 = vmax.f32 %v613_v5, 0.0  ;;  %v617_v16 = vadd.f32 %v616_v12, %v1521_v1 }
 0x106   : > { %v848_v15 = vmax.f32 %v666_v6, 0.0  ;;  %v670_v17 = vadd.f32 %v669_v13, %v1521_v1  ;;  %v859_v18 = vmax.f32 %v615_v10, 0.0 }
 0x107   : > { %v861_v19 = vmax.f32 %v668_v11, 0.0  ;;  %v1255_v20 = vpack.c.bf16 %v846_v14, %v845_v8  ;;  %v860_v22 = vmax.f32 %v617_v16, 0.0 }
 0x108   : > { %v1256_v21 = vpack.c.bf16 %v848_v15, %v847_v9  ;;  %v862_v23 = vmax.f32 %v670_v17, 0.0 }
 0x109   : > { %1067 = vst [vmem:[%s1537_s6 + $0x10] sm:$0xff] %v1255_v20  ;;  %v1262_v24 = vpack.c.bf16 %v860_v22, %v859_v18  ;;  %v620_v26 = vpop.f32.mrb[12].mxu0 }
 0x10a   : > { %1068 = vst [vmem:[%s1537_s6 + $0x18] sm:$0xff] %v1256_v21  ;;  %v1263_v25 = vpack.c.bf16 %v862_v23, %v861_v19  ;;  %v673_v27 = vpop.f32.mrb[12].mxu1  ;;  %v621_v29 = vadd.f32 %v620_v26, %v1523_v2  ;;  %v622_v31 = vpop.f32.mrb[13].mxu0 }
 0x10b   : > { %v674_v30 = vadd.f32 %v673_v27, %v1523_v2  ;;  %v675_v32 = vpop.f32.mrb[13].mxu1  ;;  %1077 = vst [vmem:[%s1537_s6 + $0x48] sm:$0xff] %v1262_v24  ;;  %v623_v33 = vadd.f32 %v622_v31, %v1523_v2  ;;  %v624_v35 = vpop.f32.mrb[14].mxu0 }
 0x10c   : > { %1078 = vst [vmem:[%s1537_s6 + $0x50] sm:$0xff] %v1263_v25  ;;  %v676_v34 = vadd.f32 %v675_v32, %v1523_v2  ;;  %v677_v36 = vpop.f32.mrb[14].mxu1  ;;  %v873_v37 = vmax.f32 %v621_v29, 0.0  ;;  %v625_v39 = vadd.f32 %v624_v35, %v1539_v28  ;;  %v626_v41 = vpop.f32.mrb[15].mxu0 }
 0x10d   : > { %v875_v38 = vmax.f32 %v674_v30, 0.0  ;;  %v678_v40 = vadd.f32 %v677_v36, %v1539_v28  ;;  %v679_v42 = vpop.f32.mrb[15].mxu1  ;;  %v874_v43 = vmax.f32 %v623_v33, 0.0  ;;  %v627_v45 = vadd.f32 %v626_v41, %v1539_v28 }
 0x10e   : > { %v876_v44 = vmax.f32 %v676_v34, 0.0  ;;  %v680_v46 = vadd.f32 %v679_v42, %v1539_v28  ;;  %v887_v47 = vmax.f32 %v625_v39, 0.0 }
 0x10f   : > { %v889_v48 = vmax.f32 %v678_v40, 0.0  ;;  %v1269_v49 = vpack.c.bf16 %v874_v43, %v873_v37  ;;  %v888_v51 = vmax.f32 %v627_v45, 0.0 }
 0x110   : > { %v1270_v50 = vpack.c.bf16 %v876_v44, %v875_v38  ;;  %v890_v52 = vmax.f32 %v680_v46, 0.0 }
 0x111   : > { %1084 = vst [vmem:[%s1537_s6 + $0x80] sm:$0xff] %v1269_v49  ;;  %v1276_v53 = vpack.c.bf16 %v888_v51, %v887_v47  ;;  %v716_v55 = vpop.f32.mrb[16].mxu0 }
 0x112   : > { %1085 = vst [vmem:[%s1537_s6 + $0x88] sm:$0xff] %v1270_v50  ;;  %v1277_v54 = vpack.c.bf16 %v890_v52, %v889_v48  ;;  %v769_v56 = vpop.f32.mrb[16].mxu1  ;;  %v717_v57 = vadd.f32 %v716_v55, %v1519_v63  ;;  %v718_v59 = vpop.f32.mrb[17].mxu0 }
 0x113   : > { %v770_v58 = vadd.f32 %v769_v56, %v1519_v63  ;;  %v771_v60 = vpop.f32.mrb[17].mxu1  ;;  %1091 = vst [vmem:[%s1537_s6 + $0xb8] sm:$0xff] %v1276_v53  ;;  %v719_v61 = vadd.f32 %v718_v59, %v1519_v63  ;;  %v720_v3 = vpop.f32.mrb[18].mxu0 }
 0x114   : > { %1092 = vst [vmem:[%s1537_s6 + $0xc0] sm:$0xff] %v1277_v54  ;;  %v772_v62 = vadd.f32 %v771_v60, %v1519_v63  ;;  %v773_v4 = vpop.f32.mrb[18].mxu1  ;;  %v849_v5 = vmax.f32 %v717_v57, 0.0  ;;  %v721_v0 = vadd.f32 %v720_v3, %v1521_v1  ;;  %v722_v8 = vpop.f32.mrb[19].mxu0 }
 0x115   : > { %v851_v6 = vmax.f32 %v770_v58, 0.0  ;;  %v774_v7 = vadd.f32 %v773_v4, %v1521_v1  ;;  %v775_v9 = vpop.f32.mrb[19].mxu1  ;;  %v850_v10 = vmax.f32 %v719_v61, 0.0  ;;  %v723_v12 = vadd.f32 %v722_v8, %v1521_v1 }
 0x116   : > { %v852_v11 = vmax.f32 %v772_v62, 0.0  ;;  %v776_v13 = vadd.f32 %v775_v9, %v1521_v1  ;;  %v863_v14 = vmax.f32 %v721_v0, 0.0 }
 0x117   : > { %v865_v15 = vmax.f32 %v774_v7, 0.0  ;;  %v1257_v16 = vpack.c.bf16 %v850_v10, %v849_v5  ;;  %v864_v18 = vmax.f32 %v723_v12, 0.0 }
 0x118   : > { %v1258_v17 = vpack.c.bf16 %v852_v11, %v851_v6  ;;  %v866_v19 = vmax.f32 %v776_v13, 0.0 }
 0x119   : > { %1069 = vst [vmem:[%s1537_s6 + $0x20] sm:$0xff] %v1257_v16  ;;  %v1264_v20 = vpack.c.bf16 %v864_v18, %v863_v14  ;;  %v726_v22 = vpop.f32.mrb[20].mxu0 }
 0x11a   : > { %1070 = vst [vmem:[%s1537_s6 + $0x28] sm:$0xff] %v1258_v17  ;;  %v1265_v21 = vpack.c.bf16 %v866_v19, %v865_v15  ;;  %v779_v23 = vpop.f32.mrb[20].mxu1  ;;  %v727_v24 = vadd.f32 %v726_v22, %v1523_v2  ;;  %v728_v26 = vpop.f32.mrb[21].mxu0 }
 0x11b   : > { %v780_v25 = vadd.f32 %v779_v23, %v1523_v2  ;;  %v781_v27 = vpop.f32.mrb[21].mxu1  ;;  %1079 = vst [vmem:[%s1537_s6 + $0x58] sm:$0xff] %v1264_v20  ;;  %v729_v29 = vadd.f32 %v728_v26, %v1523_v2  ;;  %v730_v31 = vpop.f32.mrb[22].mxu0 }
 0x11c   : > { %1080 = vst [vmem:[%s1537_s6 + $0x60] sm:$0xff] %v1265_v21  ;;  %v782_v30 = vadd.f32 %v781_v27, %v1523_v2  ;;  %v783_v32 = vpop.f32.mrb[22].mxu1  ;;  %v877_v33 = vmax.f32 %v727_v24, 0.0  ;;  %v731_v35 = vadd.f32 %v730_v31, %v1539_v28  ;;  %v732_v37 = vpop.f32.mrb[23].mxu0 }
 0x11d   : > { %v879_v34 = vmax.f32 %v780_v25, 0.0  ;;  %v784_v36 = vadd.f32 %v783_v32, %v1539_v28  ;;  %v785_v38 = vpop.f32.mrb[23].mxu1  ;;  %v878_v39 = vmax.f32 %v729_v29, 0.0  ;;  %v733_v41 = vadd.f32 %v732_v37, %v1539_v28 }
 0x11e   : > { %v880_v40 = vmax.f32 %v782_v30, 0.0  ;;  %v786_v42 = vadd.f32 %v785_v38, %v1539_v28  ;;  %v891_v43 = vmax.f32 %v731_v35, 0.0 }
 0x11f   : > { %v893_v44 = vmax.f32 %v784_v36, 0.0  ;;  %v1271_v45 = vpack.c.bf16 %v878_v39, %v877_v33  ;;  %v892_v47 = vmax.f32 %v733_v41, 0.0 }
 0x120   : > { %v1272_v46 = vpack.c.bf16 %v880_v40, %v879_v34  ;;  %v894_v48 = vmax.f32 %v786_v42, 0.0 }
 0x121   : > { %1086 = vst [vmem:[%s1537_s6 + $0x90] sm:$0xff] %v1271_v45  ;;  %v1278_v49 = vpack.c.bf16 %v892_v47, %v891_v43  ;;  %v822_v51 = vpop.f32.mrb[24].mxu0 }
 0x122   : > { %1087 = vst [vmem:[%s1537_s6 + $0x98] sm:$0xff] %v1272_v46  ;;  %v1279_v50 = vpack.c.bf16 %v894_v48, %v893_v44  ;;  %v832_v52 = vpop.f32.mrb[24].mxu1  ;;  %v823_v53 = vadd.f32 %v822_v51, %v1519_v63  ;;  %v824_v55 = vpop.f32.mrb[25].mxu0 }
 0x123   : > { %v833_v54 = vadd.f32 %v832_v52, %v1523_v2  ;;  %v834_v56 = vpop.f32.mrb[25].mxu1  ;;  %1093 = vst [vmem:[%s1537_s6 + $0xc8] sm:$0xff] %v1278_v49  ;;  %v825_v57 = vadd.f32 %v824_v55, %v1519_v63  ;;  %v826_v59 = vpop.f32.mrb[26].mxu0 }
 0x124   : > { %1094 = vst [vmem:[%s1537_s6 + $0xd0] sm:$0xff] %v1279_v50  ;;  %v835_v58 = vadd.f32 %v834_v56, %v1523_v2  ;;  %v836_v60 = vpop.f32.mrb[26].mxu1  ;;  %v853_v61 = vmax.f32 %v823_v53, 0.0  ;;  %v827_v3 = vadd.f32 %v826_v59, %v1521_v1  ;;  %v828_v5 = vpop.f32.mrb[27].mxu0 }
 0x125   : > { %v881_v62 = vmax.f32 %v833_v54, 0.0  ;;  %v837_v4 = vadd.f32 %v836_v60, %v1539_v28  ;;  %v838_v6 = vpop.f32.mrb[27].mxu1  ;;  %v854_v0 = vmax.f32 %v825_v57, 0.0  ;;  %v829_v7 = vadd.f32 %v828_v5, %v1521_v1 }
 0x126   : > { %v882_v63 = vmax.f32 %v835_v58, 0.0  ;;  %v839_v2 = vadd.f32 %v838_v6, %v1539_v28  ;;  %v867_v8 = vmax.f32 %v827_v3, 0.0 }
 0x127   : > { %v895_v9 = vmax.f32 %v837_v4, 0.0  ;;  %v1259_v10 = vpack.c.bf16 %v854_v0, %v853_v61  ;;  %v868_v12 = vmax.f32 %v829_v7, 0.0 }
 0x128   : > { %v1273_v11 = vpack.c.bf16 %v882_v63, %v881_v62  ;;  %v896_v13 = vmax.f32 %v839_v2, 0.0 }
 0x129   : > { %1074 = vst.msk [vmem:[%s1537_s6 + $0x30] sm:$0xff] %vm1073_vm4, %v1259_v10  ;;  %v1266_v14 = vpack.c.bf16 %v868_v12, %v867_v8 }
 0x12a   : > { %1088 = vst.msk [vmem:[%s1537_s6 + $0xa0] sm:$0xff] %vm1073_vm4, %v1273_v11  ;;  %v1280_v15 = vpack.c.bf16 %v896_v13, %v895_v9 }
 0x12b   : > { %1081 = vst.msk [vmem:[%s1537_s6 + $0x68] sm:$0xff] %vm1073_vm4, %v1266_v14 }
 0x12c   : > { %1095 = vst.msk [vmem:[%s1537_s6 + $0xd8] sm:$0xff] %vm1073_vm4, %v1280_v15 }
 0x12d PF: > { %s13_s12 = sadd.s32 1, %s1364_s12  }
 0x12e   : > { %p10_p4 = scmp.ge.s32.totalorder %s13_s12, 4  }
 0x130   :  { %12 = sbr.rel (!%p10_p4) target bundleno = 1 (0x1), region = 62 }

// kernel: user_critic_forward.6
= control target key start
LH: loop header
LB: loop body
LE: loop exit
PB: predicated region body
PF: predicated region fallthrough
CT: control target
= control target key end

     0   :  { %s1313_s12 = smov 0   ;;  %s1467_s0 = inlined_call_operand.vmem [shape: bf16[2,288,441], index: 0, kind: input, shape index: {}]   ;;  %s1468_s1 = inlined_call_operand.vmem [shape: bf16[32,288], index: 1, kind: input, shape index: {}]   ;;  %s1469_s2 = inlined_call_operand.vmem [shape: f32[32,1], index: 2, kind: input, shape index: {}]   ;;  %s1470_s3 = inlined_call_operand.vmem [shape: bf16[2,32,441], index: 3, kind: output, shape index: {}]  }
   0x1 LB: > { %s1015_s13 = sadd.s32 4294967295, %s1290_s12   ;;  %p1019_p0 = scmp.ge.s32.totalorder %s1290_s12, 1  ;;  %s1290_s12 = sphi %s1313_s12, %s13_s12  }
   0x2   : > { %p137_p1 = scmp.lt.s32.totalorder %s1290_s12, 3 }
   0x4   : > { %p138_p2 = pnand %p1019_p0, %p137_p1 }
   0x5   : > { %p161_p3 = scmp.lt.s32.totalorder (!%p138_p2), %s1015_s13, 1  ;;  %v1266_v0 = vld [vmem:[%s1468_s1 + $0x4] ss:$12 sps:$4 sm:$0xff] (!%p138_p2)   ;;  %v1292_v1 = vmov (!%p138_p2), 0   ;;  %v253_v3 = vld [vmem:[%s1469_s2 + $0x8] sm:$0xff] (!%p138_p2)  ;;  %v255_v5 = vld [vmem:[%s1469_s2 + $0x18] sm:$0xff] (!%p138_p2) }
   0x6   : > { %141 = sbr.rel (%p138_p2) target bundleno = 328 (0x148), region = 32  ;;  %1166 = vset.pattern.permute.xlu0 (!%p138_p2), %v1292_v1  ;;  %1167 = vset.pattern.permute.xlu1 (!%p138_p2), %v1292_v1  ;;  %v252_v2 = vld [vmem:[%s1469_s2] sm:$0xff] (!%p138_p2)  ;;  %v254_v4 = vld [vmem:[%s1469_s2 + $0x10] sm:$0xff] (!%p138_p2)  ;;  %vm666_vm0 = vcmask (!%p138_p2), 261120   ;;  %vm950_vm1 = vcmask (!%p138_p2), 1043456   ;;  %vm951_vm2 = vcmask (!%p138_p2), 465924  }
   0x7   : > { %705 = vmatprep.mubr.bf16.mxu0 (!%p138_p2), %v1266_v0  ;;  %811 = vmatprep.mubr.bf16.mxu1 (!%p138_p2), %v1266_v0  ;;  %vm1444_vm3 = vmor (!%p138_p2), %vm951_vm2, %vm950_vm1 }
   0x8   : > { %258 = vperm.xlu0 (!%p138_p2), %1166, %v252_v2   ;;  %268 = vperm.xlu1 (!%p138_p2), %1167, %v254_v4  }
   0xc   : > { %263 = vperm.xlu0 (!%p138_p2), %1166, %v253_v3   ;;  %273 = vperm.xlu1 (!%p138_p2), %1167, %v255_v5  }
   0xd   : > { %s1474_s13 = smov (!%p161_p3, %s1015_s13), 1 }
   0xe   : > { %s1156_s18 = smul.u32 576, %s1474_s13  ;;  %s1115_s11 = sshll.u32 %s1474_s13, 6 }
   0xf   : > { %s1441_s13 = scalar_lea.vmem %s1470_s3, %s1115_s11 }
  0x10   : > { %s1341_s25 = scalar_lea.vmem %s1467_s0, %s1156_s18 }
  0x11   : > { %v1168_v6 = vld [vmem:[%s1341_s25 + $0x4] ss:$16 sps:$4 sm:$0xff]   ;;  %v1170_v7 = vld [vmem:[%s1341_s25 + $0xc] ss:$16 sps:$4 sm:$0xff]   ;;  %v1172_v8 = vld [vmem:[%s1341_s25] ss:$16 sps:$4 sm:$0xff]  }
  0x12   : > { %673 = vmatprep.subr.bf16.mxu0 %v1168_v6  ;;  %v1173_v9 = vld [vmem:[%s1341_s25 + $0x8] ss:$16 sps:$4 sm:$0xff]   ;;  %779 = vmatprep.subr.bf16.mxu1 %v1170_v7  ;;  %v1174_v10 = vld [vmem:[%s1341_s25 + $0x24] ss:$16 sps:$4 sm:$0xff]   ;;  %v1176_v11 = vld [vmem:[%s1341_s25 + $0x2c] ss:$16 sps:$4 sm:$0xff]  }
  0x13   : > { %674 = vmatpush1.bf16.msra.mxu0 %v1172_v8  ;;  %780 = vmatpush1.bf16.msra.mxu1 %v1173_v9  ;;  %v1178_v12 = vld [vmem:[%s1341_s25 + $0x20] ss:$16 sps:$4 sm:$0xff]   ;;  %v1179_v13 = vld [vmem:[%s1341_s25 + $0x28] ss:$16 sps:$4 sm:$0xff]   ;;  %v1180_v14 = vld [vmem:[%s1341_s25 + $0x44] ss:$16 sps:$4 sm:$0xff]  }
  0x14   : > { %675 = vmatprep.subr.bf16.mxu0 %v1174_v10  ;;  %781 = vmatprep.subr.bf16.mxu1 %v1176_v11  ;;  %v1182_v15 = vld [vmem:[%s1341_s25 + $0x4c] ss:$16 sps:$4 sm:$0xff]   ;;  %v1184_v16 = vld [vmem:[%s1341_s25 + $0x40] ss:$16 sps:$4 sm:$0xff]   ;;  %v1185_v17 = vld [vmem:[%s1341_s25 + $0x48] ss:$16 sps:$4 sm:$0xff]  }
  0x15   : > { %v1186_v18 = vld [vmem:[%s1341_s25 + $0x64] ss:$16 sps:$4 sm:$0xff]   ;;  %v1188_v19 = vld [vmem:[%s1341_s25 + $0x6c] ss:$16 sps:$4 sm:$0xff]   ;;  %v1190_v20 = vld [vmem:[%s1341_s25 + $0x60] ss:$16 sps:$4 sm:$0xff]  }
  0x16   : > { %v1191_v21 = vld [vmem:[%s1341_s25 + $0x68] ss:$16 sps:$4 sm:$0xff]   ;;  %v1192_v22 = vld [vmem:[%s1341_s25 + $0x84] ss:$16 sps:$4 sm:$0xff]   ;;  %v1194_v23 = vld [vmem:[%s1341_s25 + $0x8c] ss:$16 sps:$4 sm:$0xff]  }
  0x17   : > { %676 = vmatpush1.bf16.msra.mxu0 %v1178_v12  ;;  %782 = vmatpush1.bf16.msra.mxu1 %v1179_v13  ;;  %v1196_v24 = vld [vmem:[%s1341_s25 + $0x80] ss:$16 sps:$4 sm:$0xff]   ;;  %v1197_v25 = vld [vmem:[%s1341_s25 + $0x88] ss:$16 sps:$4 sm:$0xff]   ;;  %v1198_v26 = vld [vmem:[%s1341_s25 + $0xa4] ss:$16 sps:$4 sm:$0xff]  }
  0x18   : > { %677 = vmatprep.subr.bf16.mxu0 %v1180_v14  ;;  %783 = vmatprep.subr.bf16.mxu1 %v1182_v15  ;;  %v1200_v27 = vld [vmem:[%s1341_s25 + $0xac] ss:$16 sps:$4 sm:$0xff]   ;;  %v1202_v28 = vld [vmem:[%s1341_s25 + $0xa0] ss:$16 sps:$4 sm:$0xff]   ;;  %v1203_v29 = vld [vmem:[%s1341_s25 + $0xa8] ss:$16 sps:$4 sm:$0xff]  }
  0x19   : > { %v1204_v30 = vld [vmem:[%s1341_s25 + $0xc4] ss:$16 sps:$4 sm:$0xff]   ;;  %v1206_v31 = vld [vmem:[%s1341_s25 + $0xcc] ss:$16 sps:$4 sm:$0xff]   ;;  %v1208_v32 = vld [vmem:[%s1341_s25 + $0xc0] ss:$16 sps:$4 sm:$0xff]  }
  0x1a   : > { %v1209_v33 = vld [vmem:[%s1341_s25 + $0xc8] ss:$16 sps:$4 sm:$0xff]   ;;  %v1210_v34 = vld [vmem:[%s1341_s25 + $0xe4] ss:$16 sps:$4 sm:$0xff]   ;;  %v1212_v35 = vld [vmem:[%s1341_s25 + $0xec] ss:$16 sps:$4 sm:$0xff]  }
  0x1b   : > { %678 = vmatpush1.bf16.msra.mxu0 %v1184_v16  ;;  %784 = vmatpush1.bf16.msra.mxu1 %v1185_v17  ;;  %v1214_v36 = vld [vmem:[%s1341_s25 + $0xe0] ss:$16 sps:$4 sm:$0xff]   ;;  %v1215_v37 = vld [vmem:[%s1341_s25 + $0xe8] ss:$16 sps:$4 sm:$0xff]   ;;  %v1216_v38 = vld [vmem:[%s1341_s25 + $0x104] ss:$16 sps:$4 sm:$0xff]  }
  0x1c   : > { %679 = vmatprep.subr.bf16.mxu0 %v1186_v18  ;;  %785 = vmatprep.subr.bf16.mxu1 %v1188_v19  ;;  %v1218_v39 = vld [vmem:[%s1341_s25 + $0x10c] ss:$16 sps:$4 sm:$0xff]   ;;  %v1220_v40 = vld [vmem:[%s1341_s25 + $0x100] ss:$16 sps:$4 sm:$0xff]   ;;  %v1221_v41 = vld [vmem:[%s1341_s25 + $0x108] ss:$16 sps:$4 sm:$0xff]  }
  0x1d   : > { %v1222_v42 = vld [vmem:[%s1341_s25 + $0x124] ss:$16 sps:$4 sm:$0xff]   ;;  %v1224_v43 = vld [vmem:[%s1341_s25 + $0x12c] ss:$16 sps:$4 sm:$0xff]   ;;  %v1226_v44 = vld [vmem:[%s1341_s25 + $0x120] ss:$16 sps:$4 sm:$0xff]  }
  0x1e   : > { %v1227_v45 = vld [vmem:[%s1341_s25 + $0x128] ss:$16 sps:$4 sm:$0xff]   ;;  %v1228_v46 = vld [vmem:[%s1341_s25 + $0x144] ss:$16 sps:$4 sm:$0xff]   ;;  %v1230_v47 = vld [vmem:[%s1341_s25 + $0x14c] ss:$16 sps:$4 sm:$0xff]  }
  0x1f   : > { %680 = vmatpush1.bf16.msra.mxu0 %v1190_v20  ;;  %786 = vmatpush1.bf16.msra.mxu1 %v1191_v21  ;;  %v1232_v48 = vld [vmem:[%s1341_s25 + $0x140] ss:$16 sps:$4 sm:$0xff]   ;;  %v1233_v49 = vld [vmem:[%s1341_s25 + $0x148] ss:$16 sps:$4 sm:$0xff]   ;;  %v1234_v50 = vld [vmem:[%s1341_s25 + $0x164] ss:$16 sps:$4 sm:$0xff]  }
  0x20   : > { %681 = vmatprep.subr.bf16.mxu0 %v1192_v22  ;;  %787 = vmatprep.subr.bf16.mxu1 %v1194_v23  ;;  %v1236_v51 = vld [vmem:[%s1341_s25 + $0x16c] ss:$16 sps:$4 sm:$0xff]   ;;  %v1238_v52 = vld [vmem:[%s1341_s25 + $0x160] ss:$16 sps:$4 sm:$0xff]   ;;  %v1239_v53 = vld [vmem:[%s1341_s25 + $0x168] ss:$16 sps:$4 sm:$0xff]  }
  0x21   : > { %v1240_v54 = vld [vmem:[%s1341_s25 + $0x184] ss:$16 sps:$4 sm:$0xff]   ;;  %v1242_v55 = vld [vmem:[%s1341_s25 + $0x18c] ss:$16 sps:$4 sm:$0xff]   ;;  %v1244_v56 = vld [vmem:[%s1341_s25 + $0x180] ss:$16 sps:$4 sm:$0xff]  }
  0x22   : > { %v1245_v57 = vld [vmem:[%s1341_s25 + $0x188] ss:$16 sps:$4 sm:$0xff]   ;;  %v1246_v58 = vld [vmem:[%s1341_s25 + $0x1a4] ss:$16 sps:$4 sm:$0xff]   ;;  %v1248_v59 = vld [vmem:[%s1341_s25 + $0x1ac] ss:$16 sps:$4 sm:$0xff]  }
  0x23   : > { %682 = vmatpush1.bf16.msra.mxu0 %v1196_v24  ;;  %788 = vmatpush1.bf16.msra.mxu1 %v1197_v25  ;;  %v1250_v60 = vld [vmem:[%s1341_s25 + $0x1a0] ss:$16 sps:$4 sm:$0xff]   ;;  %v1251_v61 = vld [vmem:[%s1341_s25 + $0x1a8] ss:$16 sps:$4 sm:$0xff]   ;;  %v1252_v62 = vld [vmem:[%s1341_s25 + $0x1c4] ss:$16 sps:$4 sm:$0xff]  }
  0x24   : > { %683 = vmatprep.subr.bf16.mxu0 %v1198_v26  ;;  %789 = vmatprep.subr.bf16.mxu1 %v1200_v27  ;;  %v1254_v63 = vld [vmem:[%s1341_s25 + $0x1cc] ss:$16 sps:$4 sm:$0xff]   ;;  %v1256_v0 = vld [vmem:[%s1341_s25 + $0x1c0] ss:$16 sps:$4 sm:$0xff]   ;;  %v1257_v2 = vld [vmem:[%s1341_s25 + $0x1c8] ss:$16 sps:$4 sm:$0xff]  }
  0x25   : > { %v1258_v3 = vld [vmem:[%s1341_s25 + $0x1e4] ss:$16 sps:$4 sm:$0xff]   ;;  %v1260_v4 = vld [vmem:[%s1341_s25 + $0x1ec] ss:$16 sps:$4 sm:$0xff]   ;;  %v1262_v5 = vld [vmem:[%s1341_s25 + $0x1e0] ss:$16 sps:$4 sm:$0xff]  }
  0x26   : > { %v1263_v6 = vld [vmem:[%s1341_s25 + $0x1e8] ss:$16 sps:$4 sm:$0xff]   ;;  %v1269_v7 = vld [vmem:[%s1341_s25 + $0x204] ss:$16 sps:$4 sm:$0xff]   ;;  %v1272_v8 = vld [vmem:[%s1341_s25 + $0x20c] ss:$16 sps:$4 sm:$0xff]  }
  0x27   : > { %684 = vmatpush1.bf16.msra.mxu0 %v1202_v28  ;;  %790 = vmatpush1.bf16.msra.mxu1 %v1203_v29  ;;  %v1264_v9 = vld [vmem:[%s1468_s1] ss:$12 sps:$4 sm:$0xff]   ;;  %v1270_v11 = vld [vmem:[%s1341_s25 + $0x208] ss:$16 sps:$4 sm:$0xff]   ;;  %v1278_v13 = vld [vmem:[%s1341_s25 + $0x224] ss:$16 sps:$4 sm:$0xff]  }
  0x28   : > { %685 = vmatprep.subr.bf16.mxu0 %v1204_v30  ;;  %791 = vmatprep.subr.bf16.mxu1 %v1206_v31  ;;  %v1267_v10 = vld [vmem:[%s1341_s25 + $0x200] ss:$16 sps:$4 sm:$0xff]   ;;  %v1273_v12 = vld [vmem:[%s1468_s1 + $0x1c] ss:$12 sps:$4 sm:$0xff]   ;;  %v1275_v17 = vld [vmem:[%s1468_s1 + $0x18] ss:$12 sps:$4 sm:$0xff]  }
  0x29   : > { %v1281_v14 = vld [vmem:[%s1341_s25 + $0x22c] ss:$16 sps:$4 sm:$0xff]   ;;  %v1276_v15 = vld [vmem:[%s1341_s25 + $0x220] ss:$16 sps:$4 sm:$0xff]   ;;  %v1279_v16 = vld [vmem:[%s1341_s25 + $0x228] ss:$16 sps:$4 sm:$0xff]  }
  0x2a   : > { %v1282_v18 = vld [vmem:[%s1468_s1 + $0x8] ss:$12 sps:$4 sm:$0xff]   ;;  %v1283_v19 = vld [vmem:[%s1468_s1 + $0x20] ss:$12 sps:$4 sm:$0xff]  }
  0x2b   : > { %686 = vmatpush1.bf16.msra.mxu0 %v1208_v32  ;;  %792 = vmatpush1.bf16.msra.mxu1 %v1209_v33 }
  0x2c   : > { %687 = vmatprep.subr.bf16.mxu0 %v1210_v34  ;;  %793 = vmatprep.subr.bf16.mxu1 %v1212_v35 }
  0x2f   : > { %688 = vmatpush1.bf16.msra.mxu0 %v1214_v36  ;;  %794 = vmatpush1.bf16.msra.mxu1 %v1215_v37 }
  0x30   : > { %689 = vmatprep.subr.bf16.mxu0 %v1216_v38  ;;  %795 = vmatprep.subr.bf16.mxu1 %v1218_v39 }
  0x33   : > { %690 = vmatpush1.bf16.msra.mxu0 %v1220_v40  ;;  %796 = vmatpush1.bf16.msra.mxu1 %v1221_v41 }
  0x34   : > { %691 = vmatprep.subr.bf16.mxu0 %v1222_v42  ;;  %797 = vmatprep.subr.bf16.mxu1 %v1224_v43 }
  0x37   : > { %692 = vmatpush1.bf16.msra.mxu0 %v1226_v44  ;;  %798 = vmatpush1.bf16.msra.mxu1 %v1227_v45 }
  0x38   : > { %693 = vmatprep.subr.bf16.mxu0 %v1228_v46  ;;  %799 = vmatprep.subr.bf16.mxu1 %v1230_v47 }
  0x3b   : > { %694 = vmatpush1.bf16.msra.mxu0 %v1232_v48  ;;  %800 = vmatpush1.bf16.msra.mxu1 %v1233_v49 }
  0x3c   : > { %695 = vmatprep.subr.bf16.mxu0 %v1234_v50  ;;  %801 = vmatprep.subr.bf16.mxu1 %v1236_v51 }
  0x3f   : > { %696 = vmatpush1.bf16.msra.mxu0 %v1238_v52  ;;  %802 = vmatpush1.bf16.msra.mxu1 %v1239_v53 }
  0x40   : > { %697 = vmatprep.subr.bf16.mxu0 %v1240_v54  ;;  %803 = vmatprep.subr.bf16.mxu1 %v1242_v55 }
  0x43   : > { %698 = vmatpush1.bf16.msra.mxu0 %v1244_v56  ;;  %804 = vmatpush1.bf16.msra.mxu1 %v1245_v57 }
  0x44   : > { %699 = vmatprep.subr.bf16.mxu0 %v1246_v58  ;;  %805 = vmatprep.subr.bf16.mxu1 %v1248_v59 }
  0x47   : > { %700 = vmatpush1.bf16.msra.mxu0 %v1250_v60  ;;  %806 = vmatpush1.bf16.msra.mxu1 %v1251_v61 }
  0x48   : > { %701 = vmatprep.subr.bf16.mxu0 %v1252_v62  ;;  %807 = vmatprep.subr.bf16.mxu1 %v1254_v63 }
  0x4b   : > { %702 = vmatpush1.bf16.msra.mxu0 %v1256_v0  ;;  %808 = vmatpush1.bf16.msra.mxu1 %v1257_v2 }
  0x4c   : > { %703 = vmatprep.subr.bf16.mxu0 %v1258_v3  ;;  %809 = vmatprep.subr.bf16.mxu1 %v1260_v4 }
  0x4f   : > { %704 = vmatpush1.bf16.msra.mxu0 %v1262_v5  ;;  %810 = vmatpush1.bf16.msra.mxu1 %v1263_v6 }
  0x50   : > { %726 = vmatprep.subr.bf16.mxu0 %v1269_v7  ;;  %832 = vmatprep.subr.bf16.mxu1 %v1272_v8 }
  0x52   : > { %706 = vmatmul.mubr.bf16.vlgmr.msra.gmra.mrb[0].mxu0 %v1264_v9  ;;  %812 = vmatmul.mubr.bf16.vlgmr.msra.gmra.mrb[0].mxu1 %v1264_v9 }
  0x53   : > { %727 = vmatpush1.bf16.msra.mxu0 %v1267_v10  ;;  %833 = vmatpush1.bf16.msra.mxu1 %v1270_v11 }
  0x54   : > { %715 = vmatprep.mubr.bf16.mxu0 %v1273_v12  ;;  %821 = vmatprep.mubr.bf16.mxu1 %v1273_v12 }
  0x55   : > { %728 = vmatprep.subr.bf16.mxu0 %v1278_v13  ;;  %834 = vmatprep.subr.bf16.mxu1 %v1281_v14 }
  0x57   : > { %729 = vmatpush1.bf16.msra.mxu0 %v1276_v15  ;;  %835 = vmatpush1.bf16.msra.mxu1 %v1279_v16 }
  0x5a   : > { %716 = vmatmul.mubr.bf16.gmra.mrb[4].mxu0 %v1275_v17  ;;  %822 = vmatmul.mubr.bf16.gmra.mrb[4].mxu1 %v1275_v17 }
  0x5b   : > { %758 = vmatprep.mubr.bf16.mxu0 %v1292_v1  ;;  %864 = vmatprep.mubr.bf16.mxu1 %v1292_v1 }
  0x62   : > { %1101 = vmatmul.mubr.msk.bf16.vlgmr.msra.gmra.mrb[0].mxu0 %vm666_vm0, %v1282_v18  ;;  %1103 = vmatmul.mubr.msk.bf16.vlgmr.msra.gmra.mrb[0].mxu1 %vm666_vm0, %v1282_v18 }
  0x63   : > { %768 = vmatprep.mubr.bf16.mxu0 %v1292_v1  ;;  %874 = vmatprep.mubr.bf16.mxu1 %v1292_v1 }
  0x6a   : > { %1102 = vmatmul.mubr.msk.bf16.gmra.mrb[4].mxu0 %vm666_vm0, %v1283_v19  ;;  %1104 = vmatmul.mubr.msk.bf16.gmra.mrb[4].mxu1 %vm666_vm0, %v1283_v19 }
  0x87   : > { %v259_v20 = vpop.permute.xlu0 %258  ;;  %v269_v22 = vpop.permute.xlu1 %268 }
  0x8b   : > { %v264_v21 = vpop.permute.xlu0 %263  ;;  %v274_v49 = vpop.permute.xlu1 %273 }
 0x135   : > { %v760_v23 = vpop.f32.mrb[0].mxu0  ;;  %v866_v24 = vpop.f32.mrb[0].mxu1 }
 0x136   : > { %v1124_v25 = vadd.f32 %v760_v23, %v259_v20  ;;  %v1132_v26 = vadd.f32 %v866_v24, %v259_v20  ;;  %v762_v27 = vpop.f32.mrb[1].mxu0  ;;  %v868_v28 = vpop.f32.mrb[1].mxu1 }
 0x137   : > { %v1125_v29 = vadd.f32 %v762_v27, %v259_v20  ;;  %v1133_v30 = vadd.f32 %v868_v28, %v259_v20  ;;  %v764_v1 = vpop.f32.mrb[2].mxu0  ;;  %v870_v31 = vpop.f32.mrb[2].mxu1 }
 0x138   : > { %v885_v32 = vmax.f32 %v1124_v25, 0.0  ;;  %v887_v33 = vmax.f32 %v1132_v26, 0.0  ;;  %v1126_v34 = vadd.f32 %v764_v1, %v264_v21  ;;  %v1134_v35 = vadd.f32 %v870_v31, %v264_v21  ;;  %v766_v36 = vpop.f32.mrb[3].mxu0  ;;  %v872_v37 = vpop.f32.mrb[3].mxu1 }
 0x139   : > { %v886_v38 = vmax.f32 %v1125_v29, 0.0  ;;  %v888_v39 = vmax.f32 %v1133_v30, 0.0  ;;  %v1127_v40 = vadd.f32 %v766_v36, %v264_v21  ;;  %v1135_v41 = vadd.f32 %v872_v37, %v264_v21 }
 0x13a   : > { %v889_v43 = vmax.f32 %v1126_v34, 0.0  ;;  %v891_v44 = vmax.f32 %v1134_v35, 0.0 }
 0x13b   : > { %v1116_v45 = vpack.c.bf16 %v886_v38, %v885_v32  ;;  %v1117_v46 = vpack.c.bf16 %v888_v39, %v887_v33  ;;  %v890_v47 = vmax.f32 %v1127_v40, 0.0  ;;  %v892_v48 = vmax.f32 %v1135_v41, 0.0 }
 0x13d   : > { %949 = vst [vmem:[%s1441_s13] sm:$0xff] %v1116_v45  ;;  %953 = vst.msk [vmem:[%s1441_s13 + $0x8] sm:$0xff] %vm1444_vm3, %v1117_v46  ;;  %v1118_v50 = vpack.c.bf16 %v890_v47, %v889_v43  ;;  %v1119_v51 = vpack.c.bf16 %v892_v48, %v891_v44  ;;  %v770_v52 = vpop.f32.mrb[4].mxu0  ;;  %v876_v53 = vpop.f32.mrb[4].mxu1 }
 0x13e   : > { %v1128_v54 = vadd.f32 %v770_v52, %v269_v22  ;;  %v1136_v55 = vadd.f32 %v876_v53, %v269_v22  ;;  %v772_v56 = vpop.f32.mrb[5].mxu0  ;;  %v878_v57 = vpop.f32.mrb[5].mxu1 }
 0x13f   : > { %954 = vst [vmem:[%s1441_s13 + $0x10] sm:$0xff] %v1118_v50  ;;  %955 = vst.msk [vmem:[%s1441_s13 + $0x18] sm:$0xff] %vm1444_vm3, %v1119_v51  ;;  %v1129_v58 = vadd.f32 %v772_v56, %v269_v22  ;;  %v1137_v59 = vadd.f32 %v878_v57, %v269_v22  ;;  %v774_v60 = vpop.f32.mrb[6].mxu0  ;;  %v880_v61 = vpop.f32.mrb[6].mxu1 }
 0x140   : > { %v893_v62 = vmax.f32 %v1128_v54, 0.0  ;;  %v895_v63 = vmax.f32 %v1136_v55, 0.0  ;;  %v1130_v0 = vadd.f32 %v774_v60, %v274_v49  ;;  %v1138_v2 = vadd.f32 %v880_v61, %v274_v49  ;;  %v776_v3 = vpop.f32.mrb[7].mxu0  ;;  %v882_v4 = vpop.f32.mrb[7].mxu1 }
 0x141   : > { %v894_v5 = vmax.f32 %v1129_v58, 0.0  ;;  %v896_v6 = vmax.f32 %v1137_v59, 0.0  ;;  %v1131_v7 = vadd.f32 %v776_v3, %v274_v49  ;;  %v1139_v8 = vadd.f32 %v882_v4, %v274_v49 }
 0x142   : > { %v897_v9 = vmax.f32 %v1130_v0, 0.0  ;;  %v899_v10 = vmax.f32 %v1138_v2, 0.0 }
 0x143   : > { %v1120_v11 = vpack.c.bf16 %v894_v5, %v893_v62  ;;  %v1121_v12 = vpack.c.bf16 %v896_v6, %v895_v63  ;;  %v898_v13 = vmax.f32 %v1131_v7, 0.0  ;;  %v900_v14 = vmax.f32 %v1139_v8, 0.0 }
 0x145   : > { %956 = vst [vmem:[%s1441_s13 + $0x20] sm:$0xff] %v1120_v11  ;;  %957 = vst.msk [vmem:[%s1441_s13 + $0x28] sm:$0xff] %vm1444_vm3, %v1121_v12  ;;  %v1122_v15 = vpack.c.bf16 %v898_v13, %v897_v9  ;;  %v1123_v16 = vpack.c.bf16 %v900_v14, %v899_v10 }
 0x147   : > { %958 = vst [vmem:[%s1441_s13 + $0x30] sm:$0xff] %v1122_v15  ;;  %959 = vst.msk [vmem:[%s1441_s13 + $0x38] sm:$0xff] %vm1444_vm3, %v1123_v16 }
 0x148 PF: > { %s13_s12 = sadd.s32 1, %s1290_s12  }
 0x149   : > { %p10_p4 = scmp.ge.s32.totalorder %s13_s12, 4  }
 0x14b   :  { %12 = sbr.rel (!%p10_p4) target bundleno = 1 (0x1), region = 62 }

// kernel: user_critic_forward.7
= control target key start
LH: loop header
LB: loop body
LE: loop exit
PB: predicated region body
PF: predicated region fallthrough
CT: control target
= control target key end

     0   :  { %s715_s12 = smov 0   ;;  %s792_s0 = inlined_call_operand.vmem [shape: bf16[2,288,121], index: 0, kind: input, shape index: {}]   ;;  %s793_s1 = inlined_call_operand.vmem [shape: bf16[32,288], index: 1, kind: input, shape index: {}]   ;;  %s794_s2 = inlined_call_operand.vmem [shape: f32[32,1], index: 2, kind: input, shape index: {}]   ;;  %s795_s3 = inlined_call_operand.vmem [shape: bf16[2,32,121], index: 3, kind: output, shape index: {}]  }
   0x1 LB: > { %s563_s13 = sadd.s32 4294967295, %s692_s12   ;;  %p567_p0 = scmp.ge.s32.totalorder %s692_s12, 1  ;;  %s692_s12 = sphi %s715_s12, %s13_s12  }
   0x2   : > { %p137_p1 = scmp.lt.s32.totalorder %s692_s12, 3 }
   0x4   : > { %p138_p2 = pnand %p567_p0, %p137_p1 }
   0x5   : > { %p161_p3 = scmp.lt.s32.totalorder (!%p138_p2), %s563_s13, 1  ;;  %vm378_vm0 = vcmask (!%p138_p2), 261120   ;;  %v679_v0 = vld [vmem:[%s793_s1 + $0x4] ss:$12 sps:$4 sm:$0xff] (!%p138_p2)   ;;  %v681_v1 = vld [vmem:[%s793_s1 + $0x8] ss:$12 sps:$4 sm:$0xff] (!%p138_p2)  }
   0x6   : > { %141 = sbr.rel (%p138_p2) target bundleno = 284 (0x11c), region = 32  ;;  %417 = vmatprep.mubr.bf16.mxu0 (!%p138_p2), %v679_v0  ;;  %644 = vmatprep.mubr.msk.bf16.mxu1 (!%p138_p2), %vm378_vm0, %v681_v1  ;;  %v694_v2 = vmov (!%p138_p2), 0   ;;  %v216_v3 = vld [vmem:[%s794_s2] sm:$0xff] (!%p138_p2)  ;;  %v218_v4 = vld [vmem:[%s794_s2 + $0x10] sm:$0xff] (!%p138_p2)  ;;  %v217_v5 = vld [vmem:[%s794_s2 + $0x8] sm:$0xff] (!%p138_p2)  ;;  %vm503_vm1 = vcmask (!%p138_p2), 986112  }
   0x7   : > { %658 = vset.pattern.permute.xlu0 (!%p138_p2), %v694_v2  ;;  %659 = vset.pattern.permute.xlu1 (!%p138_p2), %v694_v2  ;;  %v219_v6 = vld [vmem:[%s794_s2 + $0x18] sm:$0xff] (!%p138_p2)  ;;  %v682_v22 = vld [vmem:[%s793_s1 + $0x20] ss:$12 sps:$4 sm:$0xff] (!%p138_p2)  }
   0x8   : > { %222 = vperm.xlu0 (!%p138_p2), %658, %v216_v3   ;;  %232 = vperm.xlu1 (!%p138_p2), %659, %v218_v4   ;;  %v677_v26 = vld [vmem:[%s793_s1] ss:$12 sps:$4 sm:$0xff] (!%p138_p2)   ;;  %v683_v27 = vld [vmem:[%s793_s1 + $0x1c] ss:$12 sps:$4 sm:$0xff] (!%p138_p2)   ;;  %v685_v28 = vld [vmem:[%s793_s1 + $0x18] ss:$12 sps:$4 sm:$0xff] (!%p138_p2)  }
   0xc   : > { %227 = vperm.xlu0 (!%p138_p2), %658, %v217_v5   ;;  %237 = vperm.xlu1 (!%p138_p2), %659, %v219_v6  }
   0xd   : > { %s797_s13 = smov (!%p161_p3, %s563_s13), 1 }
   0xe   : > { %s648_s18 = smul.u32 144, %s797_s13  ;;  %s603_s11 = sshll.u32 %s797_s13, 4 }
   0xf   : > { %s170_s16 = scalar_lea.vmem %s795_s3, %s603_s11 }
  0x10   : > { %s742_s25 = scalar_lea.vmem %s792_s0, %s648_s18 }
  0x11   : > { %v660_v7 = vld [vmem:[%s742_s25 + $0x40] sm:$0xff]   ;;  %v662_v9 = vld [vmem:[%s742_s25 + $0x48] sm:$0xff]   ;;  %v664_v11 = vld [vmem:[%s742_s25 + $0x50] sm:$0xff]  }
  0x12   : > { %v661_v8 = vld [vmem:[%s742_s25] sm:$0xff]   ;;  %608 = vmatprep.subr.bf16.mxu0 %v660_v7  ;;  %v663_v10 = vld [vmem:[%s742_s25 + $0x8] sm:$0xff]   ;;  %v665_v12 = vld [vmem:[%s742_s25 + $0x10] sm:$0xff]  }
  0x13   : > { %609 = vmatpush3.bf16.msra.mxu0 %v661_v8  ;;  %v666_v13 = vld [vmem:[%s742_s25 + $0x58] sm:$0xff]   ;;  %v668_v15 = vld [vmem:[%s742_s25 + $0x60] sm:$0xff]   ;;  %v670_v18 = vld [vmem:[%s742_s25 + $0x68] sm:$0xff]  }
  0x14   : > { %610 = vmatprep.subr.bf16.mxu0 %v662_v9  ;;  %v667_v14 = vld [vmem:[%s742_s25 + $0x18] sm:$0xff]   ;;  %v669_v16 = vld [vmem:[%s742_s25 + $0x20] sm:$0xff]   ;;  %v680_v19 = vld [vmem:[%s742_s25 + $0x88] sm:$0xff]  }
  0x15   : > { %v675_v17 = vld [vmem:[%s742_s25 + $0x80] sm:$0xff]   ;;  %v671_v20 = vld [vmem:[%s742_s25 + $0x28] sm:$0xff]   ;;  %v672_v21 = vld [vmem:[%s742_s25 + $0x70] sm:$0xff]  }
  0x16   : > { %640 = vmatprep.subr.bf16.mxu1 %v675_v17  ;;  %v673_v23 = vld [vmem:[%s742_s25 + $0x30] sm:$0xff]   ;;  %v674_v24 = vld [vmem:[%s742_s25 + $0x78] sm:$0xff]  }
  0x17   : > { %611 = vmatpush3.bf16.msra.mxu0 %v663_v10  ;;  %641 = vmatpush3.bf16.msra.mxu1 %v675_v17  ;;  %v676_v25 = vld [vmem:[%s742_s25 + $0x38] sm:$0xff]  }
  0x18   : > { %612 = vmatprep.subr.bf16.mxu0 %v664_v11  ;;  %642 = vmatprep.subr.bf16.mxu1 %v680_v19 }
  0x1b   : > { %613 = vmatpush3.bf16.msra.mxu0 %v665_v12  ;;  %643 = vmatpush3.bf16.msra.mxu1 %v680_v19 }
  0x1c   : > { %614 = vmatprep.subr.bf16.mxu0 %v666_v13 }
  0x1e   : > { %645 = vmatmul.mubr.msk.bf16.vlgmr.msra.gmra.mrb[0].mxu1 %vm378_vm0, %v682_v22 }
  0x1f   : > { %615 = vmatpush3.bf16.msra.mxu0 %v667_v14 }
  0x20   : > { %616 = vmatprep.subr.bf16.mxu0 %v668_v15 }
  0x23   : > { %617 = vmatpush3.bf16.msra.mxu0 %v669_v16 }
  0x24   : > { %618 = vmatprep.subr.bf16.mxu0 %v670_v18 }
  0x27   : > { %619 = vmatpush3.bf16.msra.mxu0 %v671_v20 }
  0x28   : > { %620 = vmatprep.subr.bf16.mxu0 %v672_v21 }
  0x2b   : > { %621 = vmatpush3.bf16.msra.mxu0 %v673_v23 }
  0x2c   : > { %622 = vmatprep.subr.bf16.mxu0 %v674_v24 }
  0x2f   : > { %623 = vmatpush3.bf16.msra.mxu0 %v676_v25 }
  0x32   : > { %418 = vmatmul.mubr.bf16.vlgmr.msra.gmra.mrb[0].mxu0 %v677_v26 }
  0x33   : > { %425 = vmatprep.mubr.bf16.mxu0 %v683_v27 }
  0x3a   : > { %426 = vmatmul.mubr.bf16.gmra.mrb[4].mxu0 %v685_v28 }
  0x87   : > { %v223_v33 = vpop.permute.xlu0 %222  ;;  %v233_v44 = vpop.permute.xlu1 %232 }
  0x8b   : > { %v228_v39 = vpop.permute.xlu0 %227  ;;  %v238_v57 = vpop.permute.xlu1 %237 }
  0xf1   : > { %v646_v29 = vpop.f32.mrb[0].mxu1 }
  0xf2   : > { %v468_v30 = vpop.f32.mrb[1].mxu1 }
  0xf3   : > { %v647_v31 = vpop.f32.mrb[2].mxu1 }
  0xf4   : > { %v471_v32 = vpop.f32.mrb[3].mxu1 }
 0x105   : > { %v624_v34 = vpop.f32.mrb[0].mxu0 }
 0x106   : > { %v625_v35 = vpop.f32.mrb[1].mxu0 }
 0x107   : > { %v626_v36 = vadd.f32 %v625_v35, %v624_v34  ;;  %v627_v37 = vpop.f32.mrb[2].mxu0 }
 0x108   : > { %v628_v38 = vpop.f32.mrb[3].mxu0 }
 0x109   : > { %v629_v40 = vadd.f32 %v628_v38, %v627_v37  ;;  %v420_v41 = vadd.f32 %v626_v36, %v223_v33 }
 0x10b   : > { %v423_v42 = vadd.f32 %v629_v40, %v228_v39  ;;  %v469_v43 = vadd.f32 %v468_v30, %v420_v41 }
 0x10d   : > { %v483_v45 = vmax.f32 %v469_v43, 0.0  ;;  %v472_v46 = vadd.f32 %v471_v32, %v423_v42  ;;  %v630_v47 = vpop.f32.mrb[4].mxu0 }
 0x10e   : > { %v631_v48 = vpop.f32.mrb[5].mxu0 }
 0x10f   : > { %v604_v49 = vpack.c.bf16 %v483_v45, %v483_v45  ;;  %v484_v50 = vmax.f32 %v472_v46, 0.0  ;;  %v632_v51 = vadd.f32 %v631_v48, %v630_v47  ;;  %v633_v52 = vpop.f32.mrb[6].mxu0 }
 0x110   : > { %v634_v53 = vpop.f32.mrb[7].mxu0 }
 0x111   : > { %504 = vst.msk [vmem:[%s170_s16] sm:$0xf] %vm503_vm1, %v604_v49  ;;  %v605_v54 = vpack.c.bf16 %v484_v50, %v484_v50  ;;  %v428_v55 = vadd.f32 %v632_v51, %v233_v44  ;;  %v635_v56 = vadd.f32 %v634_v53, %v633_v52 }
 0x113   : > { %505 = vst.msk [vmem:[%s170_s16 + $0x4] sm:$0xf] %vm503_vm1, %v605_v54  ;;  %v477_v58 = vadd.f32 %v646_v29, %v428_v55  ;;  %v431_v59 = vadd.f32 %v635_v56, %v238_v57 }
 0x115   : > { %v485_v60 = vmax.f32 %v477_v58, 0.0  ;;  %v480_v61 = vadd.f32 %v647_v31, %v431_v59 }
 0x117   : > { %v606_v62 = vpack.c.bf16 %v485_v60, %v485_v60  ;;  %v486_v63 = vmax.f32 %v480_v61, 0.0 }
 0x119   : > { %506 = vst.msk [vmem:[%s170_s16 + $0x8] sm:$0xf] %vm503_vm1, %v606_v62  ;;  %v607_v0 = vpack.c.bf16 %v486_v63, %v486_v63 }
 0x11b   : > { %507 = vst.msk [vmem:[%s170_s16 + $0xc] sm:$0xf] %vm503_vm1, %v607_v0 }
 0x11c PF: > { %s13_s12 = sadd.s32 1, %s692_s12  }
 0x11d   : > { %p10_p4 = scmp.ge.s32.totalorder %s13_s12, 4  }
 0x11f   :  { %12 = sbr.rel (!%p10_p4) target bundleno = 1 (0x1), region = 62 }

// kernel: user_critic_forward.8
= control target key start
LH: loop header
LB: loop body
LE: loop exit
PB: predicated region body
PF: predicated region fallthrough
CT: control target
= control target key end

     0   :  { %s715_s12 = smov 0   ;;  %s792_s0 = inlined_call_operand.vmem [shape: bf16[2,288,36], index: 0, kind: input, shape index: {}]   ;;  %s793_s1 = inlined_call_operand.vmem [shape: bf16[32,288], index: 1, kind: input, shape index: {}]   ;;  %s794_s2 = inlined_call_operand.vmem [shape: f32[32,1], index: 2, kind: input, shape index: {}]   ;;  %s795_s3 = inlined_call_operand.vmem [shape: bf16[2,32,36], index: 3, kind: output, shape index: {}]  }
   0x1 LB: > { %s563_s13 = sadd.s32 4294967295, %s692_s12   ;;  %p567_p0 = scmp.ge.s32.totalorder %s692_s12, 1  ;;  %s692_s12 = sphi %s715_s12, %s13_s12  }
   0x2   : > { %p137_p1 = scmp.lt.s32.totalorder %s692_s12, 3 }
   0x4   : > { %p138_p2 = pnand %p567_p0, %p137_p1 }
   0x5   : > { %p161_p3 = scmp.lt.s32.totalorder (!%p138_p2), %s563_s13, 1  ;;  %vm378_vm0 = vcmask (!%p138_p2), 261120   ;;  %v679_v0 = vld [vmem:[%s793_s1 + $0x4] ss:$12 sps:$4 sm:$0xff] (!%p138_p2)   ;;  %v681_v1 = vld [vmem:[%s793_s1 + $0x8] ss:$12 sps:$4 sm:$0xff] (!%p138_p2)  }
   0x6   : > { %141 = sbr.rel (%p138_p2) target bundleno = 284 (0x11c), region = 32  ;;  %417 = vmatprep.mubr.bf16.mxu0 (!%p138_p2), %v679_v0  ;;  %644 = vmatprep.mubr.msk.bf16.mxu1 (!%p138_p2), %vm378_vm0, %v681_v1  ;;  %v694_v2 = vmov (!%p138_p2), 0   ;;  %v216_v3 = vld [vmem:[%s794_s2] sm:$0xff] (!%p138_p2)  ;;  %v218_v4 = vld [vmem:[%s794_s2 + $0x10] sm:$0xff] (!%p138_p2)  ;;  %v217_v5 = vld [vmem:[%s794_s2 + $0x8] sm:$0xff] (!%p138_p2)  ;;  %vm503_vm1 = vcmask (!%p138_p2), 289792  }
   0x7   : > { %658 = vset.pattern.permute.xlu0 (!%p138_p2), %v694_v2  ;;  %659 = vset.pattern.permute.xlu1 (!%p138_p2), %v694_v2  ;;  %v219_v6 = vld [vmem:[%s794_s2 + $0x18] sm:$0xff] (!%p138_p2)  ;;  %v682_v22 = vld [vmem:[%s793_s1 + $0x20] ss:$12 sps:$4 sm:$0xff] (!%p138_p2)  }
   0x8   : > { %222 = vperm.xlu0 (!%p138_p2), %658, %v216_v3   ;;  %232 = vperm.xlu1 (!%p138_p2), %659, %v218_v4   ;;  %v677_v26 = vld [vmem:[%s793_s1] ss:$12 sps:$4 sm:$0xff] (!%p138_p2)   ;;  %v683_v27 = vld [vmem:[%s793_s1 + $0x1c] ss:$12 sps:$4 sm:$0xff] (!%p138_p2)   ;;  %v685_v28 = vld [vmem:[%s793_s1 + $0x18] ss:$12 sps:$4 sm:$0xff] (!%p138_p2)  }
   0xc   : > { %227 = vperm.xlu0 (!%p138_p2), %658, %v217_v5   ;;  %237 = vperm.xlu1 (!%p138_p2), %659, %v219_v6  }
   0xd   : > { %s797_s13 = smov (!%p161_p3, %s563_s13), 1 }
   0xe   : > { %s648_s18 = smul.u32 144, %s797_s13  ;;  %s603_s11 = sshll.u32 %s797_s13, 4 }
   0xf   : > { %s170_s16 = scalar_lea.vmem %s795_s3, %s603_s11 }
  0x10   : > { %s742_s25 = scalar_lea.vmem %s792_s0, %s648_s18 }
  0x11   : > { %v660_v7 = vld [vmem:[%s742_s25 + $0x40] sm:$0xff]   ;;  %v662_v9 = vld [vmem:[%s742_s25 + $0x48] sm:$0xff]   ;;  %v664_v11 = vld [vmem:[%s742_s25 + $0x50] sm:$0xff]  }
  0x12   : > { %v661_v8 = vld [vmem:[%s742_s25] sm:$0xff]   ;;  %608 = vmatprep.subr.bf16.mxu0 %v660_v7  ;;  %v663_v10 = vld [vmem:[%s742_s25 + $0x8] sm:$0xff]   ;;  %v665_v12 = vld [vmem:[%s742_s25 + $0x10] sm:$0xff]  }
  0x13   : > { %609 = vmatpush3.bf16.msra.mxu0 %v661_v8  ;;  %v666_v13 = vld [vmem:[%s742_s25 + $0x58] sm:$0xff]   ;;  %v668_v15 = vld [vmem:[%s742_s25 + $0x60] sm:$0xff]   ;;  %v670_v18 = vld [vmem:[%s742_s25 + $0x68] sm:$0xff]  }
  0x14   : > { %610 = vmatprep.subr.bf16.mxu0 %v662_v9  ;;  %v667_v14 = vld [vmem:[%s742_s25 + $0x18] sm:$0xff]   ;;  %v669_v16 = vld [vmem:[%s742_s25 + $0x20] sm:$0xff]   ;;  %v680_v19 = vld [vmem:[%s742_s25 + $0x88] sm:$0xff]  }
  0x15   : > { %v675_v17 = vld [vmem:[%s742_s25 + $0x80] sm:$0xff]   ;;  %v671_v20 = vld [vmem:[%s742_s25 + $0x28] sm:$0xff]   ;;  %v672_v21 = vld [vmem:[%s742_s25 + $0x70] sm:$0xff]  }
  0x16   : > { %640 = vmatprep.subr.bf16.mxu1 %v675_v17  ;;  %v673_v23 = vld [vmem:[%s742_s25 + $0x30] sm:$0xff]   ;;  %v674_v24 = vld [vmem:[%s742_s25 + $0x78] sm:$0xff]  }
  0x17   : > { %611 = vmatpush3.bf16.msra.mxu0 %v663_v10  ;;  %641 = vmatpush3.bf16.msra.mxu1 %v675_v17  ;;  %v676_v25 = vld [vmem:[%s742_s25 + $0x38] sm:$0xff]  }
  0x18   : > { %612 = vmatprep.subr.bf16.mxu0 %v664_v11  ;;  %642 = vmatprep.subr.bf16.mxu1 %v680_v19 }
  0x1b   : > { %613 = vmatpush3.bf16.msra.mxu0 %v665_v12  ;;  %643 = vmatpush3.bf16.msra.mxu1 %v680_v19 }
  0x1c   : > { %614 = vmatprep.subr.bf16.mxu0 %v666_v13 }
  0x1e   : > { %645 = vmatmul.mubr.msk.bf16.vlgmr.msra.gmra.mrb[0].mxu1 %vm378_vm0, %v682_v22 }
  0x1f   : > { %615 = vmatpush3.bf16.msra.mxu0 %v667_v14 }
  0x20   : > { %616 = vmatprep.subr.bf16.mxu0 %v668_v15 }
  0x23   : > { %617 = vmatpush3.bf16.msra.mxu0 %v669_v16 }
  0x24   : > { %618 = vmatprep.subr.bf16.mxu0 %v670_v18 }
  0x27   : > { %619 = vmatpush3.bf16.msra.mxu0 %v671_v20 }
  0x28   : > { %620 = vmatprep.subr.bf16.mxu0 %v672_v21 }
  0x2b   : > { %621 = vmatpush3.bf16.msra.mxu0 %v673_v23 }
  0x2c   : > { %622 = vmatprep.subr.bf16.mxu0 %v674_v24 }
  0x2f   : > { %623 = vmatpush3.bf16.msra.mxu0 %v676_v25 }
  0x32   : > { %418 = vmatmul.mubr.bf16.vlgmr.msra.gmra.mrb[0].mxu0 %v677_v26 }
  0x33   : > { %425 = vmatprep.mubr.bf16.mxu0 %v683_v27 }
  0x3a   : > { %426 = vmatmul.mubr.bf16.gmra.mrb[4].mxu0 %v685_v28 }
  0x87   : > { %v223_v33 = vpop.permute.xlu0 %222  ;;  %v233_v44 = vpop.permute.xlu1 %232 }
  0x8b   : > { %v228_v39 = vpop.permute.xlu0 %227  ;;  %v238_v57 = vpop.permute.xlu1 %237 }
  0xf1   : > { %v646_v29 = vpop.f32.mrb[0].mxu1 }
  0xf2   : > { %v468_v30 = vpop.f32.mrb[1].mxu1 }
  0xf3   : > { %v647_v31 = vpop.f32.mrb[2].mxu1 }
  0xf4   : > { %v471_v32 = vpop.f32.mrb[3].mxu1 }
 0x105   : > { %v624_v34 = vpop.f32.mrb[0].mxu0 }
 0x106   : > { %v625_v35 = vpop.f32.mrb[1].mxu0 }
 0x107   : > { %v626_v36 = vadd.f32 %v625_v35, %v624_v34  ;;  %v627_v37 = vpop.f32.mrb[2].mxu0 }
 0x108   : > { %v628_v38 = vpop.f32.mrb[3].mxu0 }
 0x109   : > { %v629_v40 = vadd.f32 %v628_v38, %v627_v37  ;;  %v420_v41 = vadd.f32 %v626_v36, %v223_v33 }
 0x10b   : > { %v423_v42 = vadd.f32 %v629_v40, %v228_v39  ;;  %v469_v43 = vadd.f32 %v468_v30, %v420_v41 }
 0x10d   : > { %v483_v45 = vmax.f32 %v469_v43, 0.0  ;;  %v472_v46 = vadd.f32 %v471_v32, %v423_v42  ;;  %v630_v47 = vpop.f32.mrb[4].mxu0 }
 0x10e   : > { %v631_v48 = vpop.f32.mrb[5].mxu0 }
 0x10f   : > { %v604_v49 = vpack.c.bf16 %v483_v45, %v483_v45  ;;  %v484_v50 = vmax.f32 %v472_v46, 0.0  ;;  %v632_v51 = vadd.f32 %v631_v48, %v630_v47  ;;  %v633_v52 = vpop.f32.mrb[6].mxu0 }
 0x110   : > { %v634_v53 = vpop.f32.mrb[7].mxu0 }
 0x111   : > { %504 = vst.msk [vmem:[%s170_s16] sm:$0xf] %vm503_vm1, %v604_v49  ;;  %v605_v54 = vpack.c.bf16 %v484_v50, %v484_v50  ;;  %v428_v55 = vadd.f32 %v632_v51, %v233_v44  ;;  %v635_v56 = vadd.f32 %v634_v53, %v633_v52 }
 0x113   : > { %505 = vst.msk [vmem:[%s170_s16 + $0x4] sm:$0xf] %vm503_vm1, %v605_v54  ;;  %v477_v58 = vadd.f32 %v646_v29, %v428_v55  ;;  %v431_v59 = vadd.f32 %v635_v56, %v238_v57 }
 0x115   : > { %v485_v60 = vmax.f32 %v477_v58, 0.0  ;;  %v480_v61 = vadd.f32 %v647_v31, %v431_v59 }
 0x117   : > { %v606_v62 = vpack.c.bf16 %v485_v60, %v485_v60  ;;  %v486_v63 = vmax.f32 %v480_v61, 0.0 }
 0x119   : > { %506 = vst.msk [vmem:[%s170_s16 + $0x8] sm:$0xf] %vm503_vm1, %v606_v62  ;;  %v607_v0 = vpack.c.bf16 %v486_v63, %v486_v63 }
 0x11b   : > { %507 = vst.msk [vmem:[%s170_s16 + $0xc] sm:$0xf] %vm503_vm1, %v607_v0 }
 0x11c PF: > { %s13_s12 = sadd.s32 1, %s692_s12  }
 0x11d   : > { %p10_p4 = scmp.ge.s32.totalorder %s13_s12, 4  }
 0x11f   :  { %12 = sbr.rel (!%p10_p4) target bundleno = 1 (0x1), region = 62 }

// kernel: user_critic_forward.9
= control target key start
LH: loop header
LB: loop body
LE: loop exit
PB: predicated region body
PF: predicated region fallthrough
CT: control target
= control target key end

     0   :  { %s7347_s0 = inlined_call_operand.vmem [shape: bf16[2,1664], index: 0, kind: input, shape index: {}]   ;;  %s7348_s1 = inlined_call_operand.vmem [shape: bf16[1664,2048], index: 1, kind: input, shape index: {}]   ;;  %s7349_s2 = inlined_call_operand.vmem [shape: f32[1,2048], index: 2, kind: input, shape index: {}]   ;;  %s7350_s3 = inlined_call_operand.vmem [shape: f32[2,512], index: 3, kind: input, shape index: {}]   ;;  %s7351_s4 = inlined_call_operand.vmem [shape: f32[1,512], index: 4, kind: input, shape index: {}]   ;;  %s7352_s5 = inlined_call_operand.<no memory space> [shape: f32[1,1], index: 5, kind: input, shape index: {}]   ;;  %s7353_s6 = inlined_call_operand.vmem [shape: f32[2,1], index: 6, kind: output, shape index: {}]  }
   0x1   :  { %v11_v0 = vstv %s7352_s5 }
   0x2   :  { %12 = vst [vmem:[#allocation4] sm:$0x1] %v11_v0 }
   0x3   :  { %s5896_s23 = smov 0   ;;  %s5898_s24 = smov 0  }
   0x4   :  { %s5900_s25 = smov 0  }
   0x5 LB: > { %s5912_s5 = sadd.s32 4294967295, %s5850_s25   ;;  %s5915_s26 = sadd.s32 1, %s5850_s25   ;;  %s5850_s25 = sphi %s5900_s25, %s7356_s25   ;;  %s5846_s24 = sphi %s5898_s24, %s7355_s24   ;;  %s5842_s23 = sphi %s5896_s23, %s7354_s23  }
   0x6   : > { %s43_s27 = ssub.s32 %s5850_s25, %s5915_s26  ;;  %s46_s28 = sadd.s32 1, %s5846_s24 }
   0x7   : > { %p44_p0 = scmp.eq.s32.totalorder %s43_s27, 0  ;;  %p53_p1 = scmp.ne.s32.totalorder %s5846_s24, %s5842_s23 }
   0x8   : > { %p54_p2 = scmp.eq.s32.totalorder %s5850_s25, 0  ;;  %p4618_p4 = scmp.ge.s32.totalorder %s5850_s25, 4 }
   0x9   : > { %s5924_s29 = scalar_select %p44_p0, %s5846_s24, %s46_s28  }
   0xa   : > { %p55_p3 = por %p54_p2, %p53_p1  ;;  %201 = sbr.rel (%p4618_p4) target bundleno = 229 (0xe5), region = 32 }
  0x11   : > { %204 = sbr.rel (!%p55_p3) target bundleno = 229 (0xe5), region = 36  ;;  %s206_s30 = sand.u32 (%p55_p3), 1, %s5846_s24  }
  0x12   : > { %s5058_s7 = sshll.u32 (%p55_p3), %s5850_s25, 4  ;;  %s5111_s8 = smul.u32 (%p55_p3), 3328, %s206_s30 }
  0x13   : > { %s5932_s11 = scalar_lea.vmem (%p55_p3), %s7348_s1, %s5058_s7 }
  0x14   : > { %v224_v1 = vld [vmem:[%s5932_s11] sm:$0xff] (%p55_p3)  ;;  %v226_v2 = vld [vmem:[%s5932_s11 + $0x8] sm:$0xff] (%p55_p3)  ;;  %s5940_s12 = scalar_lea.vmem (%p55_p3), [#allocation5], %s5111_s8 }
  0x15   : > { %v228_v3 = vld [vmem:[%s5932_s11 + $0x40] sm:$0xff] (%p55_p3)  ;;  %v230_v4 = vld [vmem:[%s5932_s11 + $0x48] sm:$0xff] (%p55_p3)  ;;  %225 = vst [vmem:[%s5940_s12] sm:$0xff] (%p55_p3), %v224_v1  ;;  %227 = vst [vmem:[%s5940_s12 + $0x8] sm:$0xff] (%p55_p3), %v226_v2 }
  0x16   : > { %v232_v5 = vld [vmem:[%s5932_s11 + $0x80] sm:$0xff] (%p55_p3)  ;;  %v234_v6 = vld [vmem:[%s5932_s11 + $0x88] sm:$0xff] (%p55_p3)  ;;  %229 = vst [vmem:[%s5940_s12 + $0x10] sm:$0xff] (%p55_p3), %v228_v3  ;;  %231 = vst [vmem:[%s5940_s12 + $0x18] sm:$0xff] (%p55_p3), %v230_v4 }
  0x17   : > { %233 = vst [vmem:[%s5940_s12 + $0x20] sm:$0xff] (%p55_p3), %v232_v5  ;;  %235 = vst [vmem:[%s5940_s12 + $0x28] sm:$0xff] (%p55_p3), %v234_v6  ;;  %v236_v7 = vld [vmem:[%s5932_s11 + $0xc0] sm:$0xff] (%p55_p3)  ;;  %v238_v8 = vld [vmem:[%s5932_s11 + $0xc8] sm:$0xff] (%p55_p3) }
  0x18   : > { %v240_v9 = vld [vmem:[%s5932_s11 + $0x100] sm:$0xff]  ;;  %237 = vst [vmem:[%s5940_s12 + $0x30] sm:$0xff] %v236_v7  ;;  %239 = vst [vmem:[%s5940_s12 + $0x38] sm:$0xff] %v238_v8  ;;  %v242_v10 = vld [vmem:[%s5932_s11 + $0x108] sm:$0xff] }
  0x19   : > { %241 = vst [vmem:[%s5940_s12 + $0x40] sm:$0xff] %v240_v9  ;;  %v244_v11 = vld [vmem:[%s5932_s11 + $0x140] sm:$0xff]  ;;  %v246_v12 = vld [vmem:[%s5932_s11 + $0x148] sm:$0xff]  ;;  %243 = vst [vmem:[%s5940_s12 + $0x48] sm:$0xff] %v242_v10 }
  0x1a   : > { %245 = vst [vmem:[%s5940_s12 + $0x50] sm:$0xff] %v244_v11  ;;  %247 = vst [vmem:[%s5940_s12 + $0x58] sm:$0xff] %v246_v12  ;;  %v248_v13 = vld [vmem:[%s5932_s11 + $0x180] sm:$0xff]  ;;  %v250_v14 = vld [vmem:[%s5932_s11 + $0x188] sm:$0xff] }
  0x1b   : > { %v252_v15 = vld [vmem:[%s5932_s11 + $0x1c0] sm:$0xff]  ;;  %249 = vst [vmem:[%s5940_s12 + $0x60] sm:$0xff] %v248_v13  ;;  %251 = vst [vmem:[%s5940_s12 + $0x68] sm:$0xff] %v250_v14  ;;  %v254_v16 = vld [vmem:[%s5932_s11 + $0x1c8] sm:$0xff] }
  0x1c   : > { %253 = vst [vmem:[%s5940_s12 + $0x70] sm:$0xff] %v252_v15  ;;  %v256_v17 = vld [vmem:[%s5932_s11 + $0x200] sm:$0xff]  ;;  %v258_v18 = vld [vmem:[%s5932_s11 + $0x208] sm:$0xff]  ;;  %255 = vst [vmem:[%s5940_s12 + $0x78] sm:$0xff] %v254_v16 }
  0x1d   : > { %257 = vst [vmem:[%s5940_s12 + $0x80] sm:$0xff] %v256_v17  ;;  %259 = vst [vmem:[%s5940_s12 + $0x88] sm:$0xff] %v258_v18  ;;  %v260_v19 = vld [vmem:[%s5932_s11 + $0x240] sm:$0xff]  ;;  %v262_v20 = vld [vmem:[%s5932_s11 + $0x248] sm:$0xff] }
  0x1e   : > { %v264_v21 = vld [vmem:[%s5932_s11 + $0x280] sm:$0xff]  ;;  %261 = vst [vmem:[%s5940_s12 + $0x90] sm:$0xff] %v260_v19  ;;  %263 = vst [vmem:[%s5940_s12 + $0x98] sm:$0xff] %v262_v20  ;;  %v266_v22 = vld [vmem:[%s5932_s11 + $0x288] sm:$0xff] }
  0x1f   : > { %265 = vst [vmem:[%s5940_s12 + $0xa0] sm:$0xff] %v264_v21  ;;  %v268_v23 = vld [vmem:[%s5932_s11 + $0x2c0] sm:$0xff]  ;;  %v270_v24 = vld [vmem:[%s5932_s11 + $0x2c8] sm:$0xff]  ;;  %267 = vst [vmem:[%s5940_s12 + $0xa8] sm:$0xff] %v266_v22 }
  0x20   : > { %269 = vst [vmem:[%s5940_s12 + $0xb0] sm:$0xff] %v268_v23  ;;  %271 = vst [vmem:[%s5940_s12 + $0xb8] sm:$0xff] %v270_v24  ;;  %v272_v25 = vld [vmem:[%s5932_s11 + $0x300] sm:$0xff]  ;;  %v274_v26 = vld [vmem:[%s5932_s11 + $0x308] sm:$0xff] }
  0x21   : > { %v276_v27 = vld [vmem:[%s5932_s11 + $0x340] sm:$0xff]  ;;  %273 = vst [vmem:[%s5940_s12 + $0xc0] sm:$0xff] %v272_v25  ;;  %275 = vst [vmem:[%s5940_s12 + $0xc8] sm:$0xff] %v274_v26  ;;  %v278_v28 = vld [vmem:[%s5932_s11 + $0x348] sm:$0xff] }
  0x22   : > { %277 = vst [vmem:[%s5940_s12 + $0xd0] sm:$0xff] %v276_v27  ;;  %v280_v29 = vld [vmem:[%s5932_s11 + $0x380] sm:$0xff]  ;;  %v282_v30 = vld [vmem:[%s5932_s11 + $0x388] sm:$0xff]  ;;  %279 = vst [vmem:[%s5940_s12 + $0xd8] sm:$0xff] %v278_v28 }
  0x23   : > { %281 = vst [vmem:[%s5940_s12 + $0xe0] sm:$0xff] %v280_v29  ;;  %283 = vst [vmem:[%s5940_s12 + $0xe8] sm:$0xff] %v282_v30  ;;  %v284_v31 = vld [vmem:[%s5932_s11 + $0x3c0] sm:$0xff]  ;;  %v286_v32 = vld [vmem:[%s5932_s11 + $0x3c8] sm:$0xff] }
  0x24   : > { %v288_v33 = vld [vmem:[%s5932_s11 + $0x400] sm:$0xff]  ;;  %285 = vst [vmem:[%s5940_s12 + $0xf0] sm:$0xff] %v284_v31  ;;  %287 = vst [vmem:[%s5940_s12 + $0xf8] sm:$0xff] %v286_v32  ;;  %v290_v34 = vld [vmem:[%s5932_s11 + $0x408] sm:$0xff] }
  0x25   : > { %289 = vst [vmem:[%s5940_s12 + $0x100] sm:$0xff] %v288_v33  ;;  %v292_v35 = vld [vmem:[%s5932_s11 + $0x440] sm:$0xff]  ;;  %v294_v36 = vld [vmem:[%s5932_s11 + $0x448] sm:$0xff]  ;;  %291 = vst [vmem:[%s5940_s12 + $0x108] sm:$0xff] %v290_v34 }
  0x26   : > { %293 = vst [vmem:[%s5940_s12 + $0x110] sm:$0xff] %v292_v35  ;;  %295 = vst [vmem:[%s5940_s12 + $0x118] sm:$0xff] %v294_v36  ;;  %v296_v37 = vld [vmem:[%s5932_s11 + $0x480] sm:$0xff]  ;;  %v298_v38 = vld [vmem:[%s5932_s11 + $0x488] sm:$0xff] }
  0x27   : > { %v300_v39 = vld [vmem:[%s5932_s11 + $0x4c0] sm:$0xff]  ;;  %297 = vst [vmem:[%s5940_s12 + $0x120] sm:$0xff] %v296_v37  ;;  %299 = vst [vmem:[%s5940_s12 + $0x128] sm:$0xff] %v298_v38  ;;  %v302_v40 = vld [vmem:[%s5932_s11 + $0x4c8] sm:$0xff] }
  0x28   : > { %301 = vst [vmem:[%s5940_s12 + $0x130] sm:$0xff] %v300_v39  ;;  %v304_v41 = vld [vmem:[%s5932_s11 + $0x500] sm:$0xff]  ;;  %v306_v42 = vld [vmem:[%s5932_s11 + $0x508] sm:$0xff]  ;;  %303 = vst [vmem:[%s5940_s12 + $0x138] sm:$0xff] %v302_v40 }
  0x29   : > { %305 = vst [vmem:[%s5940_s12 + $0x140] sm:$0xff] %v304_v41  ;;  %307 = vst [vmem:[%s5940_s12 + $0x148] sm:$0xff] %v306_v42  ;;  %v308_v43 = vld [vmem:[%s5932_s11 + $0x540] sm:$0xff]  ;;  %v310_v44 = vld [vmem:[%s5932_s11 + $0x548] sm:$0xff] }
  0x2a   : > { %v312_v45 = vld [vmem:[%s5932_s11 + $0x580] sm:$0xff]  ;;  %309 = vst [vmem:[%s5940_s12 + $0x150] sm:$0xff] %v308_v43  ;;  %311 = vst [vmem:[%s5940_s12 + $0x158] sm:$0xff] %v310_v44  ;;  %v314_v46 = vld [vmem:[%s5932_s11 + $0x588] sm:$0xff] }
  0x2b   : > { %313 = vst [vmem:[%s5940_s12 + $0x160] sm:$0xff] %v312_v45  ;;  %v316_v47 = vld [vmem:[%s5932_s11 + $0x5c0] sm:$0xff]  ;;  %v318_v48 = vld [vmem:[%s5932_s11 + $0x5c8] sm:$0xff]  ;;  %315 = vst [vmem:[%s5940_s12 + $0x168] sm:$0xff] %v314_v46 }
  0x2c   : > { %317 = vst [vmem:[%s5940_s12 + $0x170] sm:$0xff] %v316_v47  ;;  %319 = vst [vmem:[%s5940_s12 + $0x178] sm:$0xff] %v318_v48  ;;  %v320_v49 = vld [vmem:[%s5932_s11 + $0x600] sm:$0xff]  ;;  %v322_v50 = vld [vmem:[%s5932_s11 + $0x608] sm:$0xff] }
  0x2d   : > { %v324_v51 = vld [vmem:[%s5932_s11 + $0x640] sm:$0xff]  ;;  %321 = vst [vmem:[%s5940_s12 + $0x180] sm:$0xff] %v320_v49  ;;  %323 = vst [vmem:[%s5940_s12 + $0x188] sm:$0xff] %v322_v50  ;;  %v326_v52 = vld [vmem:[%s5932_s11 + $0x648] sm:$0xff] }
  0x2e   : > { %325 = vst [vmem:[%s5940_s12 + $0x190] sm:$0xff] %v324_v51  ;;  %v328_v53 = vld [vmem:[%s5932_s11 + $0x680] sm:$0xff]  ;;  %v330_v54 = vld [vmem:[%s5932_s11 + $0x688] sm:$0xff]  ;;  %327 = vst [vmem:[%s5940_s12 + $0x198] sm:$0xff] %v326_v52 }
  0x2f   : > { %329 = vst [vmem:[%s5940_s12 + $0x1a0] sm:$0xff] %v328_v53  ;;  %331 = vst [vmem:[%s5940_s12 + $0x1a8] sm:$0xff] %v330_v54  ;;  %v332_v55 = vld [vmem:[%s5932_s11 + $0x6c0] sm:$0xff]  ;;  %v334_v56 = vld [vmem:[%s5932_s11 + $0x6c8] sm:$0xff] }
  0x30   : > { %v336_v57 = vld [vmem:[%s5932_s11 + $0x700] sm:$0xff]  ;;  %333 = vst [vmem:[%s5940_s12 + $0x1b0] sm:$0xff] %v332_v55  ;;  %335 = vst [vmem:[%s5940_s12 + $0x1b8] sm:$0xff] %v334_v56  ;;  %v338_v58 = vld [vmem:[%s5932_s11 + $0x708] sm:$0xff] }
  0x31   : > { %337 = vst [vmem:[%s5940_s12 + $0x1c0] sm:$0xff] %v336_v57  ;;  %v340_v59 = vld [vmem:[%s5932_s11 + $0x740] sm:$0xff]  ;;  %v342_v60 = vld [vmem:[%s5932_s11 + $0x748] sm:$0xff]  ;;  %339 = vst [vmem:[%s5940_s12 + $0x1c8] sm:$0xff] %v338_v58 }
  0x32   : > { %341 = vst [vmem:[%s5940_s12 + $0x1d0] sm:$0xff] %v340_v59  ;;  %343 = vst [vmem:[%s5940_s12 + $0x1d8] sm:$0xff] %v342_v60  ;;  %v344_v61 = vld [vmem:[%s5932_s11 + $0x780] sm:$0xff]  ;;  %v346_v62 = vld [vmem:[%s5932_s11 + $0x788] sm:$0xff] }
  0x33   : > { %v348_v63 = vld [vmem:[%s5932_s11 + $0x7c0] sm:$0xff]  ;;  %345 = vst [vmem:[%s5940_s12 + $0x1e0] sm:$0xff] %v344_v61  ;;  %347 = vst [vmem:[%s5940_s12 + $0x1e8] sm:$0xff] %v346_v62  ;;  %v350_v0 = vld [vmem:[%s5932_s11 + $0x7c8] sm:$0xff] }
  0x34   : > { %349 = vst [vmem:[%s5940_s12 + $0x1f0] sm:$0xff] %v348_v63  ;;  %v352_v1 = vld [vmem:[%s5932_s11 + $0x800] sm:$0xff]  ;;  %v354_v2 = vld [vmem:[%s5932_s11 + $0x808] sm:$0xff]  ;;  %351 = vst [vmem:[%s5940_s12 + $0x1f8] sm:$0xff] %v350_v0 }
  0x35   : > { %353 = vst [vmem:[%s5940_s12 + $0x200] sm:$0xff] %v352_v1  ;;  %355 = vst [vmem:[%s5940_s12 + $0x208] sm:$0xff] %v354_v2  ;;  %v356_v3 = vld [vmem:[%s5932_s11 + $0x840] sm:$0xff]  ;;  %v358_v4 = vld [vmem:[%s5932_s11 + $0x848] sm:$0xff] }
  0x36   : > { %v360_v5 = vld [vmem:[%s5932_s11 + $0x880] sm:$0xff]  ;;  %357 = vst [vmem:[%s5940_s12 + $0x210] sm:$0xff] %v356_v3  ;;  %359 = vst [vmem:[%s5940_s12 + $0x218] sm:$0xff] %v358_v4  ;;  %v362_v6 = vld [vmem:[%s5932_s11 + $0x888] sm:$0xff] }
  0x37   : > { %361 = vst [vmem:[%s5940_s12 + $0x220] sm:$0xff] %v360_v5  ;;  %v364_v7 = vld [vmem:[%s5932_s11 + $0x8c0] sm:$0xff]  ;;  %v366_v8 = vld [vmem:[%s5932_s11 + $0x8c8] sm:$0xff]  ;;  %363 = vst [vmem:[%s5940_s12 + $0x228] sm:$0xff] %v362_v6 }
  0x38   : > { %365 = vst [vmem:[%s5940_s12 + $0x230] sm:$0xff] %v364_v7  ;;  %367 = vst [vmem:[%s5940_s12 + $0x238] sm:$0xff] %v366_v8  ;;  %v368_v9 = vld [vmem:[%s5932_s11 + $0x900] sm:$0xff]  ;;  %v370_v10 = vld [vmem:[%s5932_s11 + $0x908] sm:$0xff] }
  0x39   : > { %v372_v11 = vld [vmem:[%s5932_s11 + $0x940] sm:$0xff]  ;;  %369 = vst [vmem:[%s5940_s12 + $0x240] sm:$0xff] %v368_v9  ;;  %371 = vst [vmem:[%s5940_s12 + $0x248] sm:$0xff] %v370_v10  ;;  %v374_v12 = vld [vmem:[%s5932_s11 + $0x948] sm:$0xff] }
  0x3a   : > { %373 = vst [vmem:[%s5940_s12 + $0x250] sm:$0xff] %v372_v11  ;;  %v376_v13 = vld [vmem:[%s5932_s11 + $0x980] sm:$0xff]  ;;  %v378_v14 = vld [vmem:[%s5932_s11 + $0x988] sm:$0xff]  ;;  %375 = vst [vmem:[%s5940_s12 + $0x258] sm:$0xff] %v374_v12 }
  0x3b   : > { %377 = vst [vmem:[%s5940_s12 + $0x260] sm:$0xff] %v376_v13  ;;  %379 = vst [vmem:[%s5940_s12 + $0x268] sm:$0xff] %v378_v14  ;;  %v380_v15 = vld [vmem:[%s5932_s11 + $0x9c0] sm:$0xff]  ;;  %v382_v16 = vld [vmem:[%s5932_s11 + $0x9c8] sm:$0xff] }
  0x3c   : > { %v384_v17 = vld [vmem:[%s5932_s11 + $0xa00] sm:$0xff]  ;;  %381 = vst [vmem:[%s5940_s12 + $0x270] sm:$0xff] %v380_v15  ;;  %383 = vst [vmem:[%s5940_s12 + $0x278] sm:$0xff] %v382_v16  ;;  %v386_v18 = vld [vmem:[%s5932_s11 + $0xa08] sm:$0xff] }
  0x3d   : > { %385 = vst [vmem:[%s5940_s12 + $0x280] sm:$0xff] %v384_v17  ;;  %v388_v19 = vld [vmem:[%s5932_s11 + $0xa40] sm:$0xff]  ;;  %v390_v20 = vld [vmem:[%s5932_s11 + $0xa48] sm:$0xff]  ;;  %387 = vst [vmem:[%s5940_s12 + $0x288] sm:$0xff] %v386_v18 }
  0x3e   : > { %389 = vst [vmem:[%s5940_s12 + $0x290] sm:$0xff] %v388_v19  ;;  %391 = vst [vmem:[%s5940_s12 + $0x298] sm:$0xff] %v390_v20  ;;  %v392_v21 = vld [vmem:[%s5932_s11 + $0xa80] sm:$0xff]  ;;  %v394_v22 = vld [vmem:[%s5932_s11 + $0xa88] sm:$0xff] }
  0x3f   : > { %v396_v23 = vld [vmem:[%s5932_s11 + $0xac0] sm:$0xff]  ;;  %393 = vst [vmem:[%s5940_s12 + $0x2a0] sm:$0xff] %v392_v21  ;;  %395 = vst [vmem:[%s5940_s12 + $0x2a8] sm:$0xff] %v394_v22  ;;  %v398_v24 = vld [vmem:[%s5932_s11 + $0xac8] sm:$0xff] }
  0x40   : > { %397 = vst [vmem:[%s5940_s12 + $0x2b0] sm:$0xff] %v396_v23  ;;  %v400_v25 = vld [vmem:[%s5932_s11 + $0xb00] sm:$0xff]  ;;  %v402_v26 = vld [vmem:[%s5932_s11 + $0xb08] sm:$0xff]  ;;  %399 = vst [vmem:[%s5940_s12 + $0x2b8] sm:$0xff] %v398_v24 }
  0x41   : > { %401 = vst [vmem:[%s5940_s12 + $0x2c0] sm:$0xff] %v400_v25  ;;  %403 = vst [vmem:[%s5940_s12 + $0x2c8] sm:$0xff] %v402_v26  ;;  %v404_v27 = vld [vmem:[%s5932_s11 + $0xb40] sm:$0xff]  ;;  %v406_v28 = vld [vmem:[%s5932_s11 + $0xb48] sm:$0xff] }
  0x42   : > { %v408_v29 = vld [vmem:[%s5932_s11 + $0xb80] sm:$0xff]  ;;  %405 = vst [vmem:[%s5940_s12 + $0x2d0] sm:$0xff] %v404_v27  ;;  %407 = vst [vmem:[%s5940_s12 + $0x2d8] sm:$0xff] %v406_v28  ;;  %v410_v30 = vld [vmem:[%s5932_s11 + $0xb88] sm:$0xff] }
  0x43   : > { %409 = vst [vmem:[%s5940_s12 + $0x2e0] sm:$0xff] %v408_v29  ;;  %v412_v31 = vld [vmem:[%s5932_s11 + $0xbc0] sm:$0xff]  ;;  %v414_v32 = vld [vmem:[%s5932_s11 + $0xbc8] sm:$0xff]  ;;  %411 = vst [vmem:[%s5940_s12 + $0x2e8] sm:$0xff] %v410_v30 }
  0x44   : > { %413 = vst [vmem:[%s5940_s12 + $0x2f0] sm:$0xff] %v412_v31  ;;  %415 = vst [vmem:[%s5940_s12 + $0x2f8] sm:$0xff] %v414_v32  ;;  %v416_v33 = vld [vmem:[%s5932_s11 + $0xc00] sm:$0xff]  ;;  %v418_v34 = vld [vmem:[%s5932_s11 + $0xc08] sm:$0xff] }
  0x45   : > { %v420_v35 = vld [vmem:[%s5932_s11 + $0xc40] sm:$0xff]  ;;  %417 = vst [vmem:[%s5940_s12 + $0x300] sm:$0xff] %v416_v33  ;;  %419 = vst [vmem:[%s5940_s12 + $0x308] sm:$0xff] %v418_v34  ;;  %v422_v36 = vld [vmem:[%s5932_s11 + $0xc48] sm:$0xff] }
  0x46   : > { %421 = vst [vmem:[%s5940_s12 + $0x310] sm:$0xff] %v420_v35  ;;  %v424_v37 = vld [vmem:[%s5932_s11 + $0xc80] sm:$0xff]  ;;  %v426_v38 = vld [vmem:[%s5932_s11 + $0xc88] sm:$0xff]  ;;  %423 = vst [vmem:[%s5940_s12 + $0x318] sm:$0xff] %v422_v36 }
  0x47   : > { %425 = vst [vmem:[%s5940_s12 + $0x320] sm:$0xff] %v424_v37  ;;  %427 = vst [vmem:[%s5940_s12 + $0x328] sm:$0xff] %v426_v38  ;;  %v428_v39 = vld [vmem:[%s5932_s11 + $0xcc0] sm:$0xff]  ;;  %v430_v40 = vld [vmem:[%s5932_s11 + $0xcc8] sm:$0xff] }
  0x48   : > { %v432_v41 = vld [vmem:[%s5932_s11 + $0xd00] sm:$0xff]  ;;  %429 = vst [vmem:[%s5940_s12 + $0x330] sm:$0xff] %v428_v39  ;;  %431 = vst [vmem:[%s5940_s12 + $0x338] sm:$0xff] %v430_v40  ;;  %v434_v42 = vld [vmem:[%s5932_s11 + $0xd08] sm:$0xff] }
  0x49   : > { %433 = vst [vmem:[%s5940_s12 + $0x340] sm:$0xff] %v432_v41  ;;  %v436_v43 = vld [vmem:[%s5932_s11 + $0xd40] sm:$0xff]  ;;  %v438_v44 = vld [vmem:[%s5932_s11 + $0xd48] sm:$0xff]  ;;  %435 = vst [vmem:[%s5940_s12 + $0x348] sm:$0xff] %v434_v42 }
  0x4a   : > { %437 = vst [vmem:[%s5940_s12 + $0x350] sm:$0xff] %v436_v43  ;;  %439 = vst [vmem:[%s5940_s12 + $0x358] sm:$0xff] %v438_v44  ;;  %v440_v45 = vld [vmem:[%s5932_s11 + $0xd80] sm:$0xff]  ;;  %v442_v46 = vld [vmem:[%s5932_s11 + $0xd88] sm:$0xff] }
  0x4b   : > { %v444_v47 = vld [vmem:[%s5932_s11 + $0xdc0] sm:$0xff]  ;;  %441 = vst [vmem:[%s5940_s12 + $0x360] sm:$0xff] %v440_v45  ;;  %443 = vst [vmem:[%s5940_s12 + $0x368] sm:$0xff] %v442_v46  ;;  %v446_v48 = vld [vmem:[%s5932_s11 + $0xdc8] sm:$0xff] }
  0x4c   : > { %445 = vst [vmem:[%s5940_s12 + $0x370] sm:$0xff] %v444_v47  ;;  %v448_v49 = vld [vmem:[%s5932_s11 + $0xe00] sm:$0xff]  ;;  %v450_v50 = vld [vmem:[%s5932_s11 + $0xe08] sm:$0xff]  ;;  %447 = vst [vmem:[%s5940_s12 + $0x378] sm:$0xff] %v446_v48 }
  0x4d   : > { %449 = vst [vmem:[%s5940_s12 + $0x380] sm:$0xff] %v448_v49  ;;  %451 = vst [vmem:[%s5940_s12 + $0x388] sm:$0xff] %v450_v50  ;;  %v452_v51 = vld [vmem:[%s5932_s11 + $0xe40] sm:$0xff]  ;;  %v454_v52 = vld [vmem:[%s5932_s11 + $0xe48] sm:$0xff] }
  0x4e   : > { %v456_v53 = vld [vmem:[%s5932_s11 + $0xe80] sm:$0xff]  ;;  %453 = vst [vmem:[%s5940_s12 + $0x390] sm:$0xff] %v452_v51  ;;  %455 = vst [vmem:[%s5940_s12 + $0x398] sm:$0xff] %v454_v52  ;;  %v458_v54 = vld [vmem:[%s5932_s11 + $0xe88] sm:$0xff] }
  0x4f   : > { %457 = vst [vmem:[%s5940_s12 + $0x3a0] sm:$0xff] %v456_v53  ;;  %v460_v55 = vld [vmem:[%s5932_s11 + $0xec0] sm:$0xff]  ;;  %v462_v56 = vld [vmem:[%s5932_s11 + $0xec8] sm:$0xff]  ;;  %459 = vst [vmem:[%s5940_s12 + $0x3a8] sm:$0xff] %v458_v54 }
  0x50   : > { %461 = vst [vmem:[%s5940_s12 + $0x3b0] sm:$0xff] %v460_v55  ;;  %463 = vst [vmem:[%s5940_s12 + $0x3b8] sm:$0xff] %v462_v56  ;;  %v464_v57 = vld [vmem:[%s5932_s11 + $0xf00] sm:$0xff]  ;;  %v466_v58 = vld [vmem:[%s5932_s11 + $0xf08] sm:$0xff] }
  0x51   : > { %v468_v59 = vld [vmem:[%s5932_s11 + $0xf40] sm:$0xff]  ;;  %465 = vst [vmem:[%s5940_s12 + $0x3c0] sm:$0xff] %v464_v57  ;;  %467 = vst [vmem:[%s5940_s12 + $0x3c8] sm:$0xff] %v466_v58  ;;  %v470_v60 = vld [vmem:[%s5932_s11 + $0xf48] sm:$0xff] }
  0x52   : > { %469 = vst [vmem:[%s5940_s12 + $0x3d0] sm:$0xff] %v468_v59  ;;  %v472_v61 = vld [vmem:[%s5932_s11 + $0xf80] sm:$0xff]  ;;  %v474_v62 = vld [vmem:[%s5932_s11 + $0xf88] sm:$0xff]  ;;  %471 = vst [vmem:[%s5940_s12 + $0x3d8] sm:$0xff] %v470_v60 }
  0x53   : > { %473 = vst [vmem:[%s5940_s12 + $0x3e0] sm:$0xff] %v472_v61  ;;  %475 = vst [vmem:[%s5940_s12 + $0x3e8] sm:$0xff] %v474_v62  ;;  %v476_v63 = vld [vmem:[%s5932_s11 + $0xfc0] sm:$0xff]  ;;  %v478_v0 = vld [vmem:[%s5932_s11 + $0xfc8] sm:$0xff] }
  0x54   : > { %v480_v1 = vld [vmem:[%s5932_s11 + $0x1000] sm:$0xff]  ;;  %477 = vst [vmem:[%s5940_s12 + $0x3f0] sm:$0xff] %v476_v63  ;;  %479 = vst [vmem:[%s5940_s12 + $0x3f8] sm:$0xff] %v478_v0  ;;  %v482_v2 = vld [vmem:[%s5932_s11 + $0x1008] sm:$0xff] }
  0x55   : > { %481 = vst [vmem:[%s5940_s12 + $0x400] sm:$0xff] %v480_v1  ;;  %v484_v3 = vld [vmem:[%s5932_s11 + $0x1040] sm:$0xff]  ;;  %v486_v4 = vld [vmem:[%s5932_s11 + $0x1048] sm:$0xff]  ;;  %483 = vst [vmem:[%s5940_s12 + $0x408] sm:$0xff] %v482_v2 }
  0x56   : > { %485 = vst [vmem:[%s5940_s12 + $0x410] sm:$0xff] %v484_v3  ;;  %487 = vst [vmem:[%s5940_s12 + $0x418] sm:$0xff] %v486_v4  ;;  %v488_v5 = vld [vmem:[%s5932_s11 + $0x1080] sm:$0xff]  ;;  %v490_v6 = vld [vmem:[%s5932_s11 + $0x1088] sm:$0xff] }
  0x57   : > { %v492_v7 = vld [vmem:[%s5932_s11 + $0x10c0] sm:$0xff]  ;;  %489 = vst [vmem:[%s5940_s12 + $0x420] sm:$0xff] %v488_v5  ;;  %491 = vst [vmem:[%s5940_s12 + $0x428] sm:$0xff] %v490_v6  ;;  %v494_v8 = vld [vmem:[%s5932_s11 + $0x10c8] sm:$0xff] }
  0x58   : > { %493 = vst [vmem:[%s5940_s12 + $0x430] sm:$0xff] %v492_v7  ;;  %v496_v9 = vld [vmem:[%s5932_s11 + $0x1100] sm:$0xff]  ;;  %v498_v10 = vld [vmem:[%s5932_s11 + $0x1108] sm:$0xff]  ;;  %495 = vst [vmem:[%s5940_s12 + $0x438] sm:$0xff] %v494_v8 }
  0x59   : > { %497 = vst [vmem:[%s5940_s12 + $0x440] sm:$0xff] %v496_v9  ;;  %499 = vst [vmem:[%s5940_s12 + $0x448] sm:$0xff] %v498_v10  ;;  %v500_v11 = vld [vmem:[%s5932_s11 + $0x1140] sm:$0xff]  ;;  %v502_v12 = vld [vmem:[%s5932_s11 + $0x1148] sm:$0xff] }
  0x5a   : > { %v504_v13 = vld [vmem:[%s5932_s11 + $0x1180] sm:$0xff]  ;;  %501 = vst [vmem:[%s5940_s12 + $0x450] sm:$0xff] %v500_v11  ;;  %503 = vst [vmem:[%s5940_s12 + $0x458] sm:$0xff] %v502_v12  ;;  %v506_v14 = vld [vmem:[%s5932_s11 + $0x1188] sm:$0xff] }
  0x5b   : > { %505 = vst [vmem:[%s5940_s12 + $0x460] sm:$0xff] %v504_v13  ;;  %v508_v15 = vld [vmem:[%s5932_s11 + $0x11c0] sm:$0xff]  ;;  %v510_v16 = vld [vmem:[%s5932_s11 + $0x11c8] sm:$0xff]  ;;  %507 = vst [vmem:[%s5940_s12 + $0x468] sm:$0xff] %v506_v14 }
  0x5c   : > { %509 = vst [vmem:[%s5940_s12 + $0x470] sm:$0xff] %v508_v15  ;;  %511 = vst [vmem:[%s5940_s12 + $0x478] sm:$0xff] %v510_v16  ;;  %v512_v17 = vld [vmem:[%s5932_s11 + $0x1200] sm:$0xff]  ;;  %v514_v18 = vld [vmem:[%s5932_s11 + $0x1208] sm:$0xff] }
  0x5d   : > { %v516_v19 = vld [vmem:[%s5932_s11 + $0x1240] sm:$0xff]  ;;  %513 = vst [vmem:[%s5940_s12 + $0x480] sm:$0xff] %v512_v17  ;;  %515 = vst [vmem:[%s5940_s12 + $0x488] sm:$0xff] %v514_v18  ;;  %v518_v20 = vld [vmem:[%s5932_s11 + $0x1248] sm:$0xff] }
  0x5e   : > { %517 = vst [vmem:[%s5940_s12 + $0x490] sm:$0xff] %v516_v19  ;;  %v520_v21 = vld [vmem:[%s5932_s11 + $0x1280] sm:$0xff]  ;;  %v522_v22 = vld [vmem:[%s5932_s11 + $0x1288] sm:$0xff]  ;;  %519 = vst [vmem:[%s5940_s12 + $0x498] sm:$0xff] %v518_v20 }
  0x5f   : > { %521 = vst [vmem:[%s5940_s12 + $0x4a0] sm:$0xff] %v520_v21  ;;  %523 = vst [vmem:[%s5940_s12 + $0x4a8] sm:$0xff] %v522_v22  ;;  %v524_v23 = vld [vmem:[%s5932_s11 + $0x12c0] sm:$0xff]  ;;  %v526_v24 = vld [vmem:[%s5932_s11 + $0x12c8] sm:$0xff] }
  0x60   : > { %v528_v25 = vld [vmem:[%s5932_s11 + $0x1300] sm:$0xff]  ;;  %525 = vst [vmem:[%s5940_s12 + $0x4b0] sm:$0xff] %v524_v23  ;;  %527 = vst [vmem:[%s5940_s12 + $0x4b8] sm:$0xff] %v526_v24  ;;  %v530_v26 = vld [vmem:[%s5932_s11 + $0x1308] sm:$0xff] }
  0x61   : > { %529 = vst [vmem:[%s5940_s12 + $0x4c0] sm:$0xff] %v528_v25  ;;  %v532_v27 = vld [vmem:[%s5932_s11 + $0x1340] sm:$0xff]  ;;  %v534_v28 = vld [vmem:[%s5932_s11 + $0x1348] sm:$0xff]  ;;  %531 = vst [vmem:[%s5940_s12 + $0x4c8] sm:$0xff] %v530_v26 }
  0x62   : > { %533 = vst [vmem:[%s5940_s12 + $0x4d0] sm:$0xff] %v532_v27  ;;  %535 = vst [vmem:[%s5940_s12 + $0x4d8] sm:$0xff] %v534_v28  ;;  %v536_v29 = vld [vmem:[%s5932_s11 + $0x1380] sm:$0xff]  ;;  %v538_v30 = vld [vmem:[%s5932_s11 + $0x1388] sm:$0xff] }
  0x63   : > { %v540_v31 = vld [vmem:[%s5932_s11 + $0x13c0] sm:$0xff]  ;;  %537 = vst [vmem:[%s5940_s12 + $0x4e0] sm:$0xff] %v536_v29  ;;  %539 = vst [vmem:[%s5940_s12 + $0x4e8] sm:$0xff] %v538_v30  ;;  %v542_v32 = vld [vmem:[%s5932_s11 + $0x13c8] sm:$0xff] }
  0x64   : > { %541 = vst [vmem:[%s5940_s12 + $0x4f0] sm:$0xff] %v540_v31  ;;  %v544_v33 = vld [vmem:[%s5932_s11 + $0x1400] sm:$0xff]  ;;  %v546_v34 = vld [vmem:[%s5932_s11 + $0x1408] sm:$0xff]  ;;  %543 = vst [vmem:[%s5940_s12 + $0x4f8] sm:$0xff] %v542_v32 }
  0x65   : > { %545 = vst [vmem:[%s5940_s12 + $0x500] sm:$0xff] %v544_v33  ;;  %547 = vst [vmem:[%s5940_s12 + $0x508] sm:$0xff] %v546_v34  ;;  %v548_v35 = vld [vmem:[%s5932_s11 + $0x1440] sm:$0xff]  ;;  %v550_v36 = vld [vmem:[%s5932_s11 + $0x1448] sm:$0xff] }
  0x66   : > { %v552_v37 = vld [vmem:[%s5932_s11 + $0x1480] sm:$0xff]  ;;  %549 = vst [vmem:[%s5940_s12 + $0x510] sm:$0xff] %v548_v35  ;;  %551 = vst [vmem:[%s5940_s12 + $0x518] sm:$0xff] %v550_v36  ;;  %v554_v38 = vld [vmem:[%s5932_s11 + $0x1488] sm:$0xff] }
  0x67   : > { %553 = vst [vmem:[%s5940_s12 + $0x520] sm:$0xff] %v552_v37  ;;  %v556_v39 = vld [vmem:[%s5932_s11 + $0x14c0] sm:$0xff]  ;;  %v558_v40 = vld [vmem:[%s5932_s11 + $0x14c8] sm:$0xff]  ;;  %555 = vst [vmem:[%s5940_s12 + $0x528] sm:$0xff] %v554_v38 }
  0x68   : > { %557 = vst [vmem:[%s5940_s12 + $0x530] sm:$0xff] %v556_v39  ;;  %559 = vst [vmem:[%s5940_s12 + $0x538] sm:$0xff] %v558_v40  ;;  %v560_v41 = vld [vmem:[%s5932_s11 + $0x1500] sm:$0xff]  ;;  %v562_v42 = vld [vmem:[%s5932_s11 + $0x1508] sm:$0xff] }
  0x69   : > { %v564_v43 = vld [vmem:[%s5932_s11 + $0x1540] sm:$0xff]  ;;  %561 = vst [vmem:[%s5940_s12 + $0x540] sm:$0xff] %v560_v41  ;;  %563 = vst [vmem:[%s5940_s12 + $0x548] sm:$0xff] %v562_v42  ;;  %v566_v44 = vld [vmem:[%s5932_s11 + $0x1548] sm:$0xff] }
  0x6a   : > { %565 = vst [vmem:[%s5940_s12 + $0x550] sm:$0xff] %v564_v43  ;;  %v568_v45 = vld [vmem:[%s5932_s11 + $0x1580] sm:$0xff]  ;;  %v570_v46 = vld [vmem:[%s5932_s11 + $0x1588] sm:$0xff]  ;;  %567 = vst [vmem:[%s5940_s12 + $0x558] sm:$0xff] %v566_v44 }
  0x6b   : > { %569 = vst [vmem:[%s5940_s12 + $0x560] sm:$0xff] %v568_v45  ;;  %571 = vst [vmem:[%s5940_s12 + $0x568] sm:$0xff] %v570_v46  ;;  %v572_v47 = vld [vmem:[%s5932_s11 + $0x15c0] sm:$0xff]  ;;  %v574_v48 = vld [vmem:[%s5932_s11 + $0x15c8] sm:$0xff] }
  0x6c   : > { %v576_v49 = vld [vmem:[%s5932_s11 + $0x1600] sm:$0xff]  ;;  %573 = vst [vmem:[%s5940_s12 + $0x570] sm:$0xff] %v572_v47  ;;  %575 = vst [vmem:[%s5940_s12 + $0x578] sm:$0xff] %v574_v48  ;;  %v578_v50 = vld [vmem:[%s5932_s11 + $0x1608] sm:$0xff] }
  0x6d   : > { %577 = vst [vmem:[%s5940_s12 + $0x580] sm:$0xff] %v576_v49  ;;  %v580_v51 = vld [vmem:[%s5932_s11 + $0x1640] sm:$0xff]  ;;  %v582_v52 = vld [vmem:[%s5932_s11 + $0x1648] sm:$0xff]  ;;  %579 = vst [vmem:[%s5940_s12 + $0x588] sm:$0xff] %v578_v50 }
  0x6e   : > { %581 = vst [vmem:[%s5940_s12 + $0x590] sm:$0xff] %v580_v51  ;;  %583 = vst [vmem:[%s5940_s12 + $0x598] sm:$0xff] %v582_v52  ;;  %v584_v53 = vld [vmem:[%s5932_s11 + $0x1680] sm:$0xff]  ;;  %v586_v54 = vld [vmem:[%s5932_s11 + $0x1688] sm:$0xff] }
  0x6f   : > { %v588_v55 = vld [vmem:[%s5932_s11 + $0x16c0] sm:$0xff]  ;;  %585 = vst [vmem:[%s5940_s12 + $0x5a0] sm:$0xff] %v584_v53  ;;  %587 = vst [vmem:[%s5940_s12 + $0x5a8] sm:$0xff] %v586_v54  ;;  %v590_v56 = vld [vmem:[%s5932_s11 + $0x16c8] sm:$0xff] }
  0x70   : > { %589 = vst [vmem:[%s5940_s12 + $0x5b0] sm:$0xff] %v588_v55  ;;  %v592_v57 = vld [vmem:[%s5932_s11 + $0x1700] sm:$0xff]  ;;  %v594_v58 = vld [vmem:[%s5932_s11 + $0x1708] sm:$0xff]  ;;  %591 = vst [vmem:[%s5940_s12 + $0x5b8] sm:$0xff] %v590_v56 }
  0x71   : > { %593 = vst [vmem:[%s5940_s12 + $0x5c0] sm:$0xff] %v592_v57  ;;  %595 = vst [vmem:[%s5940_s12 + $0x5c8] sm:$0xff] %v594_v58  ;;  %v596_v59 = vld [vmem:[%s5932_s11 + $0x1740] sm:$0xff]  ;;  %v598_v60 = vld [vmem:[%s5932_s11 + $0x1748] sm:$0xff] }
  0x72   : > { %v600_v61 = vld [vmem:[%s5932_s11 + $0x1780] sm:$0xff]  ;;  %597 = vst [vmem:[%s5940_s12 + $0x5d0] sm:$0xff] %v596_v59  ;;  %599 = vst [vmem:[%s5940_s12 + $0x5d8] sm:$0xff] %v598_v60  ;;  %v602_v62 = vld [vmem:[%s5932_s11 + $0x1788] sm:$0xff] }
  0x73   : > { %601 = vst [vmem:[%s5940_s12 + $0x5e0] sm:$0xff] %v600_v61  ;;  %v604_v63 = vld [vmem:[%s5932_s11 + $0x17c0] sm:$0xff]  ;;  %v606_v0 = vld [vmem:[%s5932_s11 + $0x17c8] sm:$0xff]  ;;  %603 = vst [vmem:[%s5940_s12 + $0x5e8] sm:$0xff] %v602_v62 }
  0x74   : > { %605 = vst [vmem:[%s5940_s12 + $0x5f0] sm:$0xff] %v604_v63  ;;  %607 = vst [vmem:[%s5940_s12 + $0x5f8] sm:$0xff] %v606_v0  ;;  %v608_v1 = vld [vmem:[%s5932_s11 + $0x1800] sm:$0xff]  ;;  %v610_v2 = vld [vmem:[%s5932_s11 + $0x1808] sm:$0xff] }
  0x75   : > { %v612_v3 = vld [vmem:[%s5932_s11 + $0x1840] sm:$0xff]  ;;  %609 = vst [vmem:[%s5940_s12 + $0x600] sm:$0xff] %v608_v1  ;;  %611 = vst [vmem:[%s5940_s12 + $0x608] sm:$0xff] %v610_v2  ;;  %v614_v4 = vld [vmem:[%s5932_s11 + $0x1848] sm:$0xff] }
  0x76   : > { %613 = vst [vmem:[%s5940_s12 + $0x610] sm:$0xff] %v612_v3  ;;  %v616_v5 = vld [vmem:[%s5932_s11 + $0x1880] sm:$0xff]  ;;  %v618_v6 = vld [vmem:[%s5932_s11 + $0x1888] sm:$0xff]  ;;  %615 = vst [vmem:[%s5940_s12 + $0x618] sm:$0xff] %v614_v4 }
  0x77   : > { %617 = vst [vmem:[%s5940_s12 + $0x620] sm:$0xff] %v616_v5  ;;  %619 = vst [vmem:[%s5940_s12 + $0x628] sm:$0xff] %v618_v6  ;;  %v620_v7 = vld [vmem:[%s5932_s11 + $0x18c0] sm:$0xff]  ;;  %v622_v8 = vld [vmem:[%s5932_s11 + $0x18c8] sm:$0xff] }
  0x78   : > { %v624_v9 = vld [vmem:[%s5932_s11 + $0x1900] sm:$0xff]  ;;  %621 = vst [vmem:[%s5940_s12 + $0x630] sm:$0xff] %v620_v7  ;;  %623 = vst [vmem:[%s5940_s12 + $0x638] sm:$0xff] %v622_v8  ;;  %v626_v10 = vld [vmem:[%s5932_s11 + $0x1908] sm:$0xff] }
  0x79   : > { %625 = vst [vmem:[%s5940_s12 + $0x640] sm:$0xff] %v624_v9  ;;  %v628_v11 = vld [vmem:[%s5932_s11 + $0x1940] sm:$0xff]  ;;  %v630_v12 = vld [vmem:[%s5932_s11 + $0x1948] sm:$0xff]  ;;  %627 = vst [vmem:[%s5940_s12 + $0x648] sm:$0xff] %v626_v10 }
  0x7a   : > { %629 = vst [vmem:[%s5940_s12 + $0x650] sm:$0xff] %v628_v11  ;;  %631 = vst [vmem:[%s5940_s12 + $0x658] sm:$0xff] %v630_v12  ;;  %v632_v13 = vld [vmem:[%s5932_s11 + $0x1980] sm:$0xff]  ;;  %v634_v14 = vld [vmem:[%s5932_s11 + $0x1988] sm:$0xff] }
  0x7b   : > { %v636_v15 = vld [vmem:[%s5932_s11 + $0x19c0] sm:$0xff]  ;;  %633 = vst [vmem:[%s5940_s12 + $0x660] sm:$0xff] %v632_v13  ;;  %635 = vst [vmem:[%s5940_s12 + $0x668] sm:$0xff] %v634_v14  ;;  %v638_v16 = vld [vmem:[%s5932_s11 + $0x19c8] sm:$0xff] }
  0x7c   : > { %637 = vst [vmem:[%s5940_s12 + $0x670] sm:$0xff] %v636_v15  ;;  %v640_v17 = vld [vmem:[%s5932_s11 + $0x1a00] sm:$0xff]  ;;  %v642_v18 = vld [vmem:[%s5932_s11 + $0x1a08] sm:$0xff]  ;;  %639 = vst [vmem:[%s5940_s12 + $0x678] sm:$0xff] %v638_v16 }
  0x7d   : > { %641 = vst [vmem:[%s5940_s12 + $0x680] sm:$0xff] %v640_v17  ;;  %643 = vst [vmem:[%s5940_s12 + $0x688] sm:$0xff] %v642_v18  ;;  %v644_v19 = vld [vmem:[%s5932_s11 + $0x1a40] sm:$0xff]  ;;  %v646_v20 = vld [vmem:[%s5932_s11 + $0x1a48] sm:$0xff] }
  0x7e   : > { %v648_v21 = vld [vmem:[%s5932_s11 + $0x1a80] sm:$0xff]  ;;  %645 = vst [vmem:[%s5940_s12 + $0x690] sm:$0xff] %v644_v19  ;;  %647 = vst [vmem:[%s5940_s12 + $0x698] sm:$0xff] %v646_v20  ;;  %v650_v22 = vld [vmem:[%s5932_s11 + $0x1a88] sm:$0xff] }
  0x7f   : > { %649 = vst [vmem:[%s5940_s12 + $0x6a0] sm:$0xff] %v648_v21  ;;  %v652_v23 = vld [vmem:[%s5932_s11 + $0x1ac0] sm:$0xff]  ;;  %v654_v24 = vld [vmem:[%s5932_s11 + $0x1ac8] sm:$0xff]  ;;  %651 = vst [vmem:[%s5940_s12 + $0x6a8] sm:$0xff] %v650_v22 }
  0x80   : > { %653 = vst [vmem:[%s5940_s12 + $0x6b0] sm:$0xff] %v652_v23  ;;  %655 = vst [vmem:[%s5940_s12 + $0x6b8] sm:$0xff] %v654_v24  ;;  %v656_v25 = vld [vmem:[%s5932_s11 + $0x1b00] sm:$0xff]  ;;  %v658_v26 = vld [vmem:[%s5932_s11 + $0x1b08] sm:$0xff] }
  0x81   : > { %v660_v27 = vld [vmem:[%s5932_s11 + $0x1b40] sm:$0xff]  ;;  %657 = vst [vmem:[%s5940_s12 + $0x6c0] sm:$0xff] %v656_v25  ;;  %659 = vst [vmem:[%s5940_s12 + $0x6c8] sm:$0xff] %v658_v26  ;;  %v662_v28 = vld [vmem:[%s5932_s11 + $0x1b48] sm:$0xff] }
  0x82   : > { %661 = vst [vmem:[%s5940_s12 + $0x6d0] sm:$0xff] %v660_v27  ;;  %v664_v29 = vld [vmem:[%s5932_s11 + $0x1b80] sm:$0xff]  ;;  %v666_v30 = vld [vmem:[%s5932_s11 + $0x1b88] sm:$0xff]  ;;  %663 = vst [vmem:[%s5940_s12 + $0x6d8] sm:$0xff] %v662_v28 }
  0x83   : > { %665 = vst [vmem:[%s5940_s12 + $0x6e0] sm:$0xff] %v664_v29  ;;  %667 = vst [vmem:[%s5940_s12 + $0x6e8] sm:$0xff] %v666_v30  ;;  %v668_v31 = vld [vmem:[%s5932_s11 + $0x1bc0] sm:$0xff]  ;;  %v670_v32 = vld [vmem:[%s5932_s11 + $0x1bc8] sm:$0xff] }
  0x84   : > { %v672_v33 = vld [vmem:[%s5932_s11 + $0x1c00] sm:$0xff]  ;;  %669 = vst [vmem:[%s5940_s12 + $0x6f0] sm:$0xff] %v668_v31  ;;  %671 = vst [vmem:[%s5940_s12 + $0x6f8] sm:$0xff] %v670_v32  ;;  %v674_v34 = vld [vmem:[%s5932_s11 + $0x1c08] sm:$0xff] }
  0x85   : > { %673 = vst [vmem:[%s5940_s12 + $0x700] sm:$0xff] %v672_v33  ;;  %v676_v35 = vld [vmem:[%s5932_s11 + $0x1c40] sm:$0xff]  ;;  %v678_v36 = vld [vmem:[%s5932_s11 + $0x1c48] sm:$0xff]  ;;  %675 = vst [vmem:[%s5940_s12 + $0x708] sm:$0xff] %v674_v34 }
  0x86   : > { %677 = vst [vmem:[%s5940_s12 + $0x710] sm:$0xff] %v676_v35  ;;  %679 = vst [vmem:[%s5940_s12 + $0x718] sm:$0xff] %v678_v36  ;;  %v680_v37 = vld [vmem:[%s5932_s11 + $0x1c80] sm:$0xff]  ;;  %v682_v38 = vld [vmem:[%s5932_s11 + $0x1c88] sm:$0xff] }
  0x87   : > { %v684_v39 = vld [vmem:[%s5932_s11 + $0x1cc0] sm:$0xff]  ;;  %681 = vst [vmem:[%s5940_s12 + $0x720] sm:$0xff] %v680_v37  ;;  %683 = vst [vmem:[%s5940_s12 + $0x728] sm:$0xff] %v682_v38  ;;  %v686_v40 = vld [vmem:[%s5932_s11 + $0x1cc8] sm:$0xff] }
  0x88   : > { %685 = vst [vmem:[%s5940_s12 + $0x730] sm:$0xff] %v684_v39  ;;  %v688_v41 = vld [vmem:[%s5932_s11 + $0x1d00] sm:$0xff]  ;;  %v690_v42 = vld [vmem:[%s5932_s11 + $0x1d08] sm:$0xff]  ;;  %687 = vst [vmem:[%s5940_s12 + $0x738] sm:$0xff] %v686_v40 }
  0x89   : > { %689 = vst [vmem:[%s5940_s12 + $0x740] sm:$0xff] %v688_v41  ;;  %691 = vst [vmem:[%s5940_s12 + $0x748] sm:$0xff] %v690_v42  ;;  %v692_v43 = vld [vmem:[%s5932_s11 + $0x1d40] sm:$0xff]  ;;  %v694_v44 = vld [vmem:[%s5932_s11 + $0x1d48] sm:$0xff] }
  0x8a   : > { %v696_v45 = vld [vmem:[%s5932_s11 + $0x1d80] sm:$0xff]  ;;  %693 = vst [vmem:[%s5940_s12 + $0x750] sm:$0xff] %v692_v43  ;;  %695 = vst [vmem:[%s5940_s12 + $0x758] sm:$0xff] %v694_v44  ;;  %v698_v46 = vld [vmem:[%s5932_s11 + $0x1d88] sm:$0xff] }
  0x8b   : > { %697 = vst [vmem:[%s5940_s12 + $0x760] sm:$0xff] %v696_v45  ;;  %v700_v47 = vld [vmem:[%s5932_s11 + $0x1dc0] sm:$0xff]  ;;  %v702_v48 = vld [vmem:[%s5932_s11 + $0x1dc8] sm:$0xff]  ;;  %699 = vst [vmem:[%s5940_s12 + $0x768] sm:$0xff] %v698_v46 }
  0x8c   : > { %701 = vst [vmem:[%s5940_s12 + $0x770] sm:$0xff] %v700_v47  ;;  %703 = vst [vmem:[%s5940_s12 + $0x778] sm:$0xff] %v702_v48  ;;  %v704_v49 = vld [vmem:[%s5932_s11 + $0x1e00] sm:$0xff]  ;;  %v706_v50 = vld [vmem:[%s5932_s11 + $0x1e08] sm:$0xff] }
  0x8d   : > { %v708_v51 = vld [vmem:[%s5932_s11 + $0x1e40] sm:$0xff]  ;;  %705 = vst [vmem:[%s5940_s12 + $0x780] sm:$0xff] %v704_v49  ;;  %707 = vst [vmem:[%s5940_s12 + $0x788] sm:$0xff] %v706_v50  ;;  %v710_v52 = vld [vmem:[%s5932_s11 + $0x1e48] sm:$0xff] }
  0x8e   : > { %709 = vst [vmem:[%s5940_s12 + $0x790] sm:$0xff] %v708_v51  ;;  %v712_v53 = vld [vmem:[%s5932_s11 + $0x1e80] sm:$0xff]  ;;  %v714_v54 = vld [vmem:[%s5932_s11 + $0x1e88] sm:$0xff]  ;;  %711 = vst [vmem:[%s5940_s12 + $0x798] sm:$0xff] %v710_v52 }
  0x8f   : > { %713 = vst [vmem:[%s5940_s12 + $0x7a0] sm:$0xff] %v712_v53  ;;  %715 = vst [vmem:[%s5940_s12 + $0x7a8] sm:$0xff] %v714_v54  ;;  %v716_v55 = vld [vmem:[%s5932_s11 + $0x1ec0] sm:$0xff]  ;;  %v718_v56 = vld [vmem:[%s5932_s11 + $0x1ec8] sm:$0xff] }
  0x90   : > { %v720_v57 = vld [vmem:[%s5932_s11 + $0x1f00] sm:$0xff]  ;;  %717 = vst [vmem:[%s5940_s12 + $0x7b0] sm:$0xff] %v716_v55  ;;  %719 = vst [vmem:[%s5940_s12 + $0x7b8] sm:$0xff] %v718_v56  ;;  %v722_v58 = vld [vmem:[%s5932_s11 + $0x1f08] sm:$0xff] }
  0x91   : > { %721 = vst [vmem:[%s5940_s12 + $0x7c0] sm:$0xff] %v720_v57  ;;  %v724_v59 = vld [vmem:[%s5932_s11 + $0x1f40] sm:$0xff]  ;;  %v726_v60 = vld [vmem:[%s5932_s11 + $0x1f48] sm:$0xff]  ;;  %723 = vst [vmem:[%s5940_s12 + $0x7c8] sm:$0xff] %v722_v58 }
  0x92   : > { %725 = vst [vmem:[%s5940_s12 + $0x7d0] sm:$0xff] %v724_v59  ;;  %727 = vst [vmem:[%s5940_s12 + $0x7d8] sm:$0xff] %v726_v60  ;;  %v728_v61 = vld [vmem:[%s5932_s11 + $0x1f80] sm:$0xff]  ;;  %v730_v62 = vld [vmem:[%s5932_s11 + $0x1f88] sm:$0xff] }
  0x93   : > { %v732_v63 = vld [vmem:[%s5932_s11 + $0x1fc0] sm:$0xff]  ;;  %729 = vst [vmem:[%s5940_s12 + $0x7e0] sm:$0xff] %v728_v61  ;;  %731 = vst [vmem:[%s5940_s12 + $0x7e8] sm:$0xff] %v730_v62  ;;  %v734_v0 = vld [vmem:[%s5932_s11 + $0x1fc8] sm:$0xff] }
  0x94   : > { %733 = vst [vmem:[%s5940_s12 + $0x7f0] sm:$0xff] %v732_v63  ;;  %v736_v1 = vld [vmem:[%s5932_s11 + $0x2000] sm:$0xff]  ;;  %v738_v2 = vld [vmem:[%s5932_s11 + $0x2008] sm:$0xff]  ;;  %735 = vst [vmem:[%s5940_s12 + $0x7f8] sm:$0xff] %v734_v0 }
  0x95   : > { %737 = vst [vmem:[%s5940_s12 + $0x800] sm:$0xff] %v736_v1  ;;  %739 = vst [vmem:[%s5940_s12 + $0x808] sm:$0xff] %v738_v2  ;;  %v740_v3 = vld [vmem:[%s5932_s11 + $0x2040] sm:$0xff]  ;;  %v742_v4 = vld [vmem:[%s5932_s11 + $0x2048] sm:$0xff] }
  0x96   : > { %v744_v5 = vld [vmem:[%s5932_s11 + $0x2080] sm:$0xff]  ;;  %741 = vst [vmem:[%s5940_s12 + $0x810] sm:$0xff] %v740_v3  ;;  %743 = vst [vmem:[%s5940_s12 + $0x818] sm:$0xff] %v742_v4  ;;  %v746_v6 = vld [vmem:[%s5932_s11 + $0x2088] sm:$0xff] }
  0x97   : > { %745 = vst [vmem:[%s5940_s12 + $0x820] sm:$0xff] %v744_v5  ;;  %v748_v7 = vld [vmem:[%s5932_s11 + $0x20c0] sm:$0xff]  ;;  %v750_v8 = vld [vmem:[%s5932_s11 + $0x20c8] sm:$0xff]  ;;  %747 = vst [vmem:[%s5940_s12 + $0x828] sm:$0xff] %v746_v6 }
  0x98   : > { %749 = vst [vmem:[%s5940_s12 + $0x830] sm:$0xff] %v748_v7  ;;  %751 = vst [vmem:[%s5940_s12 + $0x838] sm:$0xff] %v750_v8  ;;  %v752_v9 = vld [vmem:[%s5932_s11 + $0x2100] sm:$0xff]  ;;  %v754_v10 = vld [vmem:[%s5932_s11 + $0x2108] sm:$0xff] }
  0x99   : > { %v756_v11 = vld [vmem:[%s5932_s11 + $0x2140] sm:$0xff]  ;;  %753 = vst [vmem:[%s5940_s12 + $0x840] sm:$0xff] %v752_v9  ;;  %755 = vst [vmem:[%s5940_s12 + $0x848] sm:$0xff] %v754_v10  ;;  %v758_v12 = vld [vmem:[%s5932_s11 + $0x2148] sm:$0xff] }
  0x9a   : > { %757 = vst [vmem:[%s5940_s12 + $0x850] sm:$0xff] %v756_v11  ;;  %v760_v13 = vld [vmem:[%s5932_s11 + $0x2180] sm:$0xff]  ;;  %v762_v14 = vld [vmem:[%s5932_s11 + $0x2188] sm:$0xff]  ;;  %759 = vst [vmem:[%s5940_s12 + $0x858] sm:$0xff] %v758_v12 }
  0x9b   : > { %761 = vst [vmem:[%s5940_s12 + $0x860] sm:$0xff] %v760_v13  ;;  %763 = vst [vmem:[%s5940_s12 + $0x868] sm:$0xff] %v762_v14  ;;  %v764_v15 = vld [vmem:[%s5932_s11 + $0x21c0] sm:$0xff]  ;;  %v766_v16 = vld [vmem:[%s5932_s11 + $0x21c8] sm:$0xff] }
  0x9c   : > { %v768_v17 = vld [vmem:[%s5932_s11 + $0x2200] sm:$0xff]  ;;  %765 = vst [vmem:[%s5940_s12 + $0x870] sm:$0xff] %v764_v15  ;;  %767 = vst [vmem:[%s5940_s12 + $0x878] sm:$0xff] %v766_v16  ;;  %v770_v18 = vld [vmem:[%s5932_s11 + $0x2208] sm:$0xff] }
  0x9d   : > { %769 = vst [vmem:[%s5940_s12 + $0x880] sm:$0xff] %v768_v17  ;;  %v772_v19 = vld [vmem:[%s5932_s11 + $0x2240] sm:$0xff]  ;;  %v774_v20 = vld [vmem:[%s5932_s11 + $0x2248] sm:$0xff]  ;;  %771 = vst [vmem:[%s5940_s12 + $0x888] sm:$0xff] %v770_v18 }
  0x9e   : > { %773 = vst [vmem:[%s5940_s12 + $0x890] sm:$0xff] %v772_v19  ;;  %775 = vst [vmem:[%s5940_s12 + $0x898] sm:$0xff] %v774_v20  ;;  %v776_v21 = vld [vmem:[%s5932_s11 + $0x2280] sm:$0xff]  ;;  %v778_v22 = vld [vmem:[%s5932_s11 + $0x2288] sm:$0xff] }
  0x9f   : > { %v780_v23 = vld [vmem:[%s5932_s11 + $0x22c0] sm:$0xff]  ;;  %777 = vst [vmem:[%s5940_s12 + $0x8a0] sm:$0xff] %v776_v21  ;;  %779 = vst [vmem:[%s5940_s12 + $0x8a8] sm:$0xff] %v778_v22  ;;  %v782_v24 = vld [vmem:[%s5932_s11 + $0x22c8] sm:$0xff] }
  0xa0   : > { %781 = vst [vmem:[%s5940_s12 + $0x8b0] sm:$0xff] %v780_v23  ;;  %v784_v25 = vld [vmem:[%s5932_s11 + $0x2300] sm:$0xff]  ;;  %v786_v26 = vld [vmem:[%s5932_s11 + $0x2308] sm:$0xff]  ;;  %783 = vst [vmem:[%s5940_s12 + $0x8b8] sm:$0xff] %v782_v24 }
  0xa1   : > { %785 = vst [vmem:[%s5940_s12 + $0x8c0] sm:$0xff] %v784_v25  ;;  %787 = vst [vmem:[%s5940_s12 + $0x8c8] sm:$0xff] %v786_v26  ;;  %v788_v27 = vld [vmem:[%s5932_s11 + $0x2340] sm:$0xff]  ;;  %v790_v28 = vld [vmem:[%s5932_s11 + $0x2348] sm:$0xff] }
  0xa2   : > { %v792_v29 = vld [vmem:[%s5932_s11 + $0x2380] sm:$0xff]  ;;  %789 = vst [vmem:[%s5940_s12 + $0x8d0] sm:$0xff] %v788_v27  ;;  %791 = vst [vmem:[%s5940_s12 + $0x8d8] sm:$0xff] %v790_v28  ;;  %v794_v30 = vld [vmem:[%s5932_s11 + $0x2388] sm:$0xff] }
  0xa3   : > { %793 = vst [vmem:[%s5940_s12 + $0x8e0] sm:$0xff] %v792_v29  ;;  %v796_v31 = vld [vmem:[%s5932_s11 + $0x23c0] sm:$0xff]  ;;  %v798_v32 = vld [vmem:[%s5932_s11 + $0x23c8] sm:$0xff]  ;;  %795 = vst [vmem:[%s5940_s12 + $0x8e8] sm:$0xff] %v794_v30 }
  0xa4   : > { %797 = vst [vmem:[%s5940_s12 + $0x8f0] sm:$0xff] %v796_v31  ;;  %799 = vst [vmem:[%s5940_s12 + $0x8f8] sm:$0xff] %v798_v32  ;;  %v800_v33 = vld [vmem:[%s5932_s11 + $0x2400] sm:$0xff]  ;;  %v802_v34 = vld [vmem:[%s5932_s11 + $0x2408] sm:$0xff] }
  0xa5   : > { %v804_v35 = vld [vmem:[%s5932_s11 + $0x2440] sm:$0xff]  ;;  %801 = vst [vmem:[%s5940_s12 + $0x900] sm:$0xff] %v800_v33  ;;  %803 = vst [vmem:[%s5940_s12 + $0x908] sm:$0xff] %v802_v34  ;;  %v806_v36 = vld [vmem:[%s5932_s11 + $0x2448] sm:$0xff] }
  0xa6   : > { %805 = vst [vmem:[%s5940_s12 + $0x910] sm:$0xff] %v804_v35  ;;  %v808_v37 = vld [vmem:[%s5932_s11 + $0x2480] sm:$0xff]  ;;  %v810_v38 = vld [vmem:[%s5932_s11 + $0x2488] sm:$0xff]  ;;  %807 = vst [vmem:[%s5940_s12 + $0x918] sm:$0xff] %v806_v36 }
  0xa7   : > { %809 = vst [vmem:[%s5940_s12 + $0x920] sm:$0xff] %v808_v37  ;;  %811 = vst [vmem:[%s5940_s12 + $0x928] sm:$0xff] %v810_v38  ;;  %v812_v39 = vld [vmem:[%s5932_s11 + $0x24c0] sm:$0xff]  ;;  %v814_v40 = vld [vmem:[%s5932_s11 + $0x24c8] sm:$0xff] }
  0xa8   : > { %v816_v41 = vld [vmem:[%s5932_s11 + $0x2500] sm:$0xff]  ;;  %813 = vst [vmem:[%s5940_s12 + $0x930] sm:$0xff] %v812_v39  ;;  %815 = vst [vmem:[%s5940_s12 + $0x938] sm:$0xff] %v814_v40  ;;  %v818_v42 = vld [vmem:[%s5932_s11 + $0x2508] sm:$0xff] }
  0xa9   : > { %817 = vst [vmem:[%s5940_s12 + $0x940] sm:$0xff] %v816_v41  ;;  %v820_v43 = vld [vmem:[%s5932_s11 + $0x2540] sm:$0xff]  ;;  %v822_v44 = vld [vmem:[%s5932_s11 + $0x2548] sm:$0xff]  ;;  %819 = vst [vmem:[%s5940_s12 + $0x948] sm:$0xff] %v818_v42 }
  0xaa   : > { %821 = vst [vmem:[%s5940_s12 + $0x950] sm:$0xff] %v820_v43  ;;  %823 = vst [vmem:[%s5940_s12 + $0x958] sm:$0xff] %v822_v44  ;;  %v824_v45 = vld [vmem:[%s5932_s11 + $0x2580] sm:$0xff]  ;;  %v826_v46 = vld [vmem:[%s5932_s11 + $0x2588] sm:$0xff] }
  0xab   : > { %v828_v47 = vld [vmem:[%s5932_s11 + $0x25c0] sm:$0xff]  ;;  %825 = vst [vmem:[%s5940_s12 + $0x960] sm:$0xff] %v824_v45  ;;  %827 = vst [vmem:[%s5940_s12 + $0x968] sm:$0xff] %v826_v46  ;;  %v830_v48 = vld [vmem:[%s5932_s11 + $0x25c8] sm:$0xff] }
  0xac   : > { %829 = vst [vmem:[%s5940_s12 + $0x970] sm:$0xff] %v828_v47  ;;  %v832_v49 = vld [vmem:[%s5932_s11 + $0x2600] sm:$0xff]  ;;  %v834_v50 = vld [vmem:[%s5932_s11 + $0x2608] sm:$0xff]  ;;  %831 = vst [vmem:[%s5940_s12 + $0x978] sm:$0xff] %v830_v48 }
  0xad   : > { %833 = vst [vmem:[%s5940_s12 + $0x980] sm:$0xff] %v832_v49  ;;  %835 = vst [vmem:[%s5940_s12 + $0x988] sm:$0xff] %v834_v50  ;;  %v836_v51 = vld [vmem:[%s5932_s11 + $0x2640] sm:$0xff]  ;;  %v838_v52 = vld [vmem:[%s5932_s11 + $0x2648] sm:$0xff] }
  0xae   : > { %v840_v53 = vld [vmem:[%s5932_s11 + $0x2680] sm:$0xff]  ;;  %837 = vst [vmem:[%s5940_s12 + $0x990] sm:$0xff] %v836_v51  ;;  %839 = vst [vmem:[%s5940_s12 + $0x998] sm:$0xff] %v838_v52  ;;  %v842_v54 = vld [vmem:[%s5932_s11 + $0x2688] sm:$0xff] }
  0xaf   : > { %841 = vst [vmem:[%s5940_s12 + $0x9a0] sm:$0xff] %v840_v53  ;;  %v844_v55 = vld [vmem:[%s5932_s11 + $0x26c0] sm:$0xff]  ;;  %v846_v56 = vld [vmem:[%s5932_s11 + $0x26c8] sm:$0xff]  ;;  %843 = vst [vmem:[%s5940_s12 + $0x9a8] sm:$0xff] %v842_v54 }
  0xb0   : > { %845 = vst [vmem:[%s5940_s12 + $0x9b0] sm:$0xff] %v844_v55  ;;  %847 = vst [vmem:[%s5940_s12 + $0x9b8] sm:$0xff] %v846_v56  ;;  %v848_v57 = vld [vmem:[%s5932_s11 + $0x2700] sm:$0xff]  ;;  %v850_v58 = vld [vmem:[%s5932_s11 + $0x2708] sm:$0xff] }
  0xb1   : > { %v852_v59 = vld [vmem:[%s5932_s11 + $0x2740] sm:$0xff]  ;;  %849 = vst [vmem:[%s5940_s12 + $0x9c0] sm:$0xff] %v848_v57  ;;  %851 = vst [vmem:[%s5940_s12 + $0x9c8] sm:$0xff] %v850_v58  ;;  %v854_v60 = vld [vmem:[%s5932_s11 + $0x2748] sm:$0xff] }
  0xb2   : > { %853 = vst [vmem:[%s5940_s12 + $0x9d0] sm:$0xff] %v852_v59  ;;  %v856_v61 = vld [vmem:[%s5932_s11 + $0x2780] sm:$0xff]  ;;  %v858_v62 = vld [vmem:[%s5932_s11 + $0x2788] sm:$0xff]  ;;  %855 = vst [vmem:[%s5940_s12 + $0x9d8] sm:$0xff] %v854_v60 }
  0xb3   : > { %857 = vst [vmem:[%s5940_s12 + $0x9e0] sm:$0xff] %v856_v61  ;;  %859 = vst [vmem:[%s5940_s12 + $0x9e8] sm:$0xff] %v858_v62  ;;  %v860_v63 = vld [vmem:[%s5932_s11 + $0x27c0] sm:$0xff]  ;;  %v862_v0 = vld [vmem:[%s5932_s11 + $0x27c8] sm:$0xff] }
  0xb4   : > { %v864_v1 = vld [vmem:[%s5932_s11 + $0x2800] sm:$0xff]  ;;  %861 = vst [vmem:[%s5940_s12 + $0x9f0] sm:$0xff] %v860_v63  ;;  %863 = vst [vmem:[%s5940_s12 + $0x9f8] sm:$0xff] %v862_v0  ;;  %v866_v2 = vld [vmem:[%s5932_s11 + $0x2808] sm:$0xff] }
  0xb5   : > { %865 = vst [vmem:[%s5940_s12 + $0xa00] sm:$0xff] %v864_v1  ;;  %v868_v3 = vld [vmem:[%s5932_s11 + $0x2840] sm:$0xff]  ;;  %v870_v4 = vld [vmem:[%s5932_s11 + $0x2848] sm:$0xff]  ;;  %867 = vst [vmem:[%s5940_s12 + $0xa08] sm:$0xff] %v866_v2 }
  0xb6   : > { %869 = vst [vmem:[%s5940_s12 + $0xa10] sm:$0xff] %v868_v3  ;;  %871 = vst [vmem:[%s5940_s12 + $0xa18] sm:$0xff] %v870_v4  ;;  %v872_v5 = vld [vmem:[%s5932_s11 + $0x2880] sm:$0xff]  ;;  %v874_v6 = vld [vmem:[%s5932_s11 + $0x2888] sm:$0xff] }
  0xb7   : > { %v876_v7 = vld [vmem:[%s5932_s11 + $0x28c0] sm:$0xff]  ;;  %873 = vst [vmem:[%s5940_s12 + $0xa20] sm:$0xff] %v872_v5  ;;  %875 = vst [vmem:[%s5940_s12 + $0xa28] sm:$0xff] %v874_v6  ;;  %v878_v8 = vld [vmem:[%s5932_s11 + $0x28c8] sm:$0xff] }
  0xb8   : > { %877 = vst [vmem:[%s5940_s12 + $0xa30] sm:$0xff] %v876_v7  ;;  %v880_v9 = vld [vmem:[%s5932_s11 + $0x2900] sm:$0xff]  ;;  %v882_v10 = vld [vmem:[%s5932_s11 + $0x2908] sm:$0xff]  ;;  %879 = vst [vmem:[%s5940_s12 + $0xa38] sm:$0xff] %v878_v8 }
  0xb9   : > { %881 = vst [vmem:[%s5940_s12 + $0xa40] sm:$0xff] %v880_v9  ;;  %883 = vst [vmem:[%s5940_s12 + $0xa48] sm:$0xff] %v882_v10  ;;  %v884_v11 = vld [vmem:[%s5932_s11 + $0x2940] sm:$0xff]  ;;  %v886_v12 = vld [vmem:[%s5932_s11 + $0x2948] sm:$0xff] }
  0xba   : > { %v888_v13 = vld [vmem:[%s5932_s11 + $0x2980] sm:$0xff]  ;;  %885 = vst [vmem:[%s5940_s12 + $0xa50] sm:$0xff] %v884_v11  ;;  %887 = vst [vmem:[%s5940_s12 + $0xa58] sm:$0xff] %v886_v12  ;;  %v890_v14 = vld [vmem:[%s5932_s11 + $0x2988] sm:$0xff] }
  0xbb   : > { %889 = vst [vmem:[%s5940_s12 + $0xa60] sm:$0xff] %v888_v13  ;;  %v892_v15 = vld [vmem:[%s5932_s11 + $0x29c0] sm:$0xff]  ;;  %v894_v16 = vld [vmem:[%s5932_s11 + $0x29c8] sm:$0xff]  ;;  %891 = vst [vmem:[%s5940_s12 + $0xa68] sm:$0xff] %v890_v14 }
  0xbc   : > { %893 = vst [vmem:[%s5940_s12 + $0xa70] sm:$0xff] %v892_v15  ;;  %895 = vst [vmem:[%s5940_s12 + $0xa78] sm:$0xff] %v894_v16  ;;  %v896_v17 = vld [vmem:[%s5932_s11 + $0x2a00] sm:$0xff]  ;;  %v898_v18 = vld [vmem:[%s5932_s11 + $0x2a08] sm:$0xff] }
  0xbd   : > { %v900_v19 = vld [vmem:[%s5932_s11 + $0x2a40] sm:$0xff]  ;;  %897 = vst [vmem:[%s5940_s12 + $0xa80] sm:$0xff] %v896_v17  ;;  %899 = vst [vmem:[%s5940_s12 + $0xa88] sm:$0xff] %v898_v18  ;;  %v902_v20 = vld [vmem:[%s5932_s11 + $0x2a48] sm:$0xff] }
  0xbe   : > { %901 = vst [vmem:[%s5940_s12 + $0xa90] sm:$0xff] %v900_v19  ;;  %v904_v21 = vld [vmem:[%s5932_s11 + $0x2a80] sm:$0xff]  ;;  %v906_v22 = vld [vmem:[%s5932_s11 + $0x2a88] sm:$0xff]  ;;  %903 = vst [vmem:[%s5940_s12 + $0xa98] sm:$0xff] %v902_v20 }
  0xbf   : > { %905 = vst [vmem:[%s5940_s12 + $0xaa0] sm:$0xff] %v904_v21  ;;  %907 = vst [vmem:[%s5940_s12 + $0xaa8] sm:$0xff] %v906_v22  ;;  %v908_v23 = vld [vmem:[%s5932_s11 + $0x2ac0] sm:$0xff]  ;;  %v910_v24 = vld [vmem:[%s5932_s11 + $0x2ac8] sm:$0xff] }
  0xc0   : > { %v912_v25 = vld [vmem:[%s5932_s11 + $0x2b00] sm:$0xff]  ;;  %909 = vst [vmem:[%s5940_s12 + $0xab0] sm:$0xff] %v908_v23  ;;  %911 = vst [vmem:[%s5940_s12 + $0xab8] sm:$0xff] %v910_v24  ;;  %v914_v26 = vld [vmem:[%s5932_s11 + $0x2b08] sm:$0xff] }
  0xc1   : > { %913 = vst [vmem:[%s5940_s12 + $0xac0] sm:$0xff] %v912_v25  ;;  %v916_v27 = vld [vmem:[%s5932_s11 + $0x2b40] sm:$0xff]  ;;  %v918_v28 = vld [vmem:[%s5932_s11 + $0x2b48] sm:$0xff]  ;;  %915 = vst [vmem:[%s5940_s12 + $0xac8] sm:$0xff] %v914_v26 }
  0xc2   : > { %917 = vst [vmem:[%s5940_s12 + $0xad0] sm:$0xff] %v916_v27  ;;  %919 = vst [vmem:[%s5940_s12 + $0xad8] sm:$0xff] %v918_v28  ;;  %v920_v29 = vld [vmem:[%s5932_s11 + $0x2b80] sm:$0xff]  ;;  %v922_v30 = vld [vmem:[%s5932_s11 + $0x2b88] sm:$0xff] }
  0xc3   : > { %v924_v31 = vld [vmem:[%s5932_s11 + $0x2bc0] sm:$0xff]  ;;  %921 = vst [vmem:[%s5940_s12 + $0xae0] sm:$0xff] %v920_v29  ;;  %923 = vst [vmem:[%s5940_s12 + $0xae8] sm:$0xff] %v922_v30  ;;  %v926_v32 = vld [vmem:[%s5932_s11 + $0x2bc8] sm:$0xff] }
  0xc4   : > { %925 = vst [vmem:[%s5940_s12 + $0xaf0] sm:$0xff] %v924_v31  ;;  %v928_v33 = vld [vmem:[%s5932_s11 + $0x2c00] sm:$0xff]  ;;  %v930_v34 = vld [vmem:[%s5932_s11 + $0x2c08] sm:$0xff]  ;;  %927 = vst [vmem:[%s5940_s12 + $0xaf8] sm:$0xff] %v926_v32 }
  0xc5   : > { %929 = vst [vmem:[%s5940_s12 + $0xb00] sm:$0xff] %v928_v33  ;;  %931 = vst [vmem:[%s5940_s12 + $0xb08] sm:$0xff] %v930_v34  ;;  %v932_v35 = vld [vmem:[%s5932_s11 + $0x2c40] sm:$0xff]  ;;  %v934_v36 = vld [vmem:[%s5932_s11 + $0x2c48] sm:$0xff] }
  0xc6   : > { %v936_v37 = vld [vmem:[%s5932_s11 + $0x2c80] sm:$0xff]  ;;  %933 = vst [vmem:[%s5940_s12 + $0xb10] sm:$0xff] %v932_v35  ;;  %935 = vst [vmem:[%s5940_s12 + $0xb18] sm:$0xff] %v934_v36  ;;  %v938_v38 = vld [vmem:[%s5932_s11 + $0x2c88] sm:$0xff] }
  0xc7   : > { %937 = vst [vmem:[%s5940_s12 + $0xb20] sm:$0xff] %v936_v37  ;;  %v940_v39 = vld [vmem:[%s5932_s11 + $0x2cc0] sm:$0xff]  ;;  %v942_v40 = vld [vmem:[%s5932_s11 + $0x2cc8] sm:$0xff]  ;;  %939 = vst [vmem:[%s5940_s12 + $0xb28] sm:$0xff] %v938_v38 }
  0xc8   : > { %941 = vst [vmem:[%s5940_s12 + $0xb30] sm:$0xff] %v940_v39  ;;  %943 = vst [vmem:[%s5940_s12 + $0xb38] sm:$0xff] %v942_v40  ;;  %v944_v41 = vld [vmem:[%s5932_s11 + $0x2d00] sm:$0xff]  ;;  %v946_v42 = vld [vmem:[%s5932_s11 + $0x2d08] sm:$0xff] }
  0xc9   : > { %v948_v43 = vld [vmem:[%s5932_s11 + $0x2d40] sm:$0xff]  ;;  %945 = vst [vmem:[%s5940_s12 + $0xb40] sm:$0xff] %v944_v41  ;;  %947 = vst [vmem:[%s5940_s12 + $0xb48] sm:$0xff] %v946_v42  ;;  %v950_v44 = vld [vmem:[%s5932_s11 + $0x2d48] sm:$0xff] }
  0xca   : > { %949 = vst [vmem:[%s5940_s12 + $0xb50] sm:$0xff] %v948_v43  ;;  %v952_v45 = vld [vmem:[%s5932_s11 + $0x2d80] sm:$0xff]  ;;  %v954_v46 = vld [vmem:[%s5932_s11 + $0x2d88] sm:$0xff]  ;;  %951 = vst [vmem:[%s5940_s12 + $0xb58] sm:$0xff] %v950_v44 }
  0xcb   : > { %953 = vst [vmem:[%s5940_s12 + $0xb60] sm:$0xff] %v952_v45  ;;  %955 = vst [vmem:[%s5940_s12 + $0xb68] sm:$0xff] %v954_v46  ;;  %v956_v47 = vld [vmem:[%s5932_s11 + $0x2dc0] sm:$0xff]  ;;  %v958_v48 = vld [vmem:[%s5932_s11 + $0x2dc8] sm:$0xff] }
  0xcc   : > { %v960_v49 = vld [vmem:[%s5932_s11 + $0x2e00] sm:$0xff]  ;;  %957 = vst [vmem:[%s5940_s12 + $0xb70] sm:$0xff] %v956_v47  ;;  %959 = vst [vmem:[%s5940_s12 + $0xb78] sm:$0xff] %v958_v48  ;;  %v962_v50 = vld [vmem:[%s5932_s11 + $0x2e08] sm:$0xff] }
  0xcd   : > { %961 = vst [vmem:[%s5940_s12 + $0xb80] sm:$0xff] %v960_v49  ;;  %v964_v51 = vld [vmem:[%s5932_s11 + $0x2e40] sm:$0xff]  ;;  %v966_v52 = vld [vmem:[%s5932_s11 + $0x2e48] sm:$0xff]  ;;  %963 = vst [vmem:[%s5940_s12 + $0xb88] sm:$0xff] %v962_v50 }
  0xce   : > { %965 = vst [vmem:[%s5940_s12 + $0xb90] sm:$0xff] %v964_v51  ;;  %967 = vst [vmem:[%s5940_s12 + $0xb98] sm:$0xff] %v966_v52  ;;  %v968_v53 = vld [vmem:[%s5932_s11 + $0x2e80] sm:$0xff]  ;;  %v970_v54 = vld [vmem:[%s5932_s11 + $0x2e88] sm:$0xff] }
  0xcf   : > { %v972_v55 = vld [vmem:[%s5932_s11 + $0x2ec0] sm:$0xff]  ;;  %969 = vst [vmem:[%s5940_s12 + $0xba0] sm:$0xff] %v968_v53  ;;  %971 = vst [vmem:[%s5940_s12 + $0xba8] sm:$0xff] %v970_v54  ;;  %v974_v56 = vld [vmem:[%s5932_s11 + $0x2ec8] sm:$0xff] }
  0xd0   : > { %973 = vst [vmem:[%s5940_s12 + $0xbb0] sm:$0xff] %v972_v55  ;;  %v976_v57 = vld [vmem:[%s5932_s11 + $0x2f00] sm:$0xff]  ;;  %v978_v58 = vld [vmem:[%s5932_s11 + $0x2f08] sm:$0xff]  ;;  %975 = vst [vmem:[%s5940_s12 + $0xbb8] sm:$0xff] %v974_v56 }
  0xd1   : > { %977 = vst [vmem:[%s5940_s12 + $0xbc0] sm:$0xff] %v976_v57  ;;  %979 = vst [vmem:[%s5940_s12 + $0xbc8] sm:$0xff] %v978_v58  ;;  %v980_v59 = vld [vmem:[%s5932_s11 + $0x2f40] sm:$0xff]  ;;  %v982_v60 = vld [vmem:[%s5932_s11 + $0x2f48] sm:$0xff] }
  0xd2   : > { %v984_v61 = vld [vmem:[%s5932_s11 + $0x2f80] sm:$0xff]  ;;  %981 = vst [vmem:[%s5940_s12 + $0xbd0] sm:$0xff] %v980_v59  ;;  %983 = vst [vmem:[%s5940_s12 + $0xbd8] sm:$0xff] %v982_v60  ;;  %v986_v62 = vld [vmem:[%s5932_s11 + $0x2f88] sm:$0xff] }
  0xd3   : > { %985 = vst [vmem:[%s5940_s12 + $0xbe0] sm:$0xff] %v984_v61  ;;  %v988_v63 = vld [vmem:[%s5932_s11 + $0x2fc0] sm:$0xff]  ;;  %v990_v0 = vld [vmem:[%s5932_s11 + $0x2fc8] sm:$0xff]  ;;  %987 = vst [vmem:[%s5940_s12 + $0xbe8] sm:$0xff] %v986_v62 }
  0xd4   : > { %989 = vst [vmem:[%s5940_s12 + $0xbf0] sm:$0xff] %v988_v63  ;;  %991 = vst [vmem:[%s5940_s12 + $0xbf8] sm:$0xff] %v990_v0  ;;  %v992_v1 = vld [vmem:[%s5932_s11 + $0x3000] sm:$0xff]  ;;  %v994_v2 = vld [vmem:[%s5932_s11 + $0x3008] sm:$0xff] }
  0xd5   : > { %v996_v3 = vld [vmem:[%s5932_s11 + $0x3040] sm:$0xff]  ;;  %993 = vst [vmem:[%s5940_s12 + $0xc00] sm:$0xff] %v992_v1  ;;  %995 = vst [vmem:[%s5940_s12 + $0xc08] sm:$0xff] %v994_v2  ;;  %v998_v4 = vld [vmem:[%s5932_s11 + $0x3048] sm:$0xff] }
  0xd6   : > { %997 = vst [vmem:[%s5940_s12 + $0xc10] sm:$0xff] %v996_v3  ;;  %v1000_v5 = vld [vmem:[%s5932_s11 + $0x3080] sm:$0xff]  ;;  %v1002_v6 = vld [vmem:[%s5932_s11 + $0x3088] sm:$0xff]  ;;  %999 = vst [vmem:[%s5940_s12 + $0xc18] sm:$0xff] %v998_v4 }
  0xd7   : > { %1001 = vst [vmem:[%s5940_s12 + $0xc20] sm:$0xff] %v1000_v5  ;;  %1003 = vst [vmem:[%s5940_s12 + $0xc28] sm:$0xff] %v1002_v6  ;;  %v1004_v7 = vld [vmem:[%s5932_s11 + $0x30c0] sm:$0xff]  ;;  %v1006_v8 = vld [vmem:[%s5932_s11 + $0x30c8] sm:$0xff] }
  0xd8   : > { %v1008_v9 = vld [vmem:[%s5932_s11 + $0x3100] sm:$0xff]  ;;  %1005 = vst [vmem:[%s5940_s12 + $0xc30] sm:$0xff] %v1004_v7  ;;  %1007 = vst [vmem:[%s5940_s12 + $0xc38] sm:$0xff] %v1006_v8  ;;  %v1010_v10 = vld [vmem:[%s5932_s11 + $0x3108] sm:$0xff] }
  0xd9   : > { %1009 = vst [vmem:[%s5940_s12 + $0xc40] sm:$0xff] %v1008_v9  ;;  %v1012_v11 = vld [vmem:[%s5932_s11 + $0x3140] sm:$0xff]  ;;  %v1014_v12 = vld [vmem:[%s5932_s11 + $0x3148] sm:$0xff]  ;;  %1011 = vst [vmem:[%s5940_s12 + $0xc48] sm:$0xff] %v1010_v10 }
  0xda   : > { %1013 = vst [vmem:[%s5940_s12 + $0xc50] sm:$0xff] %v1012_v11  ;;  %1015 = vst [vmem:[%s5940_s12 + $0xc58] sm:$0xff] %v1014_v12  ;;  %v1016_v13 = vld [vmem:[%s5932_s11 + $0x3180] sm:$0xff]  ;;  %v1018_v14 = vld [vmem:[%s5932_s11 + $0x3188] sm:$0xff] }
  0xdb   : > { %v1020_v15 = vld [vmem:[%s5932_s11 + $0x31c0] sm:$0xff]  ;;  %1017 = vst [vmem:[%s5940_s12 + $0xc60] sm:$0xff] %v1016_v13  ;;  %1019 = vst [vmem:[%s5940_s12 + $0xc68] sm:$0xff] %v1018_v14  ;;  %v1022_v16 = vld [vmem:[%s5932_s11 + $0x31c8] sm:$0xff] }
  0xdc   : > { %1021 = vst [vmem:[%s5940_s12 + $0xc70] sm:$0xff] %v1020_v15  ;;  %v1024_v17 = vld [vmem:[%s5932_s11 + $0x3200] sm:$0xff]  ;;  %v1026_v18 = vld [vmem:[%s5932_s11 + $0x3208] sm:$0xff]  ;;  %1023 = vst [vmem:[%s5940_s12 + $0xc78] sm:$0xff] %v1022_v16 }
  0xdd   : > { %1025 = vst [vmem:[%s5940_s12 + $0xc80] sm:$0xff] %v1024_v17  ;;  %1027 = vst [vmem:[%s5940_s12 + $0xc88] sm:$0xff] %v1026_v18  ;;  %v1028_v19 = vld [vmem:[%s5932_s11 + $0x3240] sm:$0xff]  ;;  %v1030_v20 = vld [vmem:[%s5932_s11 + $0x3248] sm:$0xff] }
  0xde   : > { %v1032_v21 = vld [vmem:[%s5932_s11 + $0x3280] sm:$0xff]  ;;  %1029 = vst [vmem:[%s5940_s12 + $0xc90] sm:$0xff] %v1028_v19  ;;  %1031 = vst [vmem:[%s5940_s12 + $0xc98] sm:$0xff] %v1030_v20  ;;  %v1034_v22 = vld [vmem:[%s5932_s11 + $0x3288] sm:$0xff] }
  0xdf   : > { %1033 = vst [vmem:[%s5940_s12 + $0xca0] sm:$0xff] %v1032_v21  ;;  %v1036_v23 = vld [vmem:[%s5932_s11 + $0x32c0] sm:$0xff]  ;;  %v1038_v24 = vld [vmem:[%s5932_s11 + $0x32c8] sm:$0xff]  ;;  %1035 = vst [vmem:[%s5940_s12 + $0xca8] sm:$0xff] %v1034_v22 }
  0xe0   : > { %1037 = vst [vmem:[%s5940_s12 + $0xcb0] sm:$0xff] %v1036_v23  ;;  %1039 = vst [vmem:[%s5940_s12 + $0xcb8] sm:$0xff] %v1038_v24  ;;  %v1040_v25 = vld [vmem:[%s5932_s11 + $0x3300] sm:$0xff]  ;;  %v1042_v26 = vld [vmem:[%s5932_s11 + $0x3308] sm:$0xff] }
  0xe1   : > { %v1044_v27 = vld [vmem:[%s5932_s11 + $0x3340] sm:$0xff]  ;;  %1041 = vst [vmem:[%s5940_s12 + $0xcc0] sm:$0xff] %v1040_v25  ;;  %1043 = vst [vmem:[%s5940_s12 + $0xcc8] sm:$0xff] %v1042_v26  ;;  %v1046_v28 = vld [vmem:[%s5932_s11 + $0x3348] sm:$0xff] }
  0xe2   : > { %1045 = vst [vmem:[%s5940_s12 + $0xcd0] sm:$0xff] %v1044_v27  ;;  %v1048_v29 = vld [vmem:[%s5932_s11 + $0x3380] sm:$0xff]  ;;  %v1050_v30 = vld [vmem:[%s5932_s11 + $0x3388] sm:$0xff]  ;;  %1047 = vst [vmem:[%s5940_s12 + $0xcd8] sm:$0xff] %v1046_v28 }
  0xe3   : > { %1049 = vst [vmem:[%s5940_s12 + $0xce0] sm:$0xff] %v1048_v29  ;;  %1051 = vst [vmem:[%s5940_s12 + $0xce8] sm:$0xff] %v1050_v30  ;;  %v1052_v31 = vld [vmem:[%s5932_s11 + $0x33c0] sm:$0xff]  ;;  %v1054_v32 = vld [vmem:[%s5932_s11 + $0x33c8] sm:$0xff] }
  0xe4   : > { %1053 = vst [vmem:[%s5940_s12 + $0xcf0] sm:$0xff] %v1052_v31  ;;  %1055 = vst [vmem:[%s5940_s12 + $0xcf8] sm:$0xff] %v1054_v32 }
  0xe5 PF: > { %p4621_p5 = scmp.ge.s32.totalorder %s5850_s25, 1  ;;  %p1068_p6 = scmp.lt.s32.totalorder %s5850_s25, 5 }
  0xe7   : > { %p1069_p7 = pnand %p4621_p5, %p1068_p6 }
  0xe8   : > { %s1075_s13 = sand.u32 (!%p1069_p7), 1, %s5842_s23   ;;  %v1530_v33 = vlaneseq (!%p1069_p7)  ;;  %v5852_v34 = vmov (!%p1069_p7), 1966171168   ;;  %v6776_v37 = vld [vmem:[%s7347_s0] sm:$0xff] (!%p1069_p7)  ;;  %s4622_s20 = sshll.u32 (!%p1069_p7), %s5912_s5, 2 }
  0xe9   : > { %1072 = sbr.rel (%p1069_p7) target bundleno = 1153 (0x481), region = 63  ;;  %v1554_v35 = vunpack.c.l.s4 (!%p1069_p7), %v5852_v34  ;;  %p1105_p8 = scmp.lt.s32.totalorder (!%p1069_p7), %s4622_s20, 15 }
  0xea   : > { %s5112_s14 = smul.u32 (!%p1069_p7), 3328, %s1075_s13  ;;  %v6771_v36 = vshrl.u32 (!%p1069_p7), %v1530_v33, 7  ;;  %p5039_p9 = scmp.ne.s32.totalorder (!%p1069_p7), %s5912_s5, 0 }
  0xeb   : > { %v1555_v38 = vunpack.c.0.s8 (!%p1069_p7), %v1554_v35 }
  0xec   : > { %s6778_s17 = scalar_lea.vmem (!%p1069_p7), [#allocation5], %s5112_s14 }
  0xed   : > { %v5143_v39 = vld [vmem:[%s6778_s17 + $0x4] ss:$16 sps:$4 sm:$0xff] (!%p1069_p7)   ;;  %v5145_v40 = vld [vmem:[%s6778_s17 + $0xc] ss:$16 sps:$4 sm:$0xff] (!%p1069_p7)   ;;  %v6783_v41 = vsub.s32 (!%p1069_p7), %v1555_v38, %v6771_v36  ;;  %v5147_v42 = vld [vmem:[%s6778_s17] ss:$16 sps:$4 sm:$0xff] (!%p1069_p7)  }
  0xee   : > { %3733 = vmatprep.subr.bf16.mxu0 (!%p1069_p7), %v5143_v39  ;;  %v5148_v43 = vld [vmem:[%s6778_s17 + $0x8] ss:$16 sps:$4 sm:$0xff] (!%p1069_p7)   ;;  %4020 = vmatprep.subr.bf16.mxu1 (!%p1069_p7), %v5145_v40  ;;  %v5149_v44 = vld [vmem:[%s6778_s17 + $0x24] ss:$16 sps:$4 sm:$0xff] (!%p1069_p7)   ;;  %v5151_v46 = vld [vmem:[%s6778_s17 + $0x2c] ss:$16 sps:$4 sm:$0xff] (!%p1069_p7)  }
  0xef   : > { %v6790_v45 = vrot.slane (!%p1069_p7), %v6776_v37, %v6783_v41  ;;  %3734 = vmatpush1.bf16.msra.mxu0 (!%p1069_p7), %v5147_v42  ;;  %4021 = vmatpush1.bf16.msra.mxu1 (!%p1069_p7), %v5148_v43  ;;  %v5153_v47 = vld [vmem:[%s6778_s17 + $0x20] ss:$16 sps:$4 sm:$0xff] (!%p1069_p7)   ;;  %v5154_v48 = vld [vmem:[%s6778_s17 + $0x28] ss:$16 sps:$4 sm:$0xff] (!%p1069_p7)   ;;  %v5155_v50 = vld [vmem:[%s6778_s17 + $0x44] ss:$16 sps:$4 sm:$0xff] (!%p1069_p7)  }
  0xf0   : > { %3735 = vmatprep.subr.bf16.mxu0 %v5149_v44  ;;  %4022 = vmatprep.subr.bf16.mxu1 %v5151_v46  ;;  %v5157_v51 = vld [vmem:[%s6778_s17 + $0x4c] ss:$16 sps:$4 sm:$0xff]   ;;  %v5159_v52 = vld [vmem:[%s6778_s17 + $0x40] ss:$16 sps:$4 sm:$0xff]   ;;  %v5160_v53 = vld [vmem:[%s6778_s17 + $0x48] ss:$16 sps:$4 sm:$0xff]  }
  0xf1   : > { %v1567_v49 = vcombine.high %v6790_v45, %v6790_v45  ;;  %v5161_v55 = vld [vmem:[%s6778_s17 + $0x64] ss:$16 sps:$4 sm:$0xff]   ;;  %v5163_v56 = vld [vmem:[%s6778_s17 + $0x6c] ss:$16 sps:$4 sm:$0xff]   ;;  %v5165_v57 = vld [vmem:[%s6778_s17 + $0x60] ss:$16 sps:$4 sm:$0xff]  }
  0xf2   : > { %v5166_v58 = vld [vmem:[%s6778_s17 + $0x68] ss:$16 sps:$4 sm:$0xff]   ;;  %v5167_v59 = vld [vmem:[%s6778_s17 + $0x84] ss:$16 sps:$4 sm:$0xff]   ;;  %v5169_v60 = vld [vmem:[%s6778_s17 + $0x8c] ss:$16 sps:$4 sm:$0xff]  }
  0xf3   : > { %v6802_v54 = vrot.slane %v1567_v49, %v6783_v41  ;;  %3736 = vmatpush1.bf16.msra.mxu0 %v5153_v47  ;;  %4023 = vmatpush1.bf16.msra.mxu1 %v5154_v48  ;;  %v5171_v61 = vld [vmem:[%s6778_s17 + $0x80] ss:$16 sps:$4 sm:$0xff]   ;;  %v5172_v62 = vld [vmem:[%s6778_s17 + $0x88] ss:$16 sps:$4 sm:$0xff]   ;;  %v5173_v63 = vld [vmem:[%s6778_s17 + $0xa4] ss:$16 sps:$4 sm:$0xff]  }
  0xf4   : > { %3737 = vmatprep.subr.bf16.mxu0 %v5155_v50  ;;  %4024 = vmatprep.subr.bf16.mxu1 %v5157_v51  ;;  %v5175_v0 = vld [vmem:[%s6778_s17 + $0xac] ss:$16 sps:$4 sm:$0xff]   ;;  %v5177_v1 = vld [vmem:[%s6778_s17 + $0xa0] ss:$16 sps:$4 sm:$0xff]   ;;  %v5178_v2 = vld [vmem:[%s6778_s17 + $0xa8] ss:$16 sps:$4 sm:$0xff]   ;;  %v6864_v51 = vrot.slane %v6790_v45, %v6783_v41 }
  0xf5   : > { %3765 = vmatprep.mubr.bf16.mxu0 %v6802_v54  ;;  %4052 = vmatprep.mubr.bf16.mxu1 %v6802_v54  ;;  %v5179_v3 = vld [vmem:[%s6778_s17 + $0xc4] ss:$16 sps:$4 sm:$0xff]   ;;  %v5181_v4 = vld [vmem:[%s6778_s17 + $0xcc] ss:$16 sps:$4 sm:$0xff]   ;;  %v5183_v5 = vld [vmem:[%s6778_s17 + $0xc0] ss:$16 sps:$4 sm:$0xff]  }
  0xf6   : > { %v5184_v6 = vld [vmem:[%s6778_s17 + $0xc8] ss:$16 sps:$4 sm:$0xff]   ;;  %v5185_v7 = vld [vmem:[%s6778_s17 + $0xe4] ss:$16 sps:$4 sm:$0xff]   ;;  %v5187_v8 = vld [vmem:[%s6778_s17 + $0xec] ss:$16 sps:$4 sm:$0xff]  }
  0xf7   : > { %3738 = vmatpush1.bf16.msra.mxu0 %v5159_v52  ;;  %4025 = vmatpush1.bf16.msra.mxu1 %v5160_v53  ;;  %v5189_v9 = vld [vmem:[%s6778_s17 + $0xe0] ss:$16 sps:$4 sm:$0xff]   ;;  %v5190_v10 = vld [vmem:[%s6778_s17 + $0xe8] ss:$16 sps:$4 sm:$0xff]   ;;  %v5191_v11 = vld [vmem:[%s6778_s17 + $0x104] ss:$16 sps:$4 sm:$0xff]  }
  0xf8   : > { %3739 = vmatprep.subr.bf16.mxu0 %v5161_v55  ;;  %4026 = vmatprep.subr.bf16.mxu1 %v5163_v56  ;;  %v5193_v12 = vld [vmem:[%s6778_s17 + $0x10c] ss:$16 sps:$4 sm:$0xff]   ;;  %v5195_v13 = vld [vmem:[%s6778_s17 + $0x100] ss:$16 sps:$4 sm:$0xff]   ;;  %v5196_v14 = vld [vmem:[%s6778_s17 + $0x108] ss:$16 sps:$4 sm:$0xff]   ;;  %v1599_v55 = vcombine.high %v6802_v54, %v6802_v54 }
  0xf9   : > { %v5197_v15 = vld [vmem:[%s6778_s17 + $0x124] ss:$16 sps:$4 sm:$0xff]   ;;  %v5199_v16 = vld [vmem:[%s6778_s17 + $0x12c] ss:$16 sps:$4 sm:$0xff]   ;;  %v5201_v17 = vld [vmem:[%s6778_s17 + $0x120] ss:$16 sps:$4 sm:$0xff]  }
  0xfa   : > { %v5202_v18 = vld [vmem:[%s6778_s17 + $0x128] ss:$16 sps:$4 sm:$0xff]   ;;  %v5203_v19 = vld [vmem:[%s6778_s17 + $0x144] ss:$16 sps:$4 sm:$0xff]   ;;  %v5205_v20 = vld [vmem:[%s6778_s17 + $0x14c] ss:$16 sps:$4 sm:$0xff]  }
  0xfb   : > { %3740 = vmatpush1.bf16.msra.mxu0 %v5165_v57  ;;  %4027 = vmatpush1.bf16.msra.mxu1 %v5166_v58  ;;  %v5207_v21 = vld [vmem:[%s6778_s17 + $0x140] ss:$16 sps:$4 sm:$0xff]   ;;  %v5208_v22 = vld [vmem:[%s6778_s17 + $0x148] ss:$16 sps:$4 sm:$0xff]   ;;  %v5209_v23 = vld [vmem:[%s6778_s17 + $0x164] ss:$16 sps:$4 sm:$0xff]  }
  0xfc   : > { %3741 = vmatprep.subr.bf16.mxu0 %v5167_v59  ;;  %4028 = vmatprep.subr.bf16.mxu1 %v5169_v60  ;;  %v5211_v24 = vld [vmem:[%s6778_s17 + $0x16c] ss:$16 sps:$4 sm:$0xff]   ;;  %v5213_v25 = vld [vmem:[%s6778_s17 + $0x160] ss:$16 sps:$4 sm:$0xff]   ;;  %v5214_v26 = vld [vmem:[%s6778_s17 + $0x168] ss:$16 sps:$4 sm:$0xff]  }
  0xfd   : > { %v5215_v27 = vld [vmem:[%s6778_s17 + $0x184] ss:$16 sps:$4 sm:$0xff]   ;;  %v5217_v28 = vld [vmem:[%s6778_s17 + $0x18c] ss:$16 sps:$4 sm:$0xff]   ;;  %v5219_v29 = vld [vmem:[%s6778_s17 + $0x180] ss:$16 sps:$4 sm:$0xff]  }
  0xfe   : > { %v5220_v30 = vld [vmem:[%s6778_s17 + $0x188] ss:$16 sps:$4 sm:$0xff]   ;;  %v5221_v31 = vld [vmem:[%s6778_s17 + $0x1a4] ss:$16 sps:$4 sm:$0xff]   ;;  %v5223_v32 = vld [vmem:[%s6778_s17 + $0x1ac] ss:$16 sps:$4 sm:$0xff]  }
  0xff   : > { %3742 = vmatpush1.bf16.msra.mxu0 %v5171_v61  ;;  %4029 = vmatpush1.bf16.msra.mxu1 %v5172_v62  ;;  %v5225_v33 = vld [vmem:[%s6778_s17 + $0x1a0] ss:$16 sps:$4 sm:$0xff]   ;;  %v5226_v34 = vld [vmem:[%s6778_s17 + $0x1a8] ss:$16 sps:$4 sm:$0xff]   ;;  %v5227_v35 = vld [vmem:[%s6778_s17 + $0x1c4] ss:$16 sps:$4 sm:$0xff]  }
 0x100   : > { %3743 = vmatprep.subr.bf16.mxu0 %v5173_v63  ;;  %4030 = vmatprep.subr.bf16.mxu1 %v5175_v0  ;;  %v5229_v38 = vld [vmem:[%s6778_s17 + $0x1cc] ss:$16 sps:$4 sm:$0xff]   ;;  %v5231_v39 = vld [vmem:[%s6778_s17 + $0x1c0] ss:$16 sps:$4 sm:$0xff]   ;;  %v5232_v40 = vld [vmem:[%s6778_s17 + $0x1c8] ss:$16 sps:$4 sm:$0xff]  }
 0x101   : > { %v5233_v42 = vld [vmem:[%s6778_s17 + $0x1e4] ss:$16 sps:$4 sm:$0xff]   ;;  %v5235_v43 = vld [vmem:[%s6778_s17 + $0x1ec] ss:$16 sps:$4 sm:$0xff]   ;;  %v5237_v44 = vld [vmem:[%s6778_s17 + $0x1e0] ss:$16 sps:$4 sm:$0xff]  }
 0x102   : > { %v5238_v46 = vld [vmem:[%s6778_s17 + $0x1e8] ss:$16 sps:$4 sm:$0xff]   ;;  %v5241_v47 = vld [vmem:[%s6778_s17 + $0x204] ss:$16 sps:$4 sm:$0xff]   ;;  %v5244_v48 = vld [vmem:[%s6778_s17 + $0x20c] ss:$16 sps:$4 sm:$0xff]  }
 0x103   : > { %3744 = vmatpush1.bf16.msra.mxu0 %v5177_v1  ;;  %4031 = vmatpush1.bf16.msra.mxu1 %v5178_v2  ;;  %v5239_v49 = vld [vmem:[%s6778_s17 + $0x200] ss:$16 sps:$4 sm:$0xff]   ;;  %v5242_v50 = vld [vmem:[%s6778_s17 + $0x208] ss:$16 sps:$4 sm:$0xff]   ;;  %v5247_v52 = vld [vmem:[%s6778_s17 + $0x224] ss:$16 sps:$4 sm:$0xff]  }
 0x104   : > { %3745 = vmatprep.subr.bf16.mxu0 %v5179_v3  ;;  %4032 = vmatprep.subr.bf16.mxu1 %v5181_v4  ;;  %v5250_v53 = vld [vmem:[%s6778_s17 + $0x22c] ss:$16 sps:$4 sm:$0xff]   ;;  %v5245_v56 = vld [vmem:[%s6778_s17 + $0x220] ss:$16 sps:$4 sm:$0xff]   ;;  %v5248_v45 = vld [vmem:[%s6778_s17 + $0x228] ss:$16 sps:$4 sm:$0xff]  }
 0x105   : > { %v5253_v57 = vld [vmem:[%s6778_s17 + $0x244] ss:$16 sps:$4 sm:$0xff]   ;;  %v5256_v58 = vld [vmem:[%s6778_s17 + $0x24c] ss:$16 sps:$4 sm:$0xff]   ;;  %v5251_v54 = vld [vmem:[%s6778_s17 + $0x240] ss:$16 sps:$4 sm:$0xff]  }
 0x106   : > { %v5254_v59 = vld [vmem:[%s6778_s17 + $0x248] ss:$16 sps:$4 sm:$0xff]   ;;  %v5259_v60 = vld [vmem:[%s6778_s17 + $0x264] ss:$16 sps:$4 sm:$0xff]   ;;  %v5262_v61 = vld [vmem:[%s6778_s17 + $0x26c] ss:$16 sps:$4 sm:$0xff]  }
 0x107   : > { %3746 = vmatpush1.bf16.msra.mxu0 %v5183_v5  ;;  %4033 = vmatpush1.bf16.msra.mxu1 %v5184_v6  ;;  %v5257_v62 = vld [vmem:[%s6778_s17 + $0x260] ss:$16 sps:$4 sm:$0xff]   ;;  %v5260_v63 = vld [vmem:[%s6778_s17 + $0x268] ss:$16 sps:$4 sm:$0xff]   ;;  %v5265_v0 = vld [vmem:[%s6778_s17 + $0x284] ss:$16 sps:$4 sm:$0xff]  }
 0x108   : > { %3747 = vmatprep.subr.bf16.mxu0 %v5185_v7  ;;  %4034 = vmatprep.subr.bf16.mxu1 %v5187_v8  ;;  %v5268_v1 = vld [vmem:[%s6778_s17 + $0x28c] ss:$16 sps:$4 sm:$0xff]   ;;  %v5263_v2 = vld [vmem:[%s6778_s17 + $0x280] ss:$16 sps:$4 sm:$0xff]   ;;  %v5266_v3 = vld [vmem:[%s6778_s17 + $0x288] ss:$16 sps:$4 sm:$0xff]  }
 0x109   : > { %v5271_v4 = vld [vmem:[%s6778_s17 + $0x2a4] ss:$16 sps:$4 sm:$0xff]   ;;  %v5274_v5 = vld [vmem:[%s6778_s17 + $0x2ac] ss:$16 sps:$4 sm:$0xff]   ;;  %v5269_v6 = vld [vmem:[%s6778_s17 + $0x2a0] ss:$16 sps:$4 sm:$0xff]  }
 0x10a   : > { %v5272_v7 = vld [vmem:[%s6778_s17 + $0x2a8] ss:$16 sps:$4 sm:$0xff]   ;;  %v5277_v8 = vld [vmem:[%s6778_s17 + $0x2c4] ss:$16 sps:$4 sm:$0xff]   ;;  %s7358_s20 = smov (!%p1105_p8, %s4622_s20), 15 }
 0x10b   : > { %3748 = vmatpush1.bf16.msra.mxu0 %v5189_v9  ;;  %4035 = vmatpush1.bf16.msra.mxu1 %v5190_v10  ;;  %v5280_v9 = vld [vmem:[%s6778_s17 + $0x2cc] ss:$16 sps:$4 sm:$0xff]   ;;  %v5275_v10 = vld [vmem:[%s6778_s17 + $0x2c0] ss:$16 sps:$4 sm:$0xff]   ;;  %s1107_s23 = scalar_lea.vmem %s7349_s2, %s7358_s20 }
 0x10c   : > { %3749 = vmatprep.subr.bf16.mxu0 %v5191_v11  ;;  %4036 = vmatprep.subr.bf16.mxu1 %v5193_v12  ;;  %v5278_v11 = vld [vmem:[%s6778_s17 + $0x2c8] ss:$16 sps:$4 sm:$0xff]   ;;  %v5283_v12 = vld [vmem:[%s6778_s17 + $0x2e4] ss:$16 sps:$4 sm:$0xff]  }
 0x10f   : > { %3750 = vmatpush1.bf16.msra.mxu0 %v5195_v13  ;;  %4037 = vmatpush1.bf16.msra.mxu1 %v5196_v14  ;;  %v5286_v13 = vld [vmem:[%s6778_s17 + $0x2ec] ss:$16 sps:$4 sm:$0xff]   ;;  %v5281_v14 = vld [vmem:[%s6778_s17 + $0x2e0] ss:$16 sps:$4 sm:$0xff]  }
 0x110   : > { %3751 = vmatprep.subr.bf16.mxu0 %v5197_v15  ;;  %4038 = vmatprep.subr.bf16.mxu1 %v5199_v16  ;;  %v5284_v15 = vld [vmem:[%s6778_s17 + $0x2e8] ss:$16 sps:$4 sm:$0xff]   ;;  %v5289_v16 = vld [vmem:[%s6778_s17 + $0x304] ss:$16 sps:$4 sm:$0xff]  }
 0x113   : > { %3752 = vmatpush1.bf16.msra.mxu0 %v5201_v17  ;;  %4039 = vmatpush1.bf16.msra.mxu1 %v5202_v18  ;;  %v5292_v17 = vld [vmem:[%s6778_s17 + $0x30c] ss:$16 sps:$4 sm:$0xff]   ;;  %v5287_v18 = vld [vmem:[%s6778_s17 + $0x300] ss:$16 sps:$4 sm:$0xff]  }
 0x114   : > { %3753 = vmatprep.subr.bf16.mxu0 %v5203_v19  ;;  %4040 = vmatprep.subr.bf16.mxu1 %v5205_v20  ;;  %v5290_v19 = vld [vmem:[%s6778_s17 + $0x308] ss:$16 sps:$4 sm:$0xff]   ;;  %v5295_v20 = vld [vmem:[%s6778_s17 + $0x324] ss:$16 sps:$4 sm:$0xff]  }
 0x117   : > { %3754 = vmatpush1.bf16.msra.mxu0 %v5207_v21  ;;  %4041 = vmatpush1.bf16.msra.mxu1 %v5208_v22  ;;  %v5298_v21 = vld [vmem:[%s6778_s17 + $0x32c] ss:$16 sps:$4 sm:$0xff]   ;;  %v5293_v22 = vld [vmem:[%s6778_s17 + $0x320] ss:$16 sps:$4 sm:$0xff]  }
 0x118   : > { %3755 = vmatprep.subr.bf16.mxu0 %v5209_v23  ;;  %4042 = vmatprep.subr.bf16.mxu1 %v5211_v24  ;;  %v5296_v23 = vld [vmem:[%s6778_s17 + $0x328] ss:$16 sps:$4 sm:$0xff]   ;;  %v5301_v24 = vld [vmem:[%s6778_s17 + $0x344] ss:$16 sps:$4 sm:$0xff]  }
 0x11b   : > { %3756 = vmatpush1.bf16.msra.mxu0 %v5213_v25  ;;  %4043 = vmatpush1.bf16.msra.mxu1 %v5214_v26  ;;  %v5304_v25 = vld [vmem:[%s6778_s17 + $0x34c] ss:$16 sps:$4 sm:$0xff]   ;;  %v5299_v26 = vld [vmem:[%s6778_s17 + $0x340] ss:$16 sps:$4 sm:$0xff]  }
 0x11c   : > { %3757 = vmatprep.subr.bf16.mxu0 %v5215_v27  ;;  %4044 = vmatprep.subr.bf16.mxu1 %v5217_v28  ;;  %v5302_v27 = vld [vmem:[%s6778_s17 + $0x348] ss:$16 sps:$4 sm:$0xff]   ;;  %v5307_v28 = vld [vmem:[%s6778_s17 + $0x364] ss:$16 sps:$4 sm:$0xff]  }
 0x11f   : > { %3758 = vmatpush1.bf16.msra.mxu0 %v5219_v29  ;;  %4045 = vmatpush1.bf16.msra.mxu1 %v5220_v30  ;;  %v5310_v29 = vld [vmem:[%s6778_s17 + $0x36c] ss:$16 sps:$4 sm:$0xff]   ;;  %v5305_v30 = vld [vmem:[%s6778_s17 + $0x360] ss:$16 sps:$4 sm:$0xff]  }
 0x120   : > { %3759 = vmatprep.subr.bf16.mxu0 %v5221_v31  ;;  %4046 = vmatprep.subr.bf16.mxu1 %v5223_v32  ;;  %v5308_v31 = vld [vmem:[%s6778_s17 + $0x368] ss:$16 sps:$4 sm:$0xff]   ;;  %v5313_v32 = vld [vmem:[%s6778_s17 + $0x384] ss:$16 sps:$4 sm:$0xff]  }
 0x123   : > { %3760 = vmatpush1.bf16.msra.mxu0 %v5225_v33  ;;  %4047 = vmatpush1.bf16.msra.mxu1 %v5226_v34  ;;  %v5316_v33 = vld [vmem:[%s6778_s17 + $0x38c] ss:$16 sps:$4 sm:$0xff]   ;;  %v5311_v34 = vld [vmem:[%s6778_s17 + $0x380] ss:$16 sps:$4 sm:$0xff]  }
 0x124   : > { %3761 = vmatprep.subr.bf16.mxu0 %v5227_v35  ;;  %4048 = vmatprep.subr.bf16.mxu1 %v5229_v38  ;;  %v5314_v35 = vld [vmem:[%s6778_s17 + $0x388] ss:$16 sps:$4 sm:$0xff]   ;;  %v5319_v38 = vld [vmem:[%s6778_s17 + $0x3a4] ss:$16 sps:$4 sm:$0xff]  }
 0x127   : > { %3762 = vmatpush1.bf16.msra.mxu0 %v5231_v39  ;;  %4049 = vmatpush1.bf16.msra.mxu1 %v5232_v40  ;;  %v5322_v39 = vld [vmem:[%s6778_s17 + $0x3ac] ss:$16 sps:$4 sm:$0xff]   ;;  %v5317_v40 = vld [vmem:[%s6778_s17 + $0x3a0] ss:$16 sps:$4 sm:$0xff]  }
 0x128   : > { %3763 = vmatprep.subr.bf16.mxu0 %v5233_v42  ;;  %4050 = vmatprep.subr.bf16.mxu1 %v5235_v43  ;;  %v5320_v42 = vld [vmem:[%s6778_s17 + $0x3a8] ss:$16 sps:$4 sm:$0xff]   ;;  %v5325_v43 = vld [vmem:[%s6778_s17 + $0x3c4] ss:$16 sps:$4 sm:$0xff]  }
 0x12b   : > { %3764 = vmatpush1.bf16.msra.mxu0 %v5237_v44  ;;  %4051 = vmatpush1.bf16.msra.mxu1 %v5238_v46  ;;  %v5328_v44 = vld [vmem:[%s6778_s17 + $0x3cc] ss:$16 sps:$4 sm:$0xff]   ;;  %v1552_v46 = vcombine.high %v6776_v37, %v6776_v37  ;;  %v5337_v37 = vld [vmem:[%s6778_s17 + $0x404] ss:$16 sps:$4 sm:$0xff]  }
 0x12c   : > { %3774 = vmatprep.subr.bf16.mxu0 %v5241_v47  ;;  %4061 = vmatprep.subr.bf16.mxu1 %v5244_v48  ;;  %v5323_v47 = vld [vmem:[%s6778_s17 + $0x3c0] ss:$16 sps:$4 sm:$0xff]   ;;  %v5326_v48 = vld [vmem:[%s6778_s17 + $0x3c8] ss:$16 sps:$4 sm:$0xff]  }
 0x12e   : > { %3766 = vmatmul.mubr.bf16.vlgmr.msra.gmra.mrb[0].mxu0 %v6864_v51  ;;  %4053 = vmatmul.mubr.bf16.vlgmr.msra.gmra.mrb[0].mxu1 %v6864_v51 }
 0x12f   : > { %3775 = vmatpush1.bf16.msra.mxu0 %v5239_v49  ;;  %4062 = vmatpush1.bf16.msra.mxu1 %v5242_v50  ;;  %v5331_v49 = vld [vmem:[%s6778_s17 + $0x3e4] ss:$16 sps:$4 sm:$0xff]   ;;  %v5334_v50 = vld [vmem:[%s6778_s17 + $0x3ec] ss:$16 sps:$4 sm:$0xff]  }
 0x130   : > { %3776 = vmatprep.subr.bf16.mxu0 %v5247_v52  ;;  %4063 = vmatprep.subr.bf16.mxu1 %v5250_v53  ;;  %v6931_v52 = vrot.slane %v1552_v46, %v6783_v41  ;;  %v5329_v53 = vld [vmem:[%s6778_s17 + $0x3e0] ss:$16 sps:$4 sm:$0xff]   ;;  %v5410_v46 = vld [vmem:[%s6778_s17 + $0x588] ss:$16 sps:$4 sm:$0xff]  }
 0x131   : > { %3806 = vmatprep.mubr.bf16.mxu0 %v1599_v55  ;;  %4093 = vmatprep.mubr.bf16.mxu1 %v1599_v55  ;;  %v5332_v55 = vld [vmem:[%s6778_s17 + $0x3e8] ss:$16 sps:$4 sm:$0xff]  }
 0x133   : > { %3777 = vmatpush1.bf16.msra.mxu0 %v5245_v56  ;;  %4064 = vmatpush1.bf16.msra.mxu1 %v5248_v45  ;;  %v5340_v56 = vld [vmem:[%s6778_s17 + $0x40c] ss:$16 sps:$4 sm:$0xff]   ;;  %v1568_v45 = vcombine.high %v6931_v52, %v6931_v52 }
 0x134   : > { %3778 = vmatprep.subr.bf16.mxu0 %v5253_v57  ;;  %4065 = vmatprep.subr.bf16.mxu1 %v5256_v58  ;;  %v5335_v57 = vld [vmem:[%s6778_s17 + $0x400] ss:$16 sps:$4 sm:$0xff]   ;;  %v5338_v58 = vld [vmem:[%s6778_s17 + $0x408] ss:$16 sps:$4 sm:$0xff]  }
 0x137   : > { %3779 = vmatpush1.bf16.msra.mxu0 %v5251_v54  ;;  %4066 = vmatpush1.bf16.msra.mxu1 %v5254_v59  ;;  %v1597_v54 = vcombine.high %v6864_v51, %v6864_v51  ;;  %v5343_v59 = vld [vmem:[%s6778_s17 + $0x424] ss:$16 sps:$4 sm:$0xff]  }
 0x138   : > { %3780 = vmatprep.subr.bf16.mxu0 %v5259_v60  ;;  %4067 = vmatprep.subr.bf16.mxu1 %v5262_v61  ;;  %v5346_v60 = vld [vmem:[%s6778_s17 + $0x42c] ss:$16 sps:$4 sm:$0xff]   ;;  %v6946_v61 = vrot.slane %v1568_v45, %v6783_v41  ;;  %v5349_v51 = vld [vmem:[%s6778_s17 + $0x444] ss:$16 sps:$4 sm:$0xff]  }
 0x139   : > { %v5427_v45 = vld [vmem:[%s6778_s17 + $0x5e4] ss:$16 sps:$4 sm:$0xff]  }
 0x13b   : > { %3781 = vmatpush1.bf16.msra.mxu0 %v5257_v62  ;;  %4068 = vmatpush1.bf16.msra.mxu1 %v5260_v63  ;;  %v5341_v62 = vld [vmem:[%s6778_s17 + $0x420] ss:$16 sps:$4 sm:$0xff]   ;;  %v5344_v63 = vld [vmem:[%s6778_s17 + $0x428] ss:$16 sps:$4 sm:$0xff]  }
 0x13c   : > { %3782 = vmatprep.subr.bf16.mxu0 %v5265_v0  ;;  %4069 = vmatprep.subr.bf16.mxu1 %v5268_v1  ;;  %v5352_v0 = vld [vmem:[%s6778_s17 + $0x44c] ss:$16 sps:$4 sm:$0xff]   ;;  %v5347_v1 = vld [vmem:[%s6778_s17 + $0x440] ss:$16 sps:$4 sm:$0xff]  }
 0x13f   : > { %3783 = vmatpush1.bf16.msra.mxu0 %v5263_v2  ;;  %4070 = vmatpush1.bf16.msra.mxu1 %v5266_v3  ;;  %v5350_v2 = vld [vmem:[%s6778_s17 + $0x448] ss:$16 sps:$4 sm:$0xff]   ;;  %v5355_v3 = vld [vmem:[%s6778_s17 + $0x464] ss:$16 sps:$4 sm:$0xff]  }
 0x140   : > { %3784 = vmatprep.subr.bf16.mxu0 %v5271_v4  ;;  %4071 = vmatprep.subr.bf16.mxu1 %v5274_v5  ;;  %v5358_v4 = vld [vmem:[%s6778_s17 + $0x46c] ss:$16 sps:$4 sm:$0xff]   ;;  %v5353_v5 = vld [vmem:[%s6778_s17 + $0x460] ss:$16 sps:$4 sm:$0xff]  }
 0x143   : > { %3785 = vmatpush1.bf16.msra.mxu0 %v5269_v6  ;;  %4072 = vmatpush1.bf16.msra.mxu1 %v5272_v7  ;;  %v5356_v6 = vld [vmem:[%s6778_s17 + $0x468] ss:$16 sps:$4 sm:$0xff]   ;;  %v5361_v7 = vld [vmem:[%s6778_s17 + $0x484] ss:$16 sps:$4 sm:$0xff]  }
 0x144   : > { %3786 = vmatprep.subr.bf16.mxu0 %v5277_v8  ;;  %4073 = vmatprep.subr.bf16.mxu1 %v5280_v9  ;;  %v5364_v8 = vld [vmem:[%s6778_s17 + $0x48c] ss:$16 sps:$4 sm:$0xff]   ;;  %v5359_v9 = vld [vmem:[%s6778_s17 + $0x480] ss:$16 sps:$4 sm:$0xff]  }
 0x147   : > { %3787 = vmatpush1.bf16.msra.mxu0 %v5275_v10  ;;  %4074 = vmatpush1.bf16.msra.mxu1 %v5278_v11  ;;  %v5362_v10 = vld [vmem:[%s6778_s17 + $0x488] ss:$16 sps:$4 sm:$0xff]   ;;  %v5367_v11 = vld [vmem:[%s6778_s17 + $0x4a4] ss:$16 sps:$4 sm:$0xff]  }
 0x148   : > { %3788 = vmatprep.subr.bf16.mxu0 %v5283_v12  ;;  %4075 = vmatprep.subr.bf16.mxu1 %v5286_v13  ;;  %v5370_v12 = vld [vmem:[%s6778_s17 + $0x4ac] ss:$16 sps:$4 sm:$0xff]   ;;  %v5365_v13 = vld [vmem:[%s6778_s17 + $0x4a0] ss:$16 sps:$4 sm:$0xff]  }
 0x14b   : > { %3789 = vmatpush1.bf16.msra.mxu0 %v5281_v14  ;;  %4076 = vmatpush1.bf16.msra.mxu1 %v5284_v15  ;;  %v5368_v14 = vld [vmem:[%s6778_s17 + $0x4a8] ss:$16 sps:$4 sm:$0xff]   ;;  %v5373_v15 = vld [vmem:[%s6778_s17 + $0x4c4] ss:$16 sps:$4 sm:$0xff]  }
 0x14c   : > { %3790 = vmatprep.subr.bf16.mxu0 %v5289_v16  ;;  %4077 = vmatprep.subr.bf16.mxu1 %v5292_v17  ;;  %v5376_v16 = vld [vmem:[%s6778_s17 + $0x4cc] ss:$16 sps:$4 sm:$0xff]   ;;  %v5371_v17 = vld [vmem:[%s6778_s17 + $0x4c0] ss:$16 sps:$4 sm:$0xff]  }
 0x14f   : > { %3791 = vmatpush1.bf16.msra.mxu0 %v5287_v18  ;;  %4078 = vmatpush1.bf16.msra.mxu1 %v5290_v19  ;;  %v5374_v18 = vld [vmem:[%s6778_s17 + $0x4c8] ss:$16 sps:$4 sm:$0xff]   ;;  %v5379_v19 = vld [vmem:[%s6778_s17 + $0x4e4] ss:$16 sps:$4 sm:$0xff]  }
 0x150   : > { %3792 = vmatprep.subr.bf16.mxu0 %v5295_v20  ;;  %4079 = vmatprep.subr.bf16.mxu1 %v5298_v21  ;;  %v5382_v20 = vld [vmem:[%s6778_s17 + $0x4ec] ss:$16 sps:$4 sm:$0xff]   ;;  %v5377_v21 = vld [vmem:[%s6778_s17 + $0x4e0] ss:$16 sps:$4 sm:$0xff]  }
 0x153   : > { %3793 = vmatpush1.bf16.msra.mxu0 %v5293_v22  ;;  %4080 = vmatpush1.bf16.msra.mxu1 %v5296_v23  ;;  %v5380_v22 = vld [vmem:[%s6778_s17 + $0x4e8] ss:$16 sps:$4 sm:$0xff]   ;;  %v5385_v23 = vld [vmem:[%s6778_s17 + $0x504] ss:$16 sps:$4 sm:$0xff]  }
 0x154   : > { %3794 = vmatprep.subr.bf16.mxu0 %v5301_v24  ;;  %4081 = vmatprep.subr.bf16.mxu1 %v5304_v25  ;;  %v5388_v24 = vld [vmem:[%s6778_s17 + $0x50c] ss:$16 sps:$4 sm:$0xff]   ;;  %v5383_v25 = vld [vmem:[%s6778_s17 + $0x500] ss:$16 sps:$4 sm:$0xff]  }
 0x157   : > { %3795 = vmatpush1.bf16.msra.mxu0 %v5299_v26  ;;  %4082 = vmatpush1.bf16.msra.mxu1 %v5302_v27  ;;  %v5386_v26 = vld [vmem:[%s6778_s17 + $0x508] ss:$16 sps:$4 sm:$0xff]   ;;  %v5391_v27 = vld [vmem:[%s6778_s17 + $0x524] ss:$16 sps:$4 sm:$0xff]  }
 0x158   : > { %3796 = vmatprep.subr.bf16.mxu0 %v5307_v28  ;;  %4083 = vmatprep.subr.bf16.mxu1 %v5310_v29  ;;  %v5394_v28 = vld [vmem:[%s6778_s17 + $0x52c] ss:$16 sps:$4 sm:$0xff]   ;;  %v5389_v29 = vld [vmem:[%s6778_s17 + $0x520] ss:$16 sps:$4 sm:$0xff]  }
 0x15b   : > { %3797 = vmatpush1.bf16.msra.mxu0 %v5305_v30  ;;  %4084 = vmatpush1.bf16.msra.mxu1 %v5308_v31  ;;  %v5392_v30 = vld [vmem:[%s6778_s17 + $0x528] ss:$16 sps:$4 sm:$0xff]   ;;  %v5397_v31 = vld [vmem:[%s6778_s17 + $0x544] ss:$16 sps:$4 sm:$0xff]  }
 0x15c   : > { %3798 = vmatprep.subr.bf16.mxu0 %v5313_v32  ;;  %4085 = vmatprep.subr.bf16.mxu1 %v5316_v33  ;;  %v5400_v32 = vld [vmem:[%s6778_s17 + $0x54c] ss:$16 sps:$4 sm:$0xff]   ;;  %v5395_v33 = vld [vmem:[%s6778_s17 + $0x540] ss:$16 sps:$4 sm:$0xff]  }
 0x15f   : > { %3799 = vmatpush1.bf16.msra.mxu0 %v5311_v34  ;;  %4086 = vmatpush1.bf16.msra.mxu1 %v5314_v35  ;;  %v5398_v34 = vld [vmem:[%s6778_s17 + $0x548] ss:$16 sps:$4 sm:$0xff]   ;;  %v5403_v35 = vld [vmem:[%s6778_s17 + $0x564] ss:$16 sps:$4 sm:$0xff]  }
 0x160   : > { %3800 = vmatprep.subr.bf16.mxu0 %v5319_v38  ;;  %4087 = vmatprep.subr.bf16.mxu1 %v5322_v39  ;;  %v5406_v38 = vld [vmem:[%s6778_s17 + $0x56c] ss:$16 sps:$4 sm:$0xff]   ;;  %v5401_v39 = vld [vmem:[%s6778_s17 + $0x560] ss:$16 sps:$4 sm:$0xff]  }
 0x163   : > { %3801 = vmatpush1.bf16.msra.mxu0 %v5317_v40  ;;  %4088 = vmatpush1.bf16.msra.mxu1 %v5320_v42  ;;  %v5404_v40 = vld [vmem:[%s6778_s17 + $0x568] ss:$16 sps:$4 sm:$0xff]   ;;  %v5409_v42 = vld [vmem:[%s6778_s17 + $0x584] ss:$16 sps:$4 sm:$0xff]  }
 0x164   : > { %3802 = vmatprep.subr.bf16.mxu0 %v5325_v43  ;;  %4089 = vmatprep.subr.bf16.mxu1 %v5328_v44  ;;  %v5412_v43 = vld [vmem:[%s6778_s17 + $0x58c] ss:$16 sps:$4 sm:$0xff]   ;;  %v5407_v44 = vld [vmem:[%s6778_s17 + $0x580] ss:$16 sps:$4 sm:$0xff]  }
 0x167   : > { %3803 = vmatpush1.bf16.msra.mxu0 %v5323_v47  ;;  %4090 = vmatpush1.bf16.msra.mxu1 %v5326_v48  ;;  %v5415_v47 = vld [vmem:[%s6778_s17 + $0x5a4] ss:$16 sps:$4 sm:$0xff]   ;;  %v5418_v48 = vld [vmem:[%s6778_s17 + $0x5ac] ss:$16 sps:$4 sm:$0xff]  }
 0x168   : > { %3804 = vmatprep.subr.bf16.mxu0 %v5331_v49  ;;  %4091 = vmatprep.subr.bf16.mxu1 %v5334_v50  ;;  %v5413_v49 = vld [vmem:[%s6778_s17 + $0x5a0] ss:$16 sps:$4 sm:$0xff]   ;;  %v5416_v50 = vld [vmem:[%s6778_s17 + $0x5a8] ss:$16 sps:$4 sm:$0xff]  }
 0x16b   : > { %3805 = vmatpush1.bf16.msra.mxu0 %v5329_v53  ;;  %4092 = vmatpush1.bf16.msra.mxu1 %v5332_v55  ;;  %v5421_v53 = vld [vmem:[%s6778_s17 + $0x5c4] ss:$16 sps:$4 sm:$0xff]   ;;  %v5424_v55 = vld [vmem:[%s6778_s17 + $0x5cc] ss:$16 sps:$4 sm:$0xff]  }
 0x16c   : > { %3815 = vmatprep.subr.bf16.mxu0 %v5337_v37  ;;  %4102 = vmatprep.subr.bf16.mxu1 %v5340_v56  ;;  %v5419_v37 = vld [vmem:[%s6778_s17 + $0x5c0] ss:$16 sps:$4 sm:$0xff]   ;;  %v5422_v56 = vld [vmem:[%s6778_s17 + $0x5c8] ss:$16 sps:$4 sm:$0xff]  }
 0x16e   : > { %3807 = vmatmul.mubr.bf16.vlgmr.msra.gmra.mrb[0].mxu0 %v1597_v54  ;;  %4094 = vmatmul.mubr.bf16.vlgmr.msra.gmra.mrb[0].mxu1 %v1597_v54  ;;  %v5428_v54 = vld [vmem:[%s6778_s17 + $0x5e8] ss:$16 sps:$4 sm:$0xff]  }
 0x16f   : > { %3816 = vmatpush1.bf16.msra.mxu0 %v5335_v57  ;;  %4103 = vmatpush1.bf16.msra.mxu1 %v5338_v58  ;;  %v5430_v57 = vld [vmem:[%s6778_s17 + $0x5ec] ss:$16 sps:$4 sm:$0xff]   ;;  %v5425_v58 = vld [vmem:[%s6778_s17 + $0x5e0] ss:$16 sps:$4 sm:$0xff]  }
 0x170   : > { %3817 = vmatprep.subr.bf16.mxu0 %v5343_v59  ;;  %4104 = vmatprep.subr.bf16.mxu1 %v5346_v60  ;;  %v5434_v59 = vld [vmem:[%s6778_s17 + $0x604] ss:$16 sps:$4 sm:$0xff]   ;;  %v5437_v60 = vld [vmem:[%s6778_s17 + $0x60c] ss:$16 sps:$4 sm:$0xff]  }
 0x171   : > { %3847 = vmatprep.mubr.bf16.mxu0 %v6946_v61  ;;  %4134 = vmatprep.mubr.bf16.mxu1 %v6946_v61 }
 0x173   : > { %3818 = vmatpush1.bf16.msra.mxu0 %v5341_v62  ;;  %4105 = vmatpush1.bf16.msra.mxu1 %v5344_v63  ;;  %v5432_v62 = vld [vmem:[%s6778_s17 + $0x600] ss:$16 sps:$4 sm:$0xff]   ;;  %v5435_v63 = vld [vmem:[%s6778_s17 + $0x608] ss:$16 sps:$4 sm:$0xff]  }
 0x174   : > { %3819 = vmatprep.subr.bf16.mxu0 %v5349_v51  ;;  %4106 = vmatprep.subr.bf16.mxu1 %v5352_v0  ;;  %v7014_v51 = vrot.slane %v6931_v52, %v6783_v41  ;;  %v5440_v0 = vld [vmem:[%s6778_s17 + $0x624] ss:$16 sps:$4 sm:$0xff]   ;;  %v5441_v52 = vld [vmem:[%s6778_s17 + $0x628] ss:$16 sps:$4 sm:$0xff]  }
 0x177   : > { %3820 = vmatpush1.bf16.msra.mxu0 %v5347_v1  ;;  %4107 = vmatpush1.bf16.msra.mxu1 %v5350_v2  ;;  %v5443_v1 = vld [vmem:[%s6778_s17 + $0x62c] ss:$16 sps:$4 sm:$0xff]   ;;  %v1600_v2 = vcombine.high %v6946_v61, %v6946_v61  ;;  %v5444_v61 = vld [vmem:[%s6778_s17 + $0x640] ss:$16 sps:$4 sm:$0xff]  }
 0x178   : > { %3821 = vmatprep.subr.bf16.mxu0 %v5355_v3  ;;  %4108 = vmatprep.subr.bf16.mxu1 %v5358_v4  ;;  %v5438_v3 = vld [vmem:[%s6778_s17 + $0x620] ss:$16 sps:$4 sm:$0xff]   ;;  %v5446_v4 = vld [vmem:[%s6778_s17 + $0x644] ss:$16 sps:$4 sm:$0xff]  }
 0x17b   : > { %3822 = vmatpush1.bf16.msra.mxu0 %v5353_v5  ;;  %4109 = vmatpush1.bf16.msra.mxu1 %v5356_v6  ;;  %v5449_v5 = vld [vmem:[%s6778_s17 + $0x64c] ss:$16 sps:$4 sm:$0xff]   ;;  %v5447_v6 = vld [vmem:[%s6778_s17 + $0x648] ss:$16 sps:$4 sm:$0xff]  }
 0x17c   : > { %3823 = vmatprep.subr.bf16.mxu0 %v5361_v7  ;;  %4110 = vmatprep.subr.bf16.mxu1 %v5364_v8  ;;  %v5452_v7 = vld [vmem:[%s6778_s17 + $0x664] ss:$16 sps:$4 sm:$0xff]   ;;  %v5455_v8 = vld [vmem:[%s6778_s17 + $0x66c] ss:$16 sps:$4 sm:$0xff]  }
 0x17f   : > { %3824 = vmatpush1.bf16.msra.mxu0 %v5359_v9  ;;  %4111 = vmatpush1.bf16.msra.mxu1 %v5362_v10  ;;  %v5450_v9 = vld [vmem:[%s6778_s17 + $0x660] ss:$16 sps:$4 sm:$0xff]   ;;  %v5453_v10 = vld [vmem:[%s6778_s17 + $0x668] ss:$16 sps:$4 sm:$0xff]  }
 0x180   : > { %3825 = vmatprep.subr.bf16.mxu0 %v5367_v11  ;;  %4112 = vmatprep.subr.bf16.mxu1 %v5370_v12  ;;  %v5458_v11 = vld [vmem:[%s6778_s17 + $0x684] ss:$16 sps:$4 sm:$0xff]   ;;  %v5461_v12 = vld [vmem:[%s6778_s17 + $0x68c] ss:$16 sps:$4 sm:$0xff]  }
 0x183   : > { %3826 = vmatpush1.bf16.msra.mxu0 %v5365_v13  ;;  %4113 = vmatpush1.bf16.msra.mxu1 %v5368_v14  ;;  %v5456_v13 = vld [vmem:[%s6778_s17 + $0x680] ss:$16 sps:$4 sm:$0xff]   ;;  %v5459_v14 = vld [vmem:[%s6778_s17 + $0x688] ss:$16 sps:$4 sm:$0xff]  }
 0x184   : > { %3827 = vmatprep.subr.bf16.mxu0 %v5373_v15  ;;  %4114 = vmatprep.subr.bf16.mxu1 %v5376_v16  ;;  %v5464_v15 = vld [vmem:[%s6778_s17 + $0x6a4] ss:$16 sps:$4 sm:$0xff]   ;;  %v5467_v16 = vld [vmem:[%s6778_s17 + $0x6ac] ss:$16 sps:$4 sm:$0xff]  }
 0x187   : > { %3828 = vmatpush1.bf16.msra.mxu0 %v5371_v17  ;;  %4115 = vmatpush1.bf16.msra.mxu1 %v5374_v18  ;;  %v5462_v17 = vld [vmem:[%s6778_s17 + $0x6a0] ss:$16 sps:$4 sm:$0xff]   ;;  %v5465_v18 = vld [vmem:[%s6778_s17 + $0x6a8] ss:$16 sps:$4 sm:$0xff]  }
 0x188   : > { %3829 = vmatprep.subr.bf16.mxu0 %v5379_v19  ;;  %4116 = vmatprep.subr.bf16.mxu1 %v5382_v20  ;;  %v5470_v19 = vld [vmem:[%s6778_s17 + $0x6c4] ss:$16 sps:$4 sm:$0xff]   ;;  %v5473_v20 = vld [vmem:[%s6778_s17 + $0x6cc] ss:$16 sps:$4 sm:$0xff]  }
 0x18b   : > { %3830 = vmatpush1.bf16.msra.mxu0 %v5377_v21  ;;  %4117 = vmatpush1.bf16.msra.mxu1 %v5380_v22  ;;  %v5468_v21 = vld [vmem:[%s6778_s17 + $0x6c0] ss:$16 sps:$4 sm:$0xff]   ;;  %v5471_v22 = vld [vmem:[%s6778_s17 + $0x6c8] ss:$16 sps:$4 sm:$0xff]  }
 0x18c   : > { %3831 = vmatprep.subr.bf16.mxu0 %v5385_v23  ;;  %4118 = vmatprep.subr.bf16.mxu1 %v5388_v24  ;;  %v5476_v23 = vld [vmem:[%s6778_s17 + $0x6e4] ss:$16 sps:$4 sm:$0xff]   ;;  %v5479_v24 = vld [vmem:[%s6778_s17 + $0x6ec] ss:$16 sps:$4 sm:$0xff]  }
 0x18f   : > { %3832 = vmatpush1.bf16.msra.mxu0 %v5383_v25  ;;  %4119 = vmatpush1.bf16.msra.mxu1 %v5386_v26  ;;  %v5474_v25 = vld [vmem:[%s6778_s17 + $0x6e0] ss:$16 sps:$4 sm:$0xff]   ;;  %v5477_v26 = vld [vmem:[%s6778_s17 + $0x6e8] ss:$16 sps:$4 sm:$0xff]  }
 0x190   : > { %3833 = vmatprep.subr.bf16.mxu0 %v5391_v27  ;;  %4120 = vmatprep.subr.bf16.mxu1 %v5394_v28  ;;  %v5482_v27 = vld [vmem:[%s6778_s17 + $0x704] ss:$16 sps:$4 sm:$0xff]   ;;  %v5485_v28 = vld [vmem:[%s6778_s17 + $0x70c] ss:$16 sps:$4 sm:$0xff]  }
 0x193   : > { %3834 = vmatpush1.bf16.msra.mxu0 %v5389_v29  ;;  %4121 = vmatpush1.bf16.msra.mxu1 %v5392_v30  ;;  %v5480_v29 = vld [vmem:[%s6778_s17 + $0x700] ss:$16 sps:$4 sm:$0xff]   ;;  %v5483_v30 = vld [vmem:[%s6778_s17 + $0x708] ss:$16 sps:$4 sm:$0xff]  }
 0x194   : > { %3835 = vmatprep.subr.bf16.mxu0 %v5397_v31  ;;  %4122 = vmatprep.subr.bf16.mxu1 %v5400_v32  ;;  %v5488_v31 = vld [vmem:[%s6778_s17 + $0x724] ss:$16 sps:$4 sm:$0xff]   ;;  %v5491_v32 = vld [vmem:[%s6778_s17 + $0x72c] ss:$16 sps:$4 sm:$0xff]  }
 0x197   : > { %3836 = vmatpush1.bf16.msra.mxu0 %v5395_v33  ;;  %4123 = vmatpush1.bf16.msra.mxu1 %v5398_v34  ;;  %v5486_v33 = vld [vmem:[%s6778_s17 + $0x720] ss:$16 sps:$4 sm:$0xff]   ;;  %v5489_v34 = vld [vmem:[%s6778_s17 + $0x728] ss:$16 sps:$4 sm:$0xff]  }
 0x198   : > { %3837 = vmatprep.subr.bf16.mxu0 %v5403_v35  ;;  %4124 = vmatprep.subr.bf16.mxu1 %v5406_v38  ;;  %v5494_v35 = vld [vmem:[%s6778_s17 + $0x744] ss:$16 sps:$4 sm:$0xff]   ;;  %v5497_v38 = vld [vmem:[%s6778_s17 + $0x74c] ss:$16 sps:$4 sm:$0xff]  }
 0x19b   : > { %3838 = vmatpush1.bf16.msra.mxu0 %v5401_v39  ;;  %4125 = vmatpush1.bf16.msra.mxu1 %v5404_v40  ;;  %v5492_v39 = vld [vmem:[%s6778_s17 + $0x740] ss:$16 sps:$4 sm:$0xff]   ;;  %v5495_v40 = vld [vmem:[%s6778_s17 + $0x748] ss:$16 sps:$4 sm:$0xff]  }
 0x19c   : > { %3839 = vmatprep.subr.bf16.mxu0 %v5409_v42  ;;  %4126 = vmatprep.subr.bf16.mxu1 %v5412_v43  ;;  %v5500_v42 = vld [vmem:[%s6778_s17 + $0x764] ss:$16 sps:$4 sm:$0xff]   ;;  %v5503_v43 = vld [vmem:[%s6778_s17 + $0x76c] ss:$16 sps:$4 sm:$0xff]  }
 0x19f   : > { %3840 = vmatpush1.bf16.msra.mxu0 %v5407_v44  ;;  %4127 = vmatpush1.bf16.msra.mxu1 %v5410_v46  ;;  %v5498_v44 = vld [vmem:[%s6778_s17 + $0x760] ss:$16 sps:$4 sm:$0xff]   ;;  %v5501_v46 = vld [vmem:[%s6778_s17 + $0x768] ss:$16 sps:$4 sm:$0xff]  }
 0x1a0   : > { %3841 = vmatprep.subr.bf16.mxu0 %v5415_v47  ;;  %4128 = vmatprep.subr.bf16.mxu1 %v5418_v48  ;;  %v5506_v47 = vld [vmem:[%s6778_s17 + $0x784] ss:$16 sps:$4 sm:$0xff]   ;;  %v5509_v48 = vld [vmem:[%s6778_s17 + $0x78c] ss:$16 sps:$4 sm:$0xff]  }
 0x1a3   : > { %3842 = vmatpush1.bf16.msra.mxu0 %v5413_v49  ;;  %4129 = vmatpush1.bf16.msra.mxu1 %v5416_v50  ;;  %v5504_v49 = vld [vmem:[%s6778_s17 + $0x780] ss:$16 sps:$4 sm:$0xff]   ;;  %v5507_v50 = vld [vmem:[%s6778_s17 + $0x788] ss:$16 sps:$4 sm:$0xff]  }
 0x1a4   : > { %3843 = vmatprep.subr.bf16.mxu0 %v5421_v53  ;;  %4130 = vmatprep.subr.bf16.mxu1 %v5424_v55  ;;  %v5512_v53 = vld [vmem:[%s6778_s17 + $0x7a4] ss:$16 sps:$4 sm:$0xff]   ;;  %v5515_v55 = vld [vmem:[%s6778_s17 + $0x7ac] ss:$16 sps:$4 sm:$0xff]  }
 0x1a7   : > { %3844 = vmatpush1.bf16.msra.mxu0 %v5419_v37  ;;  %4131 = vmatpush1.bf16.msra.mxu1 %v5422_v56  ;;  %v5510_v37 = vld [vmem:[%s6778_s17 + $0x7a0] ss:$16 sps:$4 sm:$0xff]   ;;  %v5513_v56 = vld [vmem:[%s6778_s17 + $0x7a8] ss:$16 sps:$4 sm:$0xff]  }
 0x1a8   : > { %3845 = vmatprep.subr.bf16.mxu0 %v5427_v45  ;;  %4132 = vmatprep.subr.bf16.mxu1 %v5430_v57  ;;  %v5518_v45 = vld [vmem:[%s6778_s17 + $0x7c4] ss:$16 sps:$4 sm:$0xff]   ;;  %v5521_v57 = vld [vmem:[%s6778_s17 + $0x7cc] ss:$16 sps:$4 sm:$0xff]  }
 0x1ab   : > { %3846 = vmatpush1.bf16.msra.mxu0 %v5425_v58  ;;  %4133 = vmatpush1.bf16.msra.mxu1 %v5428_v54  ;;  %v5516_v58 = vld [vmem:[%s6778_s17 + $0x7c0] ss:$16 sps:$4 sm:$0xff]   ;;  %v7078_v54 = vld [vmem:[%s7347_s0 + $0x8] sm:$0x1f] }
 0x1ac   : > { %3856 = vmatprep.subr.bf16.mxu0 %v5434_v59  ;;  %4143 = vmatprep.subr.bf16.mxu1 %v5437_v60  ;;  %v5519_v59 = vld [vmem:[%s6778_s17 + $0x7c8] ss:$16 sps:$4 sm:$0xff]   ;;  %v5524_v60 = vld [vmem:[%s6778_s17 + $0x7e4] ss:$16 sps:$4 sm:$0xff]  }
 0x1ae   : > { %3848 = vmatmul.mubr.bf16.vlgmr.msra.gmra.mrb[0].mxu0 %v7014_v51  ;;  %4135 = vmatmul.mubr.bf16.vlgmr.msra.gmra.mrb[0].mxu1 %v7014_v51 }
 0x1af   : > { %3857 = vmatpush1.bf16.msra.mxu0 %v5432_v62  ;;  %4144 = vmatpush1.bf16.msra.mxu1 %v5435_v63  ;;  %v5527_v62 = vld [vmem:[%s6778_s17 + $0x7ec] ss:$16 sps:$4 sm:$0xff]   ;;  %v7085_v63 = vrot.slane %v7078_v54, %v6783_v41 }
 0x1b0   : > { %3858 = vmatprep.subr.bf16.mxu0 %v5440_v0  ;;  %4145 = vmatprep.subr.bf16.mxu1 %v5443_v1  ;;  %v5522_v0 = vld [vmem:[%s6778_s17 + $0x7e0] ss:$16 sps:$4 sm:$0xff]   ;;  %v5525_v1 = vld [vmem:[%s6778_s17 + $0x7e8] ss:$16 sps:$4 sm:$0xff]  }
 0x1b1   : > { %3888 = vmatprep.mubr.bf16.mxu0 %v1600_v2  ;;  %4175 = vmatprep.mubr.bf16.mxu1 %v1600_v2  ;;  %v5530_v2 = vld [vmem:[%s6778_s17 + $0x804] ss:$16 sps:$4 sm:$0xff]  }
 0x1b3   : > { %3859 = vmatpush1.bf16.msra.mxu0 %v5438_v3  ;;  %4146 = vmatpush1.bf16.msra.mxu1 %v5441_v52  ;;  %v5533_v3 = vld [vmem:[%s6778_s17 + $0x80c] ss:$16 sps:$4 sm:$0xff]   ;;  %v1616_v52 = vcombine.high %v7085_v63, %v7085_v63 }
 0x1b4   : > { %3860 = vmatprep.subr.bf16.mxu0 %v5446_v4  ;;  %4147 = vmatprep.subr.bf16.mxu1 %v5449_v5  ;;  %v5528_v4 = vld [vmem:[%s6778_s17 + $0x800] ss:$16 sps:$4 sm:$0xff]   ;;  %v1598_v5 = vcombine.high %v7014_v51, %v7014_v51 }
 0x1b5   : > { %v5534_v51 = vld [vmem:[%s6778_s17 + $0x820] ss:$16 sps:$4 sm:$0xff]  }
 0x1b7   : > { %3861 = vmatpush1.bf16.msra.mxu0 %v5444_v61  ;;  %4148 = vmatpush1.bf16.msra.mxu1 %v5447_v6  ;;  %v5531_v61 = vld [vmem:[%s6778_s17 + $0x808] ss:$16 sps:$4 sm:$0xff]   ;;  %v5536_v6 = vld [vmem:[%s6778_s17 + $0x824] ss:$16 sps:$4 sm:$0xff]  }
 0x1b8   : > { %3862 = vmatprep.subr.bf16.mxu0 %v5452_v7  ;;  %4149 = vmatprep.subr.bf16.mxu1 %v5455_v8  ;;  %v5539_v7 = vld [vmem:[%s6778_s17 + $0x82c] ss:$16 sps:$4 sm:$0xff]   ;;  %v7100_v8 = vrot.slane %v1616_v52, %v6783_v41  ;;  %v5615_v52 = vld [vmem:[%s6778_s17 + $0x9c8] ss:$16 sps:$4 sm:$0xff]  }
 0x1bb   : > { %3863 = vmatpush1.bf16.msra.mxu0 %v5450_v9  ;;  %4150 = vmatpush1.bf16.msra.mxu1 %v5453_v10  ;;  %v5537_v9 = vld [vmem:[%s6778_s17 + $0x828] ss:$16 sps:$4 sm:$0xff]   ;;  %v5542_v10 = vld [vmem:[%s6778_s17 + $0x844] ss:$16 sps:$4 sm:$0xff]  }
 0x1bc   : > { %3864 = vmatprep.subr.bf16.mxu0 %v5458_v11  ;;  %4151 = vmatprep.subr.bf16.mxu1 %v5461_v12  ;;  %v5545_v11 = vld [vmem:[%s6778_s17 + $0x84c] ss:$16 sps:$4 sm:$0xff]   ;;  %v5540_v12 = vld [vmem:[%s6778_s17 + $0x840] ss:$16 sps:$4 sm:$0xff]  }
 0x1bf   : > { %3865 = vmatpush1.bf16.msra.mxu0 %v5456_v13  ;;  %4152 = vmatpush1.bf16.msra.mxu1 %v5459_v14  ;;  %v5543_v13 = vld [vmem:[%s6778_s17 + $0x848] ss:$16 sps:$4 sm:$0xff]   ;;  %v5548_v14 = vld [vmem:[%s6778_s17 + $0x864] ss:$16 sps:$4 sm:$0xff]  }
 0x1c0   : > { %3866 = vmatprep.subr.bf16.mxu0 %v5464_v15  ;;  %4153 = vmatprep.subr.bf16.mxu1 %v5467_v16  ;;  %v5551_v15 = vld [vmem:[%s6778_s17 + $0x86c] ss:$16 sps:$4 sm:$0xff]   ;;  %v5546_v16 = vld [vmem:[%s6778_s17 + $0x860] ss:$16 sps:$4 sm:$0xff]  }
 0x1c3   : > { %3867 = vmatpush1.bf16.msra.mxu0 %v5462_v17  ;;  %4154 = vmatpush1.bf16.msra.mxu1 %v5465_v18  ;;  %v5549_v17 = vld [vmem:[%s6778_s17 + $0x868] ss:$16 sps:$4 sm:$0xff]   ;;  %v5554_v18 = vld [vmem:[%s6778_s17 + $0x884] ss:$16 sps:$4 sm:$0xff]  }
 0x1c4   : > { %3868 = vmatprep.subr.bf16.mxu0 %v5470_v19  ;;  %4155 = vmatprep.subr.bf16.mxu1 %v5473_v20  ;;  %v5557_v19 = vld [vmem:[%s6778_s17 + $0x88c] ss:$16 sps:$4 sm:$0xff]   ;;  %v5552_v20 = vld [vmem:[%s6778_s17 + $0x880] ss:$16 sps:$4 sm:$0xff]  }
 0x1c7   : > { %3869 = vmatpush1.bf16.msra.mxu0 %v5468_v21  ;;  %4156 = vmatpush1.bf16.msra.mxu1 %v5471_v22  ;;  %v5555_v21 = vld [vmem:[%s6778_s17 + $0x888] ss:$16 sps:$4 sm:$0xff]   ;;  %v5560_v22 = vld [vmem:[%s6778_s17 + $0x8a4] ss:$16 sps:$4 sm:$0xff]  }
 0x1c8   : > { %3870 = vmatprep.subr.bf16.mxu0 %v5476_v23  ;;  %4157 = vmatprep.subr.bf16.mxu1 %v5479_v24  ;;  %v5563_v23 = vld [vmem:[%s6778_s17 + $0x8ac] ss:$16 sps:$4 sm:$0xff]   ;;  %v5558_v24 = vld [vmem:[%s6778_s17 + $0x8a0] ss:$16 sps:$4 sm:$0xff]  }
 0x1cb   : > { %3871 = vmatpush1.bf16.msra.mxu0 %v5474_v25  ;;  %4158 = vmatpush1.bf16.msra.mxu1 %v5477_v26  ;;  %v5561_v25 = vld [vmem:[%s6778_s17 + $0x8a8] ss:$16 sps:$4 sm:$0xff]   ;;  %v5566_v26 = vld [vmem:[%s6778_s17 + $0x8c4] ss:$16 sps:$4 sm:$0xff]  }
 0x1cc   : > { %3872 = vmatprep.subr.bf16.mxu0 %v5482_v27  ;;  %4159 = vmatprep.subr.bf16.mxu1 %v5485_v28  ;;  %v5569_v27 = vld [vmem:[%s6778_s17 + $0x8cc] ss:$16 sps:$4 sm:$0xff]   ;;  %v5564_v28 = vld [vmem:[%s6778_s17 + $0x8c0] ss:$16 sps:$4 sm:$0xff]  }
 0x1cf   : > { %3873 = vmatpush1.bf16.msra.mxu0 %v5480_v29  ;;  %4160 = vmatpush1.bf16.msra.mxu1 %v5483_v30  ;;  %v5567_v29 = vld [vmem:[%s6778_s17 + $0x8c8] ss:$16 sps:$4 sm:$0xff]   ;;  %v5572_v30 = vld [vmem:[%s6778_s17 + $0x8e4] ss:$16 sps:$4 sm:$0xff]  }
 0x1d0   : > { %3874 = vmatprep.subr.bf16.mxu0 %v5488_v31  ;;  %4161 = vmatprep.subr.bf16.mxu1 %v5491_v32  ;;  %v5575_v31 = vld [vmem:[%s6778_s17 + $0x8ec] ss:$16 sps:$4 sm:$0xff]   ;;  %v5570_v32 = vld [vmem:[%s6778_s17 + $0x8e0] ss:$16 sps:$4 sm:$0xff]  }
 0x1d3   : > { %3875 = vmatpush1.bf16.msra.mxu0 %v5486_v33  ;;  %4162 = vmatpush1.bf16.msra.mxu1 %v5489_v34  ;;  %v5573_v33 = vld [vmem:[%s6778_s17 + $0x8e8] ss:$16 sps:$4 sm:$0xff]   ;;  %v5578_v34 = vld [vmem:[%s6778_s17 + $0x904] ss:$16 sps:$4 sm:$0xff]  }
 0x1d4   : > { %3876 = vmatprep.subr.bf16.mxu0 %v5494_v35  ;;  %4163 = vmatprep.subr.bf16.mxu1 %v5497_v38  ;;  %v5581_v35 = vld [vmem:[%s6778_s17 + $0x90c] ss:$16 sps:$4 sm:$0xff]   ;;  %v5576_v38 = vld [vmem:[%s6778_s17 + $0x900] ss:$16 sps:$4 sm:$0xff]  }
 0x1d7   : > { %3877 = vmatpush1.bf16.msra.mxu0 %v5492_v39  ;;  %4164 = vmatpush1.bf16.msra.mxu1 %v5495_v40  ;;  %v5579_v39 = vld [vmem:[%s6778_s17 + $0x908] ss:$16 sps:$4 sm:$0xff]   ;;  %v5584_v40 = vld [vmem:[%s6778_s17 + $0x924] ss:$16 sps:$4 sm:$0xff]  }
 0x1d8   : > { %3878 = vmatprep.subr.bf16.mxu0 %v5500_v42  ;;  %4165 = vmatprep.subr.bf16.mxu1 %v5503_v43  ;;  %v5587_v42 = vld [vmem:[%s6778_s17 + $0x92c] ss:$16 sps:$4 sm:$0xff]   ;;  %v5582_v43 = vld [vmem:[%s6778_s17 + $0x920] ss:$16 sps:$4 sm:$0xff]  }
 0x1db   : > { %3879 = vmatpush1.bf16.msra.mxu0 %v5498_v44  ;;  %4166 = vmatpush1.bf16.msra.mxu1 %v5501_v46  ;;  %v5585_v44 = vld [vmem:[%s6778_s17 + $0x928] ss:$16 sps:$4 sm:$0xff]   ;;  %v5590_v46 = vld [vmem:[%s6778_s17 + $0x944] ss:$16 sps:$4 sm:$0xff]  }
 0x1dc   : > { %3880 = vmatprep.subr.bf16.mxu0 %v5506_v47  ;;  %4167 = vmatprep.subr.bf16.mxu1 %v5509_v48  ;;  %v5593_v47 = vld [vmem:[%s6778_s17 + $0x94c] ss:$16 sps:$4 sm:$0xff]   ;;  %v5588_v48 = vld [vmem:[%s6778_s17 + $0x940] ss:$16 sps:$4 sm:$0xff]  }
 0x1df   : > { %3881 = vmatpush1.bf16.msra.mxu0 %v5504_v49  ;;  %4168 = vmatpush1.bf16.msra.mxu1 %v5507_v50  ;;  %v5591_v49 = vld [vmem:[%s6778_s17 + $0x948] ss:$16 sps:$4 sm:$0xff]   ;;  %v5596_v50 = vld [vmem:[%s6778_s17 + $0x964] ss:$16 sps:$4 sm:$0xff]  }
 0x1e0   : > { %3882 = vmatprep.subr.bf16.mxu0 %v5512_v53  ;;  %4169 = vmatprep.subr.bf16.mxu1 %v5515_v55  ;;  %v5599_v53 = vld [vmem:[%s6778_s17 + $0x96c] ss:$16 sps:$4 sm:$0xff]   ;;  %v5594_v55 = vld [vmem:[%s6778_s17 + $0x960] ss:$16 sps:$4 sm:$0xff]  }
 0x1e3   : > { %3883 = vmatpush1.bf16.msra.mxu0 %v5510_v37  ;;  %4170 = vmatpush1.bf16.msra.mxu1 %v5513_v56  ;;  %v5597_v37 = vld [vmem:[%s6778_s17 + $0x968] ss:$16 sps:$4 sm:$0xff]   ;;  %v5602_v56 = vld [vmem:[%s6778_s17 + $0x984] ss:$16 sps:$4 sm:$0xff]  }
 0x1e4   : > { %3884 = vmatprep.subr.bf16.mxu0 %v5518_v45  ;;  %4171 = vmatprep.subr.bf16.mxu1 %v5521_v57  ;;  %v5605_v45 = vld [vmem:[%s6778_s17 + $0x98c] ss:$16 sps:$4 sm:$0xff]   ;;  %v5600_v57 = vld [vmem:[%s6778_s17 + $0x980] ss:$16 sps:$4 sm:$0xff]  }
 0x1e7   : > { %3885 = vmatpush1.bf16.msra.mxu0 %v5516_v58  ;;  %4172 = vmatpush1.bf16.msra.mxu1 %v5519_v59  ;;  %v5603_v58 = vld [vmem:[%s6778_s17 + $0x988] ss:$16 sps:$4 sm:$0xff]   ;;  %v5608_v59 = vld [vmem:[%s6778_s17 + $0x9a4] ss:$16 sps:$4 sm:$0xff]  }
 0x1e8   : > { %3886 = vmatprep.subr.bf16.mxu0 %v5524_v60  ;;  %4173 = vmatprep.subr.bf16.mxu1 %v5527_v62  ;;  %v5611_v60 = vld [vmem:[%s6778_s17 + $0x9ac] ss:$16 sps:$4 sm:$0xff]   ;;  %v5606_v62 = vld [vmem:[%s6778_s17 + $0x9a0] ss:$16 sps:$4 sm:$0xff]  }
 0x1eb   : > { %3887 = vmatpush1.bf16.msra.mxu0 %v5522_v0  ;;  %4174 = vmatpush1.bf16.msra.mxu1 %v5525_v1  ;;  %v5609_v0 = vld [vmem:[%s6778_s17 + $0x9a8] ss:$16 sps:$4 sm:$0xff]   ;;  %v5614_v1 = vld [vmem:[%s6778_s17 + $0x9c4] ss:$16 sps:$4 sm:$0xff]  }
 0x1ec   : > { %3897 = vmatprep.subr.bf16.mxu0 %v5530_v2  ;;  %4184 = vmatprep.subr.bf16.mxu1 %v5533_v3  ;;  %v5617_v2 = vld [vmem:[%s6778_s17 + $0x9cc] ss:$16 sps:$4 sm:$0xff]   ;;  %v5612_v3 = vld [vmem:[%s6778_s17 + $0x9c0] ss:$16 sps:$4 sm:$0xff]  }
 0x1ee   : > { %3889 = vmatmul.mubr.bf16.vlgmr.msra.gmra.mrb[0].mxu0 %v1598_v5  ;;  %4176 = vmatmul.mubr.bf16.vlgmr.msra.gmra.mrb[0].mxu1 %v1598_v5  ;;  %v5623_v5 = vld [vmem:[%s6778_s17 + $0x9ec] ss:$16 sps:$4 sm:$0xff]  }
 0x1ef   : > { %3898 = vmatpush1.bf16.msra.mxu0 %v5528_v4  ;;  %4185 = vmatpush1.bf16.msra.mxu1 %v5531_v61  ;;  %v5620_v4 = vld [vmem:[%s6778_s17 + $0x9e4] ss:$16 sps:$4 sm:$0xff]   ;;  %v5618_v61 = vld [vmem:[%s6778_s17 + $0x9e0] ss:$16 sps:$4 sm:$0xff]  }
 0x1f0   : > { %3899 = vmatprep.subr.bf16.mxu0 %v5536_v6  ;;  %4186 = vmatprep.subr.bf16.mxu1 %v5539_v7  ;;  %v5621_v6 = vld [vmem:[%s6778_s17 + $0x9e8] ss:$16 sps:$4 sm:$0xff]   ;;  %v5627_v7 = vld [vmem:[%s6778_s17 + $0xa04] ss:$16 sps:$4 sm:$0xff]  }
 0x1f1   : > { %3929 = vmatprep.mubr.bf16.mxu0 %v7100_v8  ;;  %4216 = vmatprep.mubr.bf16.mxu1 %v7100_v8 }
 0x1f3   : > { %3900 = vmatpush1.bf16.msra.mxu0 %v5534_v51  ;;  %4187 = vmatpush1.bf16.msra.mxu1 %v5537_v9  ;;  %v5630_v51 = vld [vmem:[%s6778_s17 + $0xa0c] ss:$16 sps:$4 sm:$0xff]   ;;  %v7166_v9 = vrot.slane %v7085_v63, %v6783_v41  ;;  %v5631_v63 = vld [vmem:[%s6778_s17 + $0xa20] ss:$16 sps:$4 sm:$0xff]  }
 0x1f4   : > { %3901 = vmatprep.subr.bf16.mxu0 %v5542_v10  ;;  %4188 = vmatprep.subr.bf16.mxu1 %v5545_v11  ;;  %v5625_v10 = vld [vmem:[%s6778_s17 + $0xa00] ss:$16 sps:$4 sm:$0xff]   ;;  %v5628_v11 = vld [vmem:[%s6778_s17 + $0xa08] ss:$16 sps:$4 sm:$0xff]  }
 0x1f7   : > { %3902 = vmatpush1.bf16.msra.mxu0 %v5540_v12  ;;  %4189 = vmatpush1.bf16.msra.mxu1 %v5543_v13  ;;  %v5633_v12 = vld [vmem:[%s6778_s17 + $0xa24] ss:$16 sps:$4 sm:$0xff]   ;;  %v5636_v13 = vld [vmem:[%s6778_s17 + $0xa2c] ss:$16 sps:$4 sm:$0xff]  }
 0x1f8   : > { %3903 = vmatprep.subr.bf16.mxu0 %v5548_v14  ;;  %4190 = vmatprep.subr.bf16.mxu1 %v5551_v15  ;;  %v1639_v14 = vcombine.high %v7100_v8, %v7100_v8  ;;  %v5634_v15 = vld [vmem:[%s6778_s17 + $0xa28] ss:$16 sps:$4 sm:$0xff]   ;;  %v5637_v8 = vld [vmem:[%s6778_s17 + $0xa40] ss:$16 sps:$4 sm:$0xff]  }
 0x1fb   : > { %3904 = vmatpush1.bf16.msra.mxu0 %v5546_v16  ;;  %4191 = vmatpush1.bf16.msra.mxu1 %v5549_v17  ;;  %v5639_v16 = vld [vmem:[%s6778_s17 + $0xa44] ss:$16 sps:$4 sm:$0xff]   ;;  %v5642_v17 = vld [vmem:[%s6778_s17 + $0xa4c] ss:$16 sps:$4 sm:$0xff]  }
 0x1fc   : > { %3905 = vmatprep.subr.bf16.mxu0 %v5554_v18  ;;  %4192 = vmatprep.subr.bf16.mxu1 %v5557_v19  ;;  %v5640_v18 = vld [vmem:[%s6778_s17 + $0xa48] ss:$16 sps:$4 sm:$0xff]   ;;  %v5645_v19 = vld [vmem:[%s6778_s17 + $0xa64] ss:$16 sps:$4 sm:$0xff]  }
 0x1ff   : > { %3906 = vmatpush1.bf16.msra.mxu0 %v5552_v20  ;;  %4193 = vmatpush1.bf16.msra.mxu1 %v5555_v21  ;;  %v5648_v20 = vld [vmem:[%s6778_s17 + $0xa6c] ss:$16 sps:$4 sm:$0xff]   ;;  %v5643_v21 = vld [vmem:[%s6778_s17 + $0xa60] ss:$16 sps:$4 sm:$0xff]  }
 0x200   : > { %3907 = vmatprep.subr.bf16.mxu0 %v5560_v22  ;;  %4194 = vmatprep.subr.bf16.mxu1 %v5563_v23  ;;  %v5646_v22 = vld [vmem:[%s6778_s17 + $0xa68] ss:$16 sps:$4 sm:$0xff]   ;;  %v5651_v23 = vld [vmem:[%s6778_s17 + $0xa84] ss:$16 sps:$4 sm:$0xff]  }
 0x203   : > { %3908 = vmatpush1.bf16.msra.mxu0 %v5558_v24  ;;  %4195 = vmatpush1.bf16.msra.mxu1 %v5561_v25  ;;  %v5654_v24 = vld [vmem:[%s6778_s17 + $0xa8c] ss:$16 sps:$4 sm:$0xff]   ;;  %v5649_v25 = vld [vmem:[%s6778_s17 + $0xa80] ss:$16 sps:$4 sm:$0xff]  }
 0x204   : > { %3909 = vmatprep.subr.bf16.mxu0 %v5566_v26  ;;  %4196 = vmatprep.subr.bf16.mxu1 %v5569_v27  ;;  %v5652_v26 = vld [vmem:[%s6778_s17 + $0xa88] ss:$16 sps:$4 sm:$0xff]   ;;  %v5657_v27 = vld [vmem:[%s6778_s17 + $0xaa4] ss:$16 sps:$4 sm:$0xff]  }
 0x207   : > { %3910 = vmatpush1.bf16.msra.mxu0 %v5564_v28  ;;  %4197 = vmatpush1.bf16.msra.mxu1 %v5567_v29  ;;  %v5660_v28 = vld [vmem:[%s6778_s17 + $0xaac] ss:$16 sps:$4 sm:$0xff]   ;;  %v5655_v29 = vld [vmem:[%s6778_s17 + $0xaa0] ss:$16 sps:$4 sm:$0xff]  }
 0x208   : > { %3911 = vmatprep.subr.bf16.mxu0 %v5572_v30  ;;  %4198 = vmatprep.subr.bf16.mxu1 %v5575_v31  ;;  %v5658_v30 = vld [vmem:[%s6778_s17 + $0xaa8] ss:$16 sps:$4 sm:$0xff]   ;;  %v5663_v31 = vld [vmem:[%s6778_s17 + $0xac4] ss:$16 sps:$4 sm:$0xff]  }
 0x20b   : > { %3912 = vmatpush1.bf16.msra.mxu0 %v5570_v32  ;;  %4199 = vmatpush1.bf16.msra.mxu1 %v5573_v33  ;;  %v5666_v32 = vld [vmem:[%s6778_s17 + $0xacc] ss:$16 sps:$4 sm:$0xff]   ;;  %v5661_v33 = vld [vmem:[%s6778_s17 + $0xac0] ss:$16 sps:$4 sm:$0xff]  }
 0x20c   : > { %3913 = vmatprep.subr.bf16.mxu0 %v5578_v34  ;;  %4200 = vmatprep.subr.bf16.mxu1 %v5581_v35  ;;  %v5664_v34 = vld [vmem:[%s6778_s17 + $0xac8] ss:$16 sps:$4 sm:$0xff]   ;;  %v5669_v35 = vld [vmem:[%s6778_s17 + $0xae4] ss:$16 sps:$4 sm:$0xff]  }
 0x20f   : > { %3914 = vmatpush1.bf16.msra.mxu0 %v5576_v38  ;;  %4201 = vmatpush1.bf16.msra.mxu1 %v5579_v39  ;;  %v5672_v38 = vld [vmem:[%s6778_s17 + $0xaec] ss:$16 sps:$4 sm:$0xff]   ;;  %v5667_v39 = vld [vmem:[%s6778_s17 + $0xae0] ss:$16 sps:$4 sm:$0xff]  }
 0x210   : > { %3915 = vmatprep.subr.bf16.mxu0 %v5584_v40  ;;  %4202 = vmatprep.subr.bf16.mxu1 %v5587_v42  ;;  %v5670_v40 = vld [vmem:[%s6778_s17 + $0xae8] ss:$16 sps:$4 sm:$0xff]   ;;  %v5675_v42 = vld [vmem:[%s6778_s17 + $0xb04] ss:$16 sps:$4 sm:$0xff]  }
 0x213   : > { %3916 = vmatpush1.bf16.msra.mxu0 %v5582_v43  ;;  %4203 = vmatpush1.bf16.msra.mxu1 %v5585_v44  ;;  %v5678_v43 = vld [vmem:[%s6778_s17 + $0xb0c] ss:$16 sps:$4 sm:$0xff]   ;;  %v5673_v44 = vld [vmem:[%s6778_s17 + $0xb00] ss:$16 sps:$4 sm:$0xff]  }
 0x214   : > { %3917 = vmatprep.subr.bf16.mxu0 %v5590_v46  ;;  %4204 = vmatprep.subr.bf16.mxu1 %v5593_v47  ;;  %v5676_v46 = vld [vmem:[%s6778_s17 + $0xb08] ss:$16 sps:$4 sm:$0xff]   ;;  %v5681_v47 = vld [vmem:[%s6778_s17 + $0xb24] ss:$16 sps:$4 sm:$0xff]  }
 0x217   : > { %3918 = vmatpush1.bf16.msra.mxu0 %v5588_v48  ;;  %4205 = vmatpush1.bf16.msra.mxu1 %v5591_v49  ;;  %v5684_v48 = vld [vmem:[%s6778_s17 + $0xb2c] ss:$16 sps:$4 sm:$0xff]   ;;  %v5679_v49 = vld [vmem:[%s6778_s17 + $0xb20] ss:$16 sps:$4 sm:$0xff]  }
 0x218   : > { %3919 = vmatprep.subr.bf16.mxu0 %v5596_v50  ;;  %4206 = vmatprep.subr.bf16.mxu1 %v5599_v53  ;;  %v5682_v50 = vld [vmem:[%s6778_s17 + $0xb28] ss:$16 sps:$4 sm:$0xff]   ;;  %v5687_v53 = vld [vmem:[%s6778_s17 + $0xb44] ss:$16 sps:$4 sm:$0xff]  }
 0x21b   : > { %3920 = vmatpush1.bf16.msra.mxu0 %v5594_v55  ;;  %4207 = vmatpush1.bf16.msra.mxu1 %v5597_v37  ;;  %v5690_v55 = vld [vmem:[%s6778_s17 + $0xb4c] ss:$16 sps:$4 sm:$0xff]   ;;  %v5685_v37 = vld [vmem:[%s6778_s17 + $0xb40] ss:$16 sps:$4 sm:$0xff]  }
 0x21c   : > { %3921 = vmatprep.subr.bf16.mxu0 %v5602_v56  ;;  %4208 = vmatprep.subr.bf16.mxu1 %v5605_v45  ;;  %v5688_v56 = vld [vmem:[%s6778_s17 + $0xb48] ss:$16 sps:$4 sm:$0xff]   ;;  %v5693_v45 = vld [vmem:[%s6778_s17 + $0xb64] ss:$16 sps:$4 sm:$0xff]  }
 0x21f   : > { %3922 = vmatpush1.bf16.msra.mxu0 %v5600_v57  ;;  %4209 = vmatpush1.bf16.msra.mxu1 %v5603_v58  ;;  %v5696_v57 = vld [vmem:[%s6778_s17 + $0xb6c] ss:$16 sps:$4 sm:$0xff]   ;;  %v5691_v58 = vld [vmem:[%s6778_s17 + $0xb60] ss:$16 sps:$4 sm:$0xff]  }
 0x220   : > { %3923 = vmatprep.subr.bf16.mxu0 %v5608_v59  ;;  %4210 = vmatprep.subr.bf16.mxu1 %v5611_v60  ;;  %v5694_v59 = vld [vmem:[%s6778_s17 + $0xb68] ss:$16 sps:$4 sm:$0xff]   ;;  %v5699_v60 = vld [vmem:[%s6778_s17 + $0xb84] ss:$16 sps:$4 sm:$0xff]  }
 0x223   : > { %3924 = vmatpush1.bf16.msra.mxu0 %v5606_v62  ;;  %4211 = vmatpush1.bf16.msra.mxu1 %v5609_v0  ;;  %v5702_v62 = vld [vmem:[%s6778_s17 + $0xb8c] ss:$16 sps:$4 sm:$0xff]   ;;  %v5697_v0 = vld [vmem:[%s6778_s17 + $0xb80] ss:$16 sps:$4 sm:$0xff]  }
 0x224   : > { %3925 = vmatprep.subr.bf16.mxu0 %v5614_v1  ;;  %4212 = vmatprep.subr.bf16.mxu1 %v5617_v2  ;;  %v5700_v1 = vld [vmem:[%s6778_s17 + $0xb88] ss:$16 sps:$4 sm:$0xff]   ;;  %v5705_v2 = vld [vmem:[%s6778_s17 + $0xba4] ss:$16 sps:$4 sm:$0xff]  }
 0x227   : > { %3926 = vmatpush1.bf16.msra.mxu0 %v5612_v3  ;;  %4213 = vmatpush1.bf16.msra.mxu1 %v5615_v52  ;;  %v5708_v3 = vld [vmem:[%s6778_s17 + $0xbac] ss:$16 sps:$4 sm:$0xff]   ;;  %v5703_v52 = vld [vmem:[%s6778_s17 + $0xba0] ss:$16 sps:$4 sm:$0xff]  }
 0x228   : > { %3927 = vmatprep.subr.bf16.mxu0 %v5620_v4  ;;  %4214 = vmatprep.subr.bf16.mxu1 %v5623_v5  ;;  %v5706_v4 = vld [vmem:[%s6778_s17 + $0xba8] ss:$16 sps:$4 sm:$0xff]   ;;  %v5711_v5 = vld [vmem:[%s6778_s17 + $0xbc4] ss:$16 sps:$4 sm:$0xff]  }
 0x22b   : > { %3928 = vmatpush1.bf16.msra.mxu0 %v5618_v61  ;;  %4215 = vmatpush1.bf16.msra.mxu1 %v5621_v6  ;;  %v5714_v61 = vld [vmem:[%s6778_s17 + $0xbcc] ss:$16 sps:$4 sm:$0xff]   ;;  %v5709_v6 = vld [vmem:[%s6778_s17 + $0xbc0] ss:$16 sps:$4 sm:$0xff]  }
 0x22c   : > { %3938 = vmatprep.subr.bf16.mxu0 %v5627_v7  ;;  %4225 = vmatprep.subr.bf16.mxu1 %v5630_v51  ;;  %v5712_v7 = vld [vmem:[%s6778_s17 + $0xbc8] ss:$16 sps:$4 sm:$0xff]   ;;  %v5717_v51 = vld [vmem:[%s6778_s17 + $0xbe4] ss:$16 sps:$4 sm:$0xff]  }
 0x22e   : > { %3930 = vmatmul.mubr.bf16.vlgmr.msra.gmra.mrb[0].mxu0 %v7166_v9  ;;  %4217 = vmatmul.mubr.bf16.vlgmr.msra.gmra.mrb[0].mxu1 %v7166_v9 }
 0x22f   : > { %3939 = vmatpush1.bf16.msra.mxu0 %v5625_v10  ;;  %4226 = vmatpush1.bf16.msra.mxu1 %v5628_v11  ;;  %v5720_v10 = vld [vmem:[%s6778_s17 + $0xbec] ss:$16 sps:$4 sm:$0xff]   ;;  %v5715_v11 = vld [vmem:[%s6778_s17 + $0xbe0] ss:$16 sps:$4 sm:$0xff]  }
 0x230   : > { %3940 = vmatprep.subr.bf16.mxu0 %v5633_v12  ;;  %4227 = vmatprep.subr.bf16.mxu1 %v5636_v13  ;;  %v5718_v12 = vld [vmem:[%s6778_s17 + $0xbe8] ss:$16 sps:$4 sm:$0xff]   ;;  %v5723_v13 = vld [vmem:[%s6778_s17 + $0xc04] ss:$16 sps:$4 sm:$0xff]  }
 0x231   : > { %3970 = vmatprep.mubr.bf16.mxu0 %v1639_v14  ;;  %4257 = vmatprep.mubr.bf16.mxu1 %v1639_v14  ;;  %v5726_v14 = vld [vmem:[%s6778_s17 + $0xc0c] ss:$16 sps:$4 sm:$0xff]  }
 0x233   : > { %3941 = vmatpush1.bf16.msra.mxu0 %v5631_v63  ;;  %4228 = vmatpush1.bf16.msra.mxu1 %v5634_v15  ;;  %v1638_v63 = vcombine.high %v7166_v9, %v7166_v9  ;;  %v5721_v15 = vld [vmem:[%s6778_s17 + $0xc00] ss:$16 sps:$4 sm:$0xff]   ;;  %v5730_v9 = vld [vmem:[%s6778_s17 + $0xc28] ss:$16 sps:$4 sm:$0xff]  }
 0x234   : > { %3942 = vmatprep.subr.bf16.mxu0 %v5639_v16  ;;  %4229 = vmatprep.subr.bf16.mxu1 %v5642_v17  ;;  %v5724_v16 = vld [vmem:[%s6778_s17 + $0xc08] ss:$16 sps:$4 sm:$0xff]   ;;  %v5729_v17 = vld [vmem:[%s6778_s17 + $0xc24] ss:$16 sps:$4 sm:$0xff]  }
 0x237   : > { %3943 = vmatpush1.bf16.msra.mxu0 %v5637_v8  ;;  %4230 = vmatpush1.bf16.msra.mxu1 %v5640_v18  ;;  %v5732_v8 = vld [vmem:[%s6778_s17 + $0xc2c] ss:$16 sps:$4 sm:$0xff]   ;;  %v5727_v18 = vld [vmem:[%s6778_s17 + $0xc20] ss:$16 sps:$4 sm:$0xff]  }
 0x238   : > { %3944 = vmatprep.subr.bf16.mxu0 %v5645_v19  ;;  %4231 = vmatprep.subr.bf16.mxu1 %v5648_v20  ;;  %v5735_v19 = vld [vmem:[%s6778_s17 + $0xc44] ss:$16 sps:$4 sm:$0xff]   ;;  %v5738_v20 = vld [vmem:[%s6778_s17 + $0xc4c] ss:$16 sps:$4 sm:$0xff]  }
 0x23b   : > { %3945 = vmatpush1.bf16.msra.mxu0 %v5643_v21  ;;  %4232 = vmatpush1.bf16.msra.mxu1 %v5646_v22  ;;  %v5853_v21 = vmov 0   ;;  %v5733_v22 = vld [vmem:[%s6778_s17 + $0xc40] ss:$16 sps:$4 sm:$0xff]  }
 0x23c   : > { %3946 = vmatprep.subr.bf16.mxu0 %v5651_v23  ;;  %4233 = vmatprep.subr.bf16.mxu1 %v5654_v24  ;;  %v5736_v23 = vld [vmem:[%s6778_s17 + $0xc48] ss:$16 sps:$4 sm:$0xff]   ;;  %v5741_v24 = vld [vmem:[%s6778_s17 + $0xc64] ss:$16 sps:$4 sm:$0xff]  }
 0x23f   : > { %3947 = vmatpush1.bf16.msra.mxu0 %v5649_v25  ;;  %4234 = vmatpush1.bf16.msra.mxu1 %v5652_v26  ;;  %v5744_v25 = vld [vmem:[%s6778_s17 + $0xc6c] ss:$16 sps:$4 sm:$0xff]   ;;  %v5739_v26 = vld [vmem:[%s6778_s17 + $0xc60] ss:$16 sps:$4 sm:$0xff]  }
 0x240   : > { %3948 = vmatprep.subr.bf16.mxu0 %v5657_v27  ;;  %4235 = vmatprep.subr.bf16.mxu1 %v5660_v28  ;;  %v5742_v27 = vld [vmem:[%s6778_s17 + $0xc68] ss:$16 sps:$4 sm:$0xff]   ;;  %v5747_v28 = vld [vmem:[%s6778_s17 + $0xc84] ss:$16 sps:$4 sm:$0xff]  }
 0x243   : > { %3949 = vmatpush1.bf16.msra.mxu0 %v5655_v29  ;;  %4236 = vmatpush1.bf16.msra.mxu1 %v5658_v30  ;;  %v5750_v29 = vld [vmem:[%s6778_s17 + $0xc8c] ss:$16 sps:$4 sm:$0xff]   ;;  %v5745_v30 = vld [vmem:[%s6778_s17 + $0xc80] ss:$16 sps:$4 sm:$0xff]  }
 0x244   : > { %3950 = vmatprep.subr.bf16.mxu0 %v5663_v31  ;;  %4237 = vmatprep.subr.bf16.mxu1 %v5666_v32  ;;  %v5748_v31 = vld [vmem:[%s6778_s17 + $0xc88] ss:$16 sps:$4 sm:$0xff]   ;;  %v5753_v32 = vld [vmem:[%s6778_s17 + $0xca4] ss:$16 sps:$4 sm:$0xff]  }
 0x247   : > { %3951 = vmatpush1.bf16.msra.mxu0 %v5661_v33  ;;  %4238 = vmatpush1.bf16.msra.mxu1 %v5664_v34  ;;  %v5756_v33 = vld [vmem:[%s6778_s17 + $0xcac] ss:$16 sps:$4 sm:$0xff]   ;;  %v5751_v34 = vld [vmem:[%s6778_s17 + $0xca0] ss:$16 sps:$4 sm:$0xff]  }
 0x248   : > { %3952 = vmatprep.subr.bf16.mxu0 %v5669_v35  ;;  %4239 = vmatprep.subr.bf16.mxu1 %v5672_v38  ;;  %v5754_v35 = vld [vmem:[%s6778_s17 + $0xca8] ss:$16 sps:$4 sm:$0xff]   ;;  %v5759_v38 = vld [vmem:[%s6778_s17 + $0xcc4] ss:$16 sps:$4 sm:$0xff]  }
 0x24b   : > { %3953 = vmatpush1.bf16.msra.mxu0 %v5667_v39  ;;  %4240 = vmatpush1.bf16.msra.mxu1 %v5670_v40  ;;  %v5762_v39 = vld [vmem:[%s6778_s17 + $0xccc] ss:$16 sps:$4 sm:$0xff]   ;;  %v1601_v40 = vcombine.high %v7078_v54, %v7078_v54  ;;  %v1532_v54 = vsub.s32 0, %v6771_v36 }
 0x24c   : > { %3954 = vmatprep.subr.bf16.mxu0 %v5675_v42  ;;  %4241 = vmatprep.subr.bf16.mxu1 %v5678_v43  ;;  %v5757_v42 = vld [vmem:[%s6778_s17 + $0xcc0] ss:$16 sps:$4 sm:$0xff]   ;;  %v5760_v43 = vld [vmem:[%s6778_s17 + $0xcc8] ss:$16 sps:$4 sm:$0xff]  }
 0x24f   : > { %3955 = vmatpush1.bf16.msra.mxu0 %v5673_v44  ;;  %4242 = vmatpush1.bf16.msra.mxu1 %v5676_v46  ;;  %v5765_v44 = vld [vmem:[%s6778_s17 + $0xce4] ss:$16 sps:$4 sm:$0xff]   ;;  %v5768_v46 = vld [vmem:[%s6778_s17 + $0xcec] ss:$16 sps:$4 sm:$0xff]  }
 0x250   : > { %3956 = vmatprep.subr.bf16.mxu0 %v5681_v47  ;;  %4243 = vmatprep.subr.bf16.mxu1 %v5684_v48  ;;  %v1615_v47 = vrot.slane %v1601_v40, %v6783_v41  ;;  %v5763_v48 = vld [vmem:[%s6778_s17 + $0xce0] ss:$16 sps:$4 sm:$0xff]  }
 0x253   : > { %3957 = vmatpush1.bf16.msra.mxu0 %v5679_v49  ;;  %4244 = vmatpush1.bf16.msra.mxu1 %v5682_v50  ;;  %v5766_v49 = vld [vmem:[%s6778_s17 + $0xce8] ss:$16 sps:$4 sm:$0xff]   ;;  %v1630_v50 = vrot.slane %v1615_v47, %v6783_v41  ;;  %v1544_v41 = vsub.s32 3, %v6771_v36 }
 0x254   : > { %3958 = vmatprep.subr.bf16.mxu0 %v5687_v53  ;;  %4245 = vmatprep.subr.bf16.mxu1 %v5690_v55  ;;  %v1540_v53 = vsub.s32 2, %v6771_v36  ;;  %v1528_v55 = vld [vmem:[%s1107_s23] sm:$0xf] }
 0x257   : > { %3959 = vmatpush1.bf16.msra.mxu0 %v5685_v37  ;;  %4246 = vmatpush1.bf16.msra.mxu1 %v5688_v56  ;;  %v1536_v37 = vsub.s32 1, %v6771_v36  ;;  %v1533_v56 = vrot.slane %v1528_v55, %v1532_v54 }
 0x258   : > { %3960 = vmatprep.subr.bf16.mxu0 %v5693_v45  ;;  %4247 = vmatprep.subr.bf16.mxu1 %v5696_v57  ;;  %v1541_v45 = vrot.slane %v1528_v55, %v1540_v53 }
 0x259   : > { %v1537_v57 = vrot.slane %v1528_v55, %v1536_v37 }
 0x25b   : > { %3961 = vmatpush1.bf16.msra.mxu0 %v5691_v58  ;;  %4248 = vmatpush1.bf16.msra.mxu1 %v5694_v59  ;;  %v1545_v58 = vrot.slane %v1528_v55, %v1544_v41 }
 0x25c   : > { %3962 = vmatprep.subr.bf16.mxu0 %v5699_v60  ;;  %4249 = vmatprep.subr.bf16.mxu1 %v5702_v62 }
 0x25f   : > { %3963 = vmatpush1.bf16.msra.mxu0 %v5697_v0  ;;  %4250 = vmatpush1.bf16.msra.mxu1 %v5700_v1 }
 0x260   : > { %3964 = vmatprep.subr.bf16.mxu0 %v5705_v2  ;;  %4251 = vmatprep.subr.bf16.mxu1 %v5708_v3 }
 0x263   : > { %3965 = vmatpush1.bf16.msra.mxu0 %v5703_v52  ;;  %4252 = vmatpush1.bf16.msra.mxu1 %v5706_v4 }
 0x264   : > { %3966 = vmatprep.subr.bf16.mxu0 %v5711_v5  ;;  %4253 = vmatprep.subr.bf16.mxu1 %v5714_v61 }
 0x267   : > { %3967 = vmatpush1.bf16.msra.mxu0 %v5709_v6  ;;  %4254 = vmatpush1.bf16.msra.mxu1 %v5712_v7 }
 0x268   : > { %3968 = vmatprep.subr.bf16.mxu0 %v5717_v51  ;;  %4255 = vmatprep.subr.bf16.mxu1 %v5720_v10 }
 0x26b   : > { %3969 = vmatpush1.bf16.msra.mxu0 %v5715_v11  ;;  %4256 = vmatpush1.bf16.msra.mxu1 %v5718_v12 }
 0x26c   : > { %3979 = vmatprep.subr.bf16.mxu0 %v5723_v13  ;;  %4266 = vmatprep.subr.bf16.mxu1 %v5726_v14 }
 0x26e   : > { %3971 = vmatmul.mubr.bf16.vlgmr.msra.gmra.mrb[0].mxu0 %v1638_v63  ;;  %4258 = vmatmul.mubr.bf16.vlgmr.msra.gmra.mrb[0].mxu1 %v1638_v63 }
 0x26f   : > { %3980 = vmatpush1.bf16.msra.mxu0 %v5721_v15  ;;  %4267 = vmatpush1.bf16.msra.mxu1 %v5724_v16 }
 0x270   : > { %3981 = vmatprep.subr.bf16.mxu0 %v5729_v17  ;;  %4268 = vmatprep.subr.bf16.mxu1 %v5732_v8 }
 0x271   : > { %4011 = vmatprep.mubr.bf16.mxu0 %v5853_v21  ;;  %4298 = vmatprep.mubr.bf16.mxu1 %v5853_v21 }
 0x273   : > { %3982 = vmatpush1.bf16.msra.mxu0 %v5727_v18  ;;  %4269 = vmatpush1.bf16.msra.mxu1 %v5730_v9  ;;  %v5854_v18 = vmov (!%p5039_p9), 1983009808  }
 0x274   : > { %3983 = vmatprep.subr.bf16.mxu0 %v5735_v19  ;;  %4270 = vmatprep.subr.bf16.mxu1 %v5738_v20  ;;  %v4342_v9 = vunpack.c.l.s4 (!%p5039_p9), %v5854_v18 }
 0x276   : > { %v4343_v19 = vunpack.c.0.s8 (!%p5039_p9), %v4342_v9 }
 0x277   : > { %3984 = vmatpush1.bf16.msra.mxu0 %v5733_v22  ;;  %4271 = vmatpush1.bf16.msra.mxu1 %v5736_v23 }
 0x278   : > { %3985 = vmatprep.subr.bf16.mxu0 %v5741_v24  ;;  %4272 = vmatprep.subr.bf16.mxu1 %v5744_v25  ;;  %v4346_v21 = vsub.s32 (!%p5039_p9), %v4343_v19, %v6771_v36 }
 0x27b   : > { %3986 = vmatpush1.bf16.msra.mxu0 %v5739_v26  ;;  %4273 = vmatpush1.bf16.msra.mxu1 %v5742_v27 }
 0x27c   : > { %3987 = vmatprep.subr.bf16.mxu0 %v5747_v28  ;;  %4274 = vmatprep.subr.bf16.mxu1 %v5750_v29 }
 0x27f   : > { %3988 = vmatpush1.bf16.msra.mxu0 %v5745_v30  ;;  %4275 = vmatpush1.bf16.msra.mxu1 %v5748_v31 }
 0x280   : > { %3989 = vmatprep.subr.bf16.mxu0 %v5753_v32  ;;  %4276 = vmatprep.subr.bf16.mxu1 %v5756_v33 }
 0x283   : > { %3990 = vmatpush1.bf16.msra.mxu0 %v5751_v34  ;;  %4277 = vmatpush1.bf16.msra.mxu1 %v5754_v35 }
 0x284   : > { %3991 = vmatprep.subr.bf16.mxu0 %v5759_v38  ;;  %4278 = vmatprep.subr.bf16.mxu1 %v5762_v39 }
 0x287   : > { %3992 = vmatpush1.bf16.msra.mxu0 %v5757_v42  ;;  %4279 = vmatpush1.bf16.msra.mxu1 %v5760_v43 }
 0x288   : > { %3993 = vmatprep.subr.bf16.mxu0 %v5765_v44  ;;  %4280 = vmatprep.subr.bf16.mxu1 %v5768_v46 }
 0x28b   : > { %3994 = vmatpush1.bf16.msra.mxu0 %v5763_v48  ;;  %4281 = vmatpush1.bf16.msra.mxu1 %v5766_v49 }
 0x28e   : > { %4012 = vmatmul.mubr.bf16.vlgmr.msra.gmra.mrb[0].mxu0 %v1630_v50  ;;  %4299 = vmatmul.mubr.bf16.vlgmr.msra.gmra.mrb[0].mxu1 %v1630_v50 }
 0x35e   : > { %4310 = sbr.rel (%p5039_p9) target bundleno = 904 (0x388), region = 71 }
 0x361   : > { %v4013_v59 = vpop.f32.mrb[0].mxu0  ;;  %v4300_v60 = vpop.f32.mrb[0].mxu1 }
 0x362   : > { %v7288_v62 = vadd.f32 %v4013_v59, %v1533_v56  ;;  %v7290_v0 = vadd.f32 %v4300_v60, %v1541_v45  ;;  %v4015_v1 = vpop.f32.mrb[1].mxu0  ;;  %v4302_v2 = vpop.f32.mrb[1].mxu1 }
 0x363   : > { %v7292_v3 = vadd.f32 %v4015_v1, %v1537_v57  ;;  %v7294_v52 = vadd.f32 %v4302_v2, %v1545_v58  ;;  %v4017_v4 = vpop.f32.mrb[2].mxu0  ;;  %v4304_v5 = vpop.f32.mrb[2].mxu1 }
 0x364   : > { %v4018_v61 = vpop.f32.mrb[3].mxu0  ;;  %v4305_v6 = vpop.f32.mrb[3].mxu1  ;;  %v5040_v7 = vmul.f32 (!%p5039_p9), -1.442695, %v7288_v62  ;;  %v5042_v10 = vmul.f32 (!%p5039_p9), -1.442695, %v7290_v0 }
 0x365   : > { %v5041_v51 = vmul.f32 -1.442695, %v7292_v3  ;;  %v5043_v11 = vmul.f32 -1.442695, %v7294_v52 }
 0x366   : > { %5769 = vpow2.f32 %v5040_v7 }
 0x367   : > { %5771 = vpow2.f32 %v5041_v51 }
 0x368   : > { %5773 = vpow2.f32 %v5042_v10 }
 0x369   : > { %5775 = vpow2.f32 %v5043_v11 }
 0x370   : > { %v5770_v12 = vpop.eup %5769 }
 0x371   : > { %v5772_v13 = vpop.eup %5771  ;;  %v4323_v14 = vadd.f32 1.0, %v5770_v12 }
 0x372   : > { %v5774_v63 = vpop.eup %5773  ;;  %v4324_v15 = vadd.f32 1.0, %v5772_v13 }
 0x373   : > { %v5776_v16 = vpop.eup %5775  ;;  %v4325_v17 = vadd.f32 1.0, %v5774_v63  ;;  %5777 = vrcp.f32 %v4323_v14 }
 0x374   : > { %v4326_v8 = vadd.f32 1.0, %v5776_v16  ;;  %5779 = vrcp.f32 %v4324_v15 }
 0x375   : > { %5781 = vrcp.f32 %v4325_v17 }
 0x376   : > { %5783 = vrcp.f32 %v4326_v8 }
 0x37d   : > { %v5778_v20 = vpop.eup %5777 }
 0x37e   : > { %v5780_v22 = vpop.eup %5779 }
 0x37f   : > { %v5782_v23 = vpop.eup %5781  ;;  %v4339_v24 = vcombine.low %v5778_v20, %v5780_v22 }
 0x380   : > { %v5784_v25 = vpop.eup %5783 }
 0x381   : > { %v4340_v26 = vcombine.low %v5782_v23, %v5784_v25  ;;  %v4347_v27 = vrot.slane %v4339_v24, %v4346_v21 }
 0x383   : > { %v4354_v28 = vrot.slane %v4340_v26, %v4346_v21 }
 0x385   : > { %v4355_v29 = vcombine.low %v4347_v27, %v4354_v28 }
 0x387   : > { %4357 = vst [vmem:[#allocation2] sm:$0xff] %v4355_v29 }
 0x388 PF: > { %p5044_p10 = scmp.ne.s32.totalorder %s5912_s5, 1 }
 0x389   : > { %v5045_v30 = vmul.f32 (!%p5044_p10), -1.442695, %v7288_v62  ;;  %v5046_v31 = vmul.f32 (!%p5044_p10), -1.442695, %v7292_v3  ;;  %v5047_v32 = vmul.f32 (!%p5044_p10), -1.442695, %v7290_v0 }
 0x38a   : > { %4361 = sbr.rel (%p5044_p10) target bundleno = 943 (0x3af), region = 75  ;;  %v5048_v33 = vmul.f32 (!%p5044_p10), -1.442695, %v7294_v52  ;;  %v5855_v34 = vmov (!%p5044_p10), 1983009808   ;;  %v4386_v46 = vld [vmem:[%s7350_s3] sm:$0xff] (!%p5044_p10) }
 0x38b   : > { %5786 = vpow2.f32 (!%p5044_p10), %v5045_v30  ;;  %v4390_v35 = vunpack.c.l.s4 (!%p5044_p10), %v5855_v34  ;;  %v4388_v55 = vcombine.high (!%p5044_p10), %v4386_v46, %v4386_v46 }
 0x38c   : > { %5788 = vpow2.f32 (!%p5044_p10), %v5046_v31 }
 0x38d   : > { %5790 = vpow2.f32 (!%p5044_p10), %v5047_v32  ;;  %v4391_v38 = vunpack.c.0.s8 (!%p5044_p10), %v4390_v35 }
 0x38e   : > { %5792 = vpow2.f32 (!%p5044_p10), %v5048_v33 }
 0x38f   : > { %v4394_v49 = vsub.s32 (!%p5044_p10), %v4391_v38, %v6771_v36 }
 0x391   : > { %v4395_v56 = vrot.slane %v4386_v46, %v4394_v49  ;;  %v4402_v45 = vrot.slane %v4388_v55, %v4394_v49 }
 0x393   : > { %v4403_v57 = vcombine.high %v4395_v56, %v4395_v56  ;;  %v4404_v59 = vcombine.high %v4402_v45, %v4402_v45 }
 0x395   : > { %v5787_v39 = vpop.eup %5786 }
 0x396   : > { %v5789_v40 = vpop.eup %5788  ;;  %v4374_v42 = vadd.f32 1.0, %v5787_v39 }
 0x397   : > { %v5791_v43 = vpop.eup %5790  ;;  %v4375_v44 = vadd.f32 1.0, %v5789_v40 }
 0x398   : > { %v5793_v47 = vpop.eup %5792  ;;  %v4376_v48 = vadd.f32 1.0, %v5791_v43  ;;  %5794 = vrcp.f32 %v4374_v42 }
 0x399   : > { %v4377_v50 = vadd.f32 1.0, %v5793_v47  ;;  %5796 = vrcp.f32 %v4375_v44 }
 0x39a   : > { %5798 = vrcp.f32 %v4376_v48 }
 0x39b   : > { %5800 = vrcp.f32 %v4377_v50 }
 0x3a2   : > { %v5795_v58 = vpop.eup %5794 }
 0x3a3   : > { %v5797_v60 = vpop.eup %5796  ;;  %v4409_v1 = vmul.f32 %v5795_v58, %v4395_v56 }
 0x3a4   : > { %v5799_v2 = vpop.eup %5798  ;;  %v4410_v4 = vmul.f32 %v5797_v60, %v4403_v57 }
 0x3a5   : > { %v5801_v5 = vpop.eup %5800  ;;  %v4411_v61 = vmul.f32 %v5799_v2, %v4402_v45 }
 0x3a6   : > { %v4412_v6 = vmul.f32 %v5801_v5, %v4404_v59  ;;  %v4417_v7 = vcombine.low %v4409_v1, %v4410_v4 }
 0x3a8   : > { %v4418_v51 = vcombine.low %v4411_v61, %v4412_v6  ;;  %v4425_v10 = vrot.slane %v4417_v7, %v4394_v49 }
 0x3aa   : > { %v4432_v11 = vrot.slane %v4418_v51, %v4394_v49 }
 0x3ac   : > { %v4433_v12 = vcombine.low %v4425_v10, %v4432_v11 }
 0x3ae   : > { %4435 = vst [vmem:[#allocation3] sm:$0xff] %v4433_v12 }
 0x3af PF: > { %p5049_p11 = scmp.ne.s32.totalorder %s5912_s5, 2 }
 0x3b0   : > { %5802 = vtanh.f32 (!%p5049_p11), %v7288_v62  ;;  %v5856_v13 = vmov (!%p5049_p11), 1983009808   ;;  %v4441_v22 = vld [vmem:[#allocation2] sm:$0xff] (!%p5049_p11) }
 0x3b1   : > { %4439 = sbr.rel (%p5049_p11) target bundleno = 969 (0x3c9), region = 79  ;;  %5804 = vtanh.f32 (!%p5049_p11), %v7292_v3  ;;  %v4453_v14 = vunpack.c.l.s4 (!%p5049_p11), %v5856_v13 }
 0x3b2   : > { %5806 = vtanh.f32 (!%p5049_p11), %v7290_v0 }
 0x3b3   : > { %5808 = vtanh.f32 (!%p5049_p11), %v7294_v52  ;;  %v4454_v63 = vunpack.c.0.s8 (!%p5049_p11), %v4453_v14 }
 0x3b5   : > { %v4457_v16 = vsub.s32 (!%p5049_p11), %v4454_v63, %v6771_v36  ;;  %v4440_v24 = vld [vmem:[#allocation3] sm:$0xff] (!%p5049_p11) }
 0x3ba   : > { %v5803_v15 = vpop.eup %5802 }
 0x3bb   : > { %v5805_v17 = vpop.eup %5804 }
 0x3bc   : > { %v5807_v8 = vpop.eup %5806  ;;  %v4450_v18 = vcombine.low %v5803_v15, %v5805_v17 }
 0x3bd   : > { %v5809_v9 = vpop.eup %5808 }
 0x3be   : > { %v4451_v19 = vcombine.low %v5807_v8, %v5809_v9  ;;  %v4458_v20 = vrot.slane %v4450_v18, %v4457_v16 }
 0x3c0   : > { %v4465_v21 = vrot.slane %v4451_v19, %v4457_v16 }
 0x3c2   : > { %v4466_v23 = vcombine.low %v4458_v20, %v4465_v21 }
 0x3c4   : > { %v4468_v25 = vmul.f32 %v4466_v23, %v4441_v22 }
 0x3c6   : > { %v4469_v26 = vadd.f32 %v4468_v25, %v4440_v24 }
 0x3c8   : > { %4470 = vst [vmem:[#allocation3] sm:$0xff] %v4469_v26 }
 0x3c9 PF: > { %p5050_p12 = scmp.ne.s32.totalorder %s5912_s5, 3 }
 0x3ca   : > { %v5051_v27 = vmul.f32 (!%p5050_p12), -1.442695, %v7288_v62  ;;  %v5052_v28 = vmul.f32 (!%p5050_p12), -1.442695, %v7292_v3  ;;  %v5053_v29 = vmul.f32 (!%p5050_p12), -1.442695, %v7290_v0 }
 0x3cb   : > { %4474 = sbr.rel (%p5050_p12) target bundleno = 1153 (0x481), region = 83  ;;  %v5054_v30 = vmul.f32 (!%p5050_p12), -1.442695, %v7294_v52  ;;  %v5857_v32 = vmov (!%p5050_p12), 1983009808   ;;  %vm4553_vm0 = vcmask (!%p5050_p12), 1041408  }
 0x3cc   : > { %5810 = vpow2.f32 (!%p5050_p12), %v5051_v27  ;;  %v4504_v33 = vunpack.c.l.s4 (!%p5050_p12), %v5857_v32  ;;  %v4527_v48 = vld [vmem:[%s7351_s4] sm:$0xf] (!%p5050_p12)  ;;  %v5055_v63 = vld [vmem:[#allocation4] ss:$0 sm:$0xff] (!%p5050_p12)  ;;  %vm4571_vm1 = vcmask (!%p5050_p12), 1024  }
 0x3cd   : > { %5812 = vpow2.f32 (!%p5050_p12), %v5052_v28  ;;  %v4532_v50 = vrot.slane (!%p5050_p12), %v4527_v48, %v1532_v54  ;;  %v4536_v45 = vrot.slane (!%p5050_p12), %v4527_v48, %v1536_v37  ;;  %v4540_v59 = vrot.slane (!%p5050_p12), %v4527_v48, %v1540_v53 }
 0x3ce   : > { %5814 = vpow2.f32 (!%p5050_p12), %v5053_v29  ;;  %v4505_v34 = vunpack.c.0.s8 (!%p5050_p12), %v4504_v33  ;;  %v4544_v2 = vrot.slane (!%p5050_p12), %v4527_v48, %v1544_v41 }
 0x3cf   : > { %v4499_v31 = vld [vmem:[#allocation3] sm:$0xff] (!%p5050_p12)  ;;  %5816 = vpow2.f32 (!%p5050_p12), %v5054_v30 }
 0x3d0   : > { %5818 = vtanh.f32 (!%p5050_p12), %v4499_v31  ;;  %v4508_v0 = vsub.s32 (!%p5050_p12), %v4505_v34, %v6771_v36 }
 0x3d6   : > { %v5811_v35 = vpop.eup %5810 }
 0x3d7   : > { %v5813_v38 = vpop.eup %5812  ;;  %v4487_v39 = vadd.f32 1.0, %v5811_v35 }
 0x3d8   : > { %v5815_v40 = vpop.eup %5814  ;;  %v4488_v62 = vadd.f32 1.0, %v5813_v38 }
 0x3d9   : > { %v5817_v42 = vpop.eup %5816  ;;  %v4489_v3 = vadd.f32 1.0, %v5815_v40  ;;  %5820 = vrcp.f32 %v4487_v39 }
 0x3da   : > { %v5819_v52 = vpop.eup %5818  ;;  %v4490_v43 = vadd.f32 1.0, %v5817_v42  ;;  %5822 = vrcp.f32 %v4488_v62 }
 0x3db   : > { %5824 = vrcp.f32 %v4489_v3  ;;  %v4502_v44 = vcombine.high %v5819_v52, %v5819_v52  ;;  %v4509_v46 = vrot.slane %v5819_v52, %v4508_v0 }
 0x3dc   : > { %5826 = vrcp.f32 %v4490_v43 }
 0x3dd   : > { %v4516_v47 = vrot.slane %v4502_v44, %v4508_v0  ;;  %v4517_v49 = vcombine.high %v4509_v46, %v4509_v46 }
 0x3df   : > { %v4518_v56 = vcombine.high %v4516_v47, %v4516_v47 }
 0x3e3   : > { %v5821_v55 = vpop.eup %5820 }
 0x3e4   : > { %v5823_v57 = vpop.eup %5822  ;;  %v4523_v58 = vmul.f32 %v5821_v55, %v4509_v46 }
 0x3e5   : > { %v5825_v60 = vpop.eup %5824  ;;  %v4524_v1 = vmul.f32 %v5823_v57, %v4517_v49 }
 0x3e6   : > { %v5827_v4 = vpop.eup %5826  ;;  %v4525_v5 = vmul.f32 %v5825_v60, %v4516_v47  ;;  %v4549_v61 = vmul.f32 %v4532_v50, %v4523_v58 }
 0x3e7   : > { %v4526_v54 = vmul.f32 %v5827_v4, %v4518_v56  ;;  %v4550_v6 = vmul.f32 %v4536_v45, %v4524_v1 }
 0x3e8   : > { %v4551_v7 = vmul.f32 %v4540_v59, %v4525_v5  ;;  %v4554_v51 = vsel %vm4553_vm0, %v4549_v61, 0.0 }
 0x3e9   : > { %v4552_v10 = vmul.f32 %v4544_v2, %v4526_v54  ;;  %v4555_v37 = vsel %vm4553_vm0, %v4550_v6, 0.0 }
 0x3ea   : > { %v4556_v11 = vadd.f32 %v4555_v37, %v4554_v51  ;;  %v4557_v12 = vsel %vm4553_vm0, %v4551_v7, 0.0 }
 0x3eb   : > { %v4559_v13 = vsel %vm4553_vm0, %v4552_v10, 0.0 }
 0x3ec   : > { %v4558_v14 = vadd.f32 %v4557_v12, %v4556_v11 }
 0x3ee   : > { %v4560_v53 = vadd.f32 %v4559_v13, %v4558_v14 }
 0x3f0   : > { %4561 = vadd.xlane.f32.xlu0 %v4560_v53 }
 0x47d   : > { %v4562_v15 = vpop.xlane.xlu0 %4561 }
 0x47e   : > { %v4570_v36 = vadd.f32 %v5055_v63, %v4562_v15 }
 0x480   : > { %4572 = vst.msk [vmem:[%s7353_s6] sm:$0x3] %vm4571_vm1, %v4570_v36 }
 0x481 PF: > { %p15_p13 = scmp.ge.s32.totalorder %s5915_s26, 6   ;;  %s7354_s23 = smov %s5846_s24 }
 0x482   : > { %s7355_s24 = smov %s5924_s29  ;;  %s7356_s25 = smov %s5915_s26 }
 0x483   :  { %17 = sbr.rel (!%p15_p13) target bundleno = 5 (0x5), region = 117 }

</bundles_post_ra>
